<compile_context>
chip_gen: v7x
topology: tpu7x:2x2x1
jax: 0.10.0
libtpu: 0.0.40
codegen_flags: <defaults>
</compile_context>

<pallas_src>
import jax
import jax.numpy as jnp
from jax import lax
from jax.experimental import pallas as pl
from jax.experimental.pallas import tpu as pltpu


# ----------------------------- Pallas kernels ------------------------------ #

def _conv_bias_kernel(p_ref, w_ref, b_ref, o_ref):
    # out = patches @ W + bias                    (bf16 operands, f32 accumulate)
    acc = jnp.dot(p_ref[...], w_ref[...], preferred_element_type=jnp.float32)
    o_ref[...] = (acc + b_ref[...]).astype(o_ref.dtype)


def _conv_bias_res_kernel(p_ref, w_ref, b_ref, r_ref, o_ref):
    # out = patches @ W + bias + residual
    #   * identity ResBlocks: patches = im2col(pad(relu(bn(x)))), residual = raw x
    #   * deconv stages:      patches = 2x2 im2col of relu(bn(x)), residual = skip
    acc = jnp.dot(p_ref[...], w_ref[...], preferred_element_type=jnp.float32)
    o_ref[...] = (acc + b_ref[...] + r_ref[...].astype(jnp.float32)).astype(o_ref.dtype)


def _conv_bias_proj_kernel(p_ref, w_ref, b_ref, wp_ref, r_ref, o_ref):
    # Projection ResBlocks (stride 2 / channel change): the 1x1 stride-s shortcut
    # is applied to the RAW input rows (PyTorch: conv_residual(input)).
    acc = jnp.dot(p_ref[...], w_ref[...], preferred_element_type=jnp.float32)
    acc = acc + jnp.dot(r_ref[...], wp_ref[...], preferred_element_type=jnp.float32)
    o_ref[...] = (acc + b_ref[...]).astype(o_ref.dtype)


# --------------------------- tiled pallas_call glue ------------------------- #

# 32 MiB scoped-VMEM budget is safe on every generation (v7x: 64 MiB physical).
# Working sets at tm=1024 are ~6 MiB, so this cap is never binding; a v6e-only
# build could raise it to 64 MiB and deepen buffering.
_VMEM_LIMIT_BYTES = 32 * 1024 * 1024
_CPARAMS = pltpu.CompilerParams(
    dimension_semantics=("parallel",),          # shard M-tiles across v7x's 2 TCs
    vmem_limit_bytes=_VMEM_LIMIT_BYTES,
)


def _row_tile(m):
    # Large tiles amortize per-step overhead (~0.35 us) and reach ~85% of HBM
    # roofline at >=512 rows, while guaranteeing >=2 grid steps whenever M allows
    # so dimension_semantics=("parallel",) can use both v7x TensorCores.
    half = ((m + 1) // 2 + 31) // 32 * 32       # round_up(ceil(M/2), 32)
    tm = max(32, min(1024, half))
    return min(tm, ((m + 7) // 8) * 8)          # never exceed the padded row count


def _matmul_call(kernel, patches, consts, out_dtype, cout, row_args=()):
    """Run `kernel` on row-tiled (M, K) patches.

    consts:   small operands (weights / bias) kept resident across the whole grid
              (constant index_map -> DMA'd once, no re-fetch between steps).
    row_args: additional (M, C) operands tiled along rows (raw-x residual / skip).
    """
    m, k = patches.shape
    tm = _row_tile(m)
    grid = (pl.cdiv(m, tm),)

    in_specs = [pl.BlockSpec((tm, k), lambda i: (i, 0))]
    operands = [patches]
    for a in consts:
        in_specs.append(pl.BlockSpec(a.shape, lambda i: (0, 0)))
        operands.append(a)
    for a in row_args:
        in_specs.append(pl.BlockSpec((tm, a.shape[1]), lambda i: (i, 0)))
        operands.append(a)

    return pl.pallas_call(
        kernel,
        out_shape=jax.ShapeDtypeStruct((m, cout), out_dtype),
        grid=grid,
        in_specs=in_specs,
        out_specs=pl.BlockSpec((tm, cout), lambda i: (i, 0)),
        compiler_params=_CPARAMS,
    )(*operands)


# ------------------------------ JAX glue ----------------------------------- #

def _pad_hw(x, p):
    if p == 0:
        return x
    return jnp.pad(x, ((0, 0), (p, p), (p, p), (0, 0)))


def _im2col(xp, kh, kw, stride):
    # xp: [B, Hp, Wp, C] already padded -> ([B*Ho*Wo, kh*kw*C], (B, Ho, Wo))
    # TODO(synk): replace this HBM-materialized im2col with implicit im2col inside
    # the Pallas kernel (tap grid axis + VMEM accumulator, Element-offset or
    # manual-DMA halo blocks) to cut conv-input HBM traffic ~kh*kw fold.
    b, hp, wp, c = xp.shape
    ho = (hp - kh) // stride + 1
    wo = (wp - kw) // stride + 1
    cols = []
    for i in range(kh):
        for j in range(kw):
            cols.append(xp[:, i:i + stride * (ho - 1) + 1:stride,
                           j:j + stride * (wo - 1) + 1:stride, :])
    p = jnp.stack(cols, axis=3)  # [B, Ho, Wo, kh*kw, C]
    return p.reshape(b * ho * wo, kh * kw * c), (b, ho, wo)


def _bn_fold(bn, eps=1e-5):
    gamma, beta, mean, var = bn
    scale = gamma / jnp.sqrt(var + eps)
    shift = beta - mean * scale
    return scale, shift


def _preact(x, bn):
    # ReLU(BN(x)) once on the (B,H,W,C) tensor (pre-activation variant: exact for
    # any BN sign, unlike folding scale into W).  XLA fuses this with the pad /
    # im2col slices that follow.
    scale, shift = _bn_fold(bn)
    return jnp.maximum(x.astype(jnp.float32) * scale + shift, 0.0).astype(jnp.bfloat16)


def conv2d(x, w, b, stride=1, padding=0, out_dtype=jnp.bfloat16):
    # plain conv + bias (conv0).
    kh, kw, cin, cout = w.shape
    patches, (bb, ho, wo) = _im2col(
        _pad_hw(x.astype(jnp.bfloat16), padding), kh, kw, stride)
    out = _matmul_call(
        _conv_bias_kernel, patches,
        consts=[w.reshape(kh * kw * cin, cout), b.reshape(1, cout)],
        out_dtype=out_dtype, cout=cout)
    return out.reshape(bb, ho, wo, cout)


def resblock(x, p, stride=1, out_dtype=jnp.bfloat16):
    # out = Conv3x3(pad(ReLU(BN(x))), stride) + bias + residual(raw x), fused into
    # ONE pallas_call.  BN/ReLU runs once per input element (not per im2col column).
    cin = x.shape[-1]
    cout = p['w'].shape[-1]

    a = _preact(x, p['bn'])                                    # (B,H,W,cin) bf16
    patches, (bb, ho, wo) = _im2col(_pad_hw(a, 1), 3, 3, stride)
    k = patches.shape[1]                                       # 9 * cin

    # PyTorch residual path consumes the RAW block input (identity, or 1x1 stride-s
    # conv); at pad=1 the output grid samples raw x at (s*i, s*j).
    r = x[:, ::stride, ::stride, :].astype(jnp.bfloat16).reshape(bb * ho * wo, cin)

    w = p['w'].reshape(k, cout)
    b = p['b'].reshape(1, cout)
    if 'wr' in p:
        out = _matmul_call(_conv_bias_proj_kernel, patches,
                           consts=[w, b, p['wr'].reshape(cin, cout)],
                           out_dtype=out_dtype, cout=cout, row_args=[r])
    else:
        out = _matmul_call(_conv_bias_res_kernel, patches,
                           consts=[w, b],
                           out_dtype=out_dtype, cout=cout, row_args=[r])
    return out.reshape(bb, ho, wo, cout)


def _deconv_phase_weight(w):
    """Fused subpixel weight for ConvTranspose2d(k=3, s=2, p=1, out_pad=1).

    w is the direct-conv-equivalent (3,3,cin,cout) weight; the returned
    (4*cin, 4*cout) matrix maps the 2x2-tap patches [y(i,j), y(i,j+1), y(i+1,j),
    y(i+1,j+1)] to the 4 output parities [(0,0),(0,1),(1,0),(1,1)] in one matmul
    (lane-dense output; the structural zeros are a deliberate trade vs 4 small
    lane-sparse per-phase matmuls)."""
    cin, cout = w.shape[2], w.shape[3]
    z = jnp.zeros((cin, cout), w.dtype)
    cols = [
        jnp.concatenate([w[1, 1], z,       z,       z      ], axis=0),   # phase (0,0)
        jnp.concatenate([w[1, 0], w[1, 2], z,       z      ], axis=0),   # phase (0,1)
        jnp.concatenate([w[0, 1], z,       w[2, 1], z      ], axis=0),   # phase (1,0)
        jnp.concatenate([w[0, 0], w[0, 2], w[2, 0], w[2, 2]], axis=0),   # phase (1,1)
    ]
    return jnp.concatenate(cols, axis=1)                       # (4*cin, 4*cout)


def deconv_block(x, p, skip, out_dtype=jnp.bfloat16):
    # BN + ReLU + ConvTranspose2d(k=3, s=2, pad=1, out_pad=1, groups=8) + bias,
    # phase-decomposed (no zero-dilation), with the network-level skip add fused
    # into the matmul's residual operand.  One pallas_call per stage.
    bb, h, w, cin = x.shape
    cout = p['w'].shape[-1]

    y = _preact(x, p['bn'])                                    # (B,H,W,cin) bf16
    ye = jnp.pad(y, ((0, 0), (0, 1), (0, 1), (0, 0)))          # bottom/right halo
    patches, (b_, ho, wo) = _im2col(ye, 2, 2, 1)               # (M, 4*cin), ho=h, wo=w

    wbig = _deconv_phase_weight(p['w'])                        # (4*cin, 4*cout) bf16
    bbig = jnp.tile(p['b'], 4).reshape(1, 4 * cout)            # each phase gets +b
    skip_big = (skip.astype(jnp.bfloat16)
                .reshape(bb, h, 2, w, 2, cout)
                .transpose(0, 1, 3, 2, 4, 5)                   # (B,h,w,pi,pj,cout)
                .reshape(b_ * ho * wo, 4 * cout))

    out = _matmul_call(_conv_bias_res_kernel, patches,
                       consts=[wbig, bbig],
                       out_dtype=out_dtype, cout=4 * cout,
                       row_args=[skip_big])

    # Interleave the 4 phases back into the (B, 2H, 2W, cout) output.
    out = (out.reshape(bb, h, w, 2, 2, cout)
              .transpose(0, 1, 3, 2, 4, 5)
              .reshape(bb, 2 * h, 2 * w, cout))
    return out


# --------------------------- parameter synthesis ---------------------------- #

def init_params(key):
    keys = iter(jax.random.split(key, 256))
    nk = lambda: next(keys)

    def conv_w(kh, kw, cin, cout, s=0.1):
        return (s * jax.random.normal(nk(), (kh, kw, cin, cout), jnp.float32)
                ).astype(jnp.bfloat16)

    def bias(c):
        return 0.05 * jax.random.normal(nk(), (c,), jnp.float32)

    def bn_p(c):
        gamma = 1.0 + 0.1 * jax.random.normal(nk(), (c,), jnp.float32)
        beta = 0.1 * jax.random.normal(nk(), (c,), jnp.float32)
        mean = 0.1 * jax.random.normal(nk(), (c,), jnp.float32)
        var = 1.0 + 0.1 * jax.random.uniform(nk(), (c,), jnp.float32)
        return (gamma, beta, mean, var)

    def grouped_deconv_w(cin, cout, groups, s=0.1):
        # direct-conv-equivalent weight of the grouped transposed conv:
        # block-diagonal across (in-group, out-group) channel blocks.
        cing, coutg = cin // groups, cout // groups
        w = jnp.zeros((3, 3, cin, cout), jnp.float32)
        for g in range(groups):
            blk = s * jax.random.normal(nk(), (3, 3, cing, coutg), jnp.float32)
            w = w.at[:, :, g * cing:(g + 1) * cing, g * coutg:(g + 1) * coutg].set(blk)
        return w.astype(jnp.bfloat16)

    def resblk(cin, cout, stride=1):
        p = {'bn': bn_p(cin), 'w': conv_w(3, 3, cin, cout), 'b': bias(cout)}
        if stride != 1 or cin != cout:
            p['wr'] = conv_w(1, 1, cin, cout)
        return p

    return {
        'conv0_w': conv_w(5, 5, 1, 32), 'conv0_b': bias(32),
        'rb0': [resblk(32, 32), resblk(32, 32), resblk(32, 32)],
        'rb1': [resblk(32, 64, stride=2), resblk(64, 64), resblk(64, 64)],
        'rb2': [resblk(64, 128, stride=2), resblk(128, 128), resblk(128, 128)],
        'deconv0': {'bn': bn_p(128), 'w': grouped_deconv_w(128, 64, 8), 'b': bias(64)},
        'deconv1': {'bn': bn_p(64), 'w': grouped_deconv_w(64, 32, 8), 'b': bias(32)},
        'det_w': conv_w(3, 3, 32, 2), 'det_b': bias(2),
        'desc': resblk(128, 128),
    }


# ------------------------------- SEKD forward ------------------------------- #

def sekd_forward(x_nchw, params):
    b, c, h, w = x_nchw.shape
    assert c == 1 and h % 4 == 0 and w % 4 == 0
    x = jnp.transpose(x_nchw, (0, 2, 3, 1))                       # NCHW -> NHWC

    f = conv2d(x, params['conv0_w'], params['conv0_b'], stride=1, padding=2)
    for p in params['rb0']:
        f = resblock(f, p, stride=1)
    feature0_ = f

    f = resblock(feature0_, params['rb1'][0], stride=2)
    f = resblock(f, params['rb1'][1])
    f = resblock(f, params['rb1'][2])
    feature1_ = f

    f = resblock(feature1_, params['rb2'][0], stride=2)
    f = resblock(f, params['rb2'][1])
    f = resblock(f, params['rb2'][2])
    feature2 = f

    # skip adds (feature1_ + deconv0(...), feature0_ + deconv1(...)) are fused
    # into the phase-decomposed deconv matmuls as their residual operand.
    feature1 = deconv_block(feature2, params['deconv0'], skip=feature1_)
    feature0 = deconv_block(feature1, params['deconv1'], skip=feature0_,
                            out_dtype=jnp.float32)

    # Detector head: Cout=2 -> plain XLA conv (a Pallas version would be pure
    # launch + masked-partial-store overhead on 2/256 MXU columns).
    score = lax.conv_general_dilated(
        feature0, params['det_w'].astype(jnp.float32),
        window_strides=(1, 1), padding=((1, 1), (1, 1)),
        dimension_numbers=('NHWC', 'HWIO', 'NHWC')) + params['det_b']

    descriptor = resblock(feature2, params['desc'], stride=1,
                          out_dtype=jnp.float32)

    to_nchw = lambda t: jnp.transpose(t, (0, 3, 1, 2))
    return to_nchw(score), to_nchw(descriptor), to_nchw(feature0)


# ---------------------------------- main ------------------------------------ #

if __name__ == "__main__":
    key = jax.random.PRNGKey(0)
    k_params, k_input = jax.random.split(key)
    params = init_params(k_params)

    # Small deterministic correctness run.  NOTE: kernel-level wins only show up
    # at representative image sizes (e.g. 1x1x480x640) — benchmark there with
    # xprof sums over all XLA ops, not at this 16x16 smoke-test size.
    x = jax.random.normal(k_input, (2, 1, 16, 16), jnp.float32)   # NCHW like PyTorch

    fwd = jax.jit(sekd_forward)
    score, descriptor, feature0 = fwd(x, params)
    jax.block_until_ready((score, descriptor, feature0))

    assert score.shape == (2, 2, 16, 16)
    assert descriptor.shape == (2, 128, 4, 4)
    assert feature0.shape == (2, 32, 16, 16)
    assert score.dtype == jnp.float32 and feature0.dtype == jnp.float32
    print("KERNEL_OK")
</pallas_src>

<mosaic_0001>
module attributes {stable_mosaic.version = 11 : i64} {
  func.func @_conv_bias_kernel(%arg0: i32, %arg1: memref<256x25xbf16, #tpu.memory_space<vmem>>, %arg2: memref<25x32xbf16, #tpu.memory_space<vmem>>, %arg3: memref<1x32xf32, #tpu.memory_space<vmem>>, %arg4: memref<256x32xbf16, #tpu.memory_space<vmem>>) attributes {dimension_semantics = [#tpu.dimension_semantics<parallel>], iteration_bounds = array<i64: 2>, scalar_prefetch = 0 : i64, scratch_operands = 0 : i64, tpu.core_type = #tpu.core_type<tc>, window_params = [{transform_indices = @transform_0, window_bounds = array<i64: 256, 25>}, {pipeline_mode = #tpu.pipeline_mode<synchronous>, transform_indices = @transform_1, window_bounds = array<i64: 25, 32>}, {pipeline_mode = #tpu.pipeline_mode<synchronous>, transform_indices = @transform_2, window_bounds = array<i64: 1, 32>}, {transform_indices = @transform_3, window_bounds = array<i64: 256, 32>}]} {
    %c0 = arith.constant 0 : index
    %c0_0 = arith.constant 0 : index
    %0 = vector.load %arg1[%c0, %c0_0] : memref<256x25xbf16, #tpu.memory_space<vmem>>, vector<256x25xbf16>
    %c0_1 = arith.constant 0 : index
    %c0_2 = arith.constant 0 : index
    %1 = vector.load %arg2[%c0_1, %c0_2] : memref<25x32xbf16, #tpu.memory_space<vmem>>, vector<25x32xbf16>
    %cst = arith.constant dense<0.000000e+00> : vector<256x32xf32>
    %2 = tpu.matmul %0, %1, %cst {dimension_numbers = #tpu.dot_dimension_numbers<[1], [0], [0], [1], [0, 0, 1, 1], [], []>} : vector<256x25xbf16>, vector<25x32xbf16>, vector<256x32xf32> -> vector<256x32xf32>
    %c0_3 = arith.constant 0 : index
    %c0_4 = arith.constant 0 : index
    %3 = vector.load %arg3[%c0_3, %c0_4] : memref<1x32xf32, #tpu.memory_space<vmem>>, vector<1x32xf32>
    %4 = vector.broadcast %3 : vector<1x32xf32> to vector<256x32xf32>
    %5 = arith.addf %2, %4 : vector<256x32xf32>
    %6 = arith.truncf %5 : vector<256x32xf32> to vector<256x32xbf16>
    %c0_5 = arith.constant 0 : index
    %c0_6 = arith.constant 0 : index
    %7 = vector.load %arg4[%c0_5, %c0_6] : memref<256x32xbf16, #tpu.memory_space<vmem>>, vector<256x32xbf16>
    tpu.vector_store %arg4[%c0_5, %c0_6], %6 {strides = array<i32>} : memref<256x32xbf16, #tpu.memory_space<vmem>>, vector<256x32xbf16>,
    return
  }
  func.func @transform_0(%arg0: i32) -> (i32, i32) {
    %c0_i32 = arith.constant 0 : i32
    %c0_i32_0 = arith.constant 0 : i32
    return %arg0, %c0_i32 : i32, i32
  }
  func.func @transform_1(%arg0: i32) -> (i32, i32) {
    %c0_i32 = arith.constant 0 : i32
    %c0_i32_0 = arith.constant 0 : i32
    %c0_i32_1 = arith.constant 0 : i32
    return %c0_i32, %c0_i32_0 : i32, i32
  }
  func.func @transform_2(%arg0: i32) -> (i32, i32) {
    %c0_i32 = arith.constant 0 : i32
    %c0_i32_0 = arith.constant 0 : i32
    %c0_i32_1 = arith.constant 0 : i32
    return %c0_i32, %c0_i32_0 : i32, i32
  }
  func.func @transform_3(%arg0: i32) -> (i32, i32) {
    %c0_i32 = arith.constant 0 : i32
    %c0_i32_0 = arith.constant 0 : i32
    return %arg0, %c0_i32 : i32, i32
  }
}

module attributes {stable_mosaic.version = 11 : i64} {
  func.func @_conv_bias_res_kernel(%arg0: i32, %arg1: memref<256x288xbf16, #tpu.memory_space<vmem>>, %arg2: memref<288x32xbf16, #tpu.memory_space<vmem>>, %arg3: memref<1x32xf32, #tpu.memory_space<vmem>>, %arg4: memref<256x32xbf16, #tpu.memory_space<vmem>>, %arg5: memref<256x32xbf16, #tpu.memory_space<vmem>>) attributes {dimension_semantics = [#tpu.dimension_semantics<parallel>], iteration_bounds = array<i64: 2>, scalar_prefetch = 0 : i64, scratch_operands = 0 : i64, tpu.core_type = #tpu.core_type<tc>, window_params = [{transform_indices = @transform_0, window_bounds = array<i64: 256, 288>}, {pipeline_mode = #tpu.pipeline_mode<synchronous>, transform_indices = @transform_1, window_bounds = array<i64: 288, 32>}, {pipeline_mode = #tpu.pipeline_mode<synchronous>, transform_indices = @transform_2, window_bounds = array<i64: 1, 32>}, {transform_indices = @transform_3, window_bounds = array<i64: 256, 32>}, {transform_indices = @transform_4, window_bounds = array<i64: 256, 32>}]} {
    %c0 = arith.constant 0 : index
    %c0_0 = arith.constant 0 : index
    %0 = vector.load %arg1[%c0, %c0_0] : memref<256x288xbf16, #tpu.memory_space<vmem>>, vector<256x288xbf16>
    %c0_1 = arith.constant 0 : index
    %c0_2 = arith.constant 0 : index
    %1 = vector.load %arg2[%c0_1, %c0_2] : memref<288x32xbf16, #tpu.memory_space<vmem>>, vector<288x32xbf16>
    %cst = arith.constant dense<0.000000e+00> : vector<256x32xf32>
    %2 = tpu.matmul %0, %1, %cst {dimension_numbers = #tpu.dot_dimension_numbers<[1], [0], [0], [1], [0, 0, 1, 1], [], []>} : vector<256x288xbf16>, vector<288x32xbf16>, vector<256x32xf32> -> vector<256x32xf32>
    %c0_3 = arith.constant 0 : index
    %c0_4 = arith.constant 0 : index
    %3 = vector.load %arg3[%c0_3, %c0_4] : memref<1x32xf32, #tpu.memory_space<vmem>>, vector<1x32xf32>
    %4 = vector.broadcast %3 : vector<1x32xf32> to vector<256x32xf32>
    %5 = arith.addf %2, %4 : vector<256x32xf32>
    %c0_5 = arith.constant 0 : index
    %c0_6 = arith.constant 0 : index
    %6 = vector.load %arg4[%c0_5, %c0_6] : memref<256x32xbf16, #tpu.memory_space<vmem>>, vector<256x32xbf16>
    %7 = arith.extf %6 : vector<256x32xbf16> to vector<256x32xf32>
    %8 = arith.addf %5, %7 : vector<256x32xf32>
    %9 = arith.truncf %8 : vector<256x32xf32> to vector<256x32xbf16>
    %c0_7 = arith.constant 0 : index
    %c0_8 = arith.constant 0 : index
    %10 = vector.load %arg5[%c0_7, %c0_8] : memref<256x32xbf16, #tpu.memory_space<vmem>>, vector<256x32xbf16>
    tpu.vector_store %arg5[%c0_7, %c0_8], %9 {strides = array<i32>} : memref<256x32xbf16, #tpu.memory_space<vmem>>, vector<256x32xbf16>,
    return
  }
  func.func @transform_0(%arg0: i32) -> (i32, i32) {
    %c0_i32 = arith.constant 0 : i32
    %c0_i32_0 = arith.constant 0 : i32
    return %arg0, %c0_i32 : i32, i32
  }
  func.func @transform_1(%arg0: i32) -> (i32, i32) {
    %c0_i32 = arith.constant 0 : i32
    %c0_i32_0 = arith.constant 0 : i32
    %c0_i32_1 = arith.constant 0 : i32
    return %c0_i32, %c0_i32_0 : i32, i32
  }
  func.func @transform_2(%arg0: i32) -> (i32, i32) {
    %c0_i32 = arith.constant 0 : i32
    %c0_i32_0 = arith.constant 0 : i32
    %c0_i32_1 = arith.constant 0 : i32
    return %c0_i32, %c0_i32_0 : i32, i32
  }
  func.func @transform_3(%arg0: i32) -> (i32, i32) {
    %c0_i32 = arith.constant 0 : i32
    %c0_i32_0 = arith.constant 0 : i32
    return %arg0, %c0_i32 : i32, i32
  }
  func.func @transform_4(%arg0: i32) -> (i32, i32) {
    %c0_i32 = arith.constant 0 : i32
    %c0_i32_0 = arith.constant 0 : i32
    return %arg0, %c0_i32 : i32, i32
  }
}

module attributes {stable_mosaic.version = 11 : i64} {
  func.func @_conv_bias_proj_kernel(%arg0: i32, %arg1: memref<64x288xbf16, #tpu.memory_space<vmem>>, %arg2: memref<288x64xbf16, #tpu.memory_space<vmem>>, %arg3: memref<1x64xf32, #tpu.memory_space<vmem>>, %arg4: memref<32x64xbf16, #tpu.memory_space<vmem>>, %arg5: memref<64x32xbf16, #tpu.memory_space<vmem>>, %arg6: memref<64x64xbf16, #tpu.memory_space<vmem>>) attributes {dimension_semantics = [#tpu.dimension_semantics<parallel>], iteration_bounds = array<i64: 2>, scalar_prefetch = 0 : i64, scratch_operands = 0 : i64, tpu.core_type = #tpu.core_type<tc>, window_params = [{transform_indices = @transform_0, window_bounds = array<i64: 64, 288>}, {pipeline_mode = #tpu.pipeline_mode<synchronous>, transform_indices = @transform_1, window_bounds = array<i64: 288, 64>}, {pipeline_mode = #tpu.pipeline_mode<synchronous>, transform_indices = @transform_2, window_bounds = array<i64: 1, 64>}, {pipeline_mode = #tpu.pipeline_mode<synchronous>, transform_indices = @transform_3, window_bounds = array<i64: 32, 64>}, {transform_indices = @transform_4, window_bounds = array<i64: 64, 32>}, {transform_indices = @transform_5, window_bounds = array<i64: 64, 64>}]} {
    %c0 = arith.constant 0 : index
    %c0_0 = arith.constant 0 : index
    %0 = vector.load %arg1[%c0, %c0_0] : memref<64x288xbf16, #tpu.memory_space<vmem>>, vector<64x288xbf16>
    %c0_1 = arith.constant 0 : index
    %c0_2 = arith.constant 0 : index
    %1 = vector.load %arg2[%c0_1, %c0_2] : memref<288x64xbf16, #tpu.memory_space<vmem>>, vector<288x64xbf16>
    %cst = arith.constant dense<0.000000e+00> : vector<64x64xf32>
    %2 = tpu.matmul %0, %1, %cst {dimension_numbers = #tpu.dot_dimension_numbers<[1], [0], [0], [1], [0, 0, 1, 1], [], []>} : vector<64x288xbf16>, vector<288x64xbf16>, vector<64x64xf32> -> vector<64x64xf32>
    %c0_3 = arith.constant 0 : index
    %c0_4 = arith.constant 0 : index
    %3 = vector.load %arg5[%c0_3, %c0_4] : memref<64x32xbf16, #tpu.memory_space<vmem>>, vector<64x32xbf16>
    %c0_5 = arith.constant 0 : index
    %c0_6 = arith.constant 0 : index
    %4 = vector.load %arg4[%c0_5, %c0_6] : memref<32x64xbf16, #tpu.memory_space<vmem>>, vector<32x64xbf16>
    %cst_7 = arith.constant dense<0.000000e+00> : vector<64x64xf32>
    %5 = tpu.matmul %3, %4, %cst_7 {dimension_numbers = #tpu.dot_dimension_numbers<[1], [0], [0], [1], [0, 0, 1, 1], [], []>} : vector<64x32xbf16>, vector<32x64xbf16>, vector<64x64xf32> -> vector<64x64xf32>
    %6 = arith.addf %2, %5 : vector<64x64xf32>
    %c0_8 = arith.constant 0 : index
    %c0_9 = arith.constant 0 : index
    %7 = vector.load %arg3[%c0_8, %c0_9] : memref<1x64xf32, #tpu.memory_space<vmem>>, vector<1x64xf32>
    %8 = vector.broadcast %7 : vector<1x64xf32> to vector<64x64xf32>
    %9 = arith.addf %6, %8 : vector<64x64xf32>
    %10 = arith.truncf %9 : vector<64x64xf32> to vector<64x64xbf16>
    %c0_10 = arith.constant 0 : index
    %c0_11 = arith.constant 0 : index
    %11 = vector.load %arg6[%c0_10, %c0_11] : memref<64x64xbf16, #tpu.memory_space<vmem>>, vector<64x64xbf16>
    tpu.vector_store %arg6[%c0_10, %c0_11], %10 {strides = array<i32>} : memref<64x64xbf16, #tpu.memory_space<vmem>>, vector<64x64xbf16>,
    return
  }
  func.func @transform_0(%arg0: i32) -> (i32, i32) {
    %c0_i32 = arith.constant 0 : i32
    %c0_i32_0 = arith.constant 0 : i32
    return %arg0, %c0_i32 : i32, i32
  }
  func.func @transform_1(%arg0: i32) -> (i32, i32) {
    %c0_i32 = arith.constant 0 : i32
    %c0_i32_0 = arith.constant 0 : i32
    %c0_i32_1 = arith.constant 0 : i32
    return %c0_i32, %c0_i32_0 : i32, i32
  }
  func.func @transform_2(%arg0: i32) -> (i32, i32) {
    %c0_i32 = arith.constant 0 : i32
    %c0_i32_0 = arith.constant 0 : i32
    %c0_i32_1 = arith.constant 0 : i32
    return %c0_i32, %c0_i32_0 : i32, i32
  }
  func.func @transform_3(%arg0: i32) -> (i32, i32) {
    %c0_i32 = arith.constant 0 : i32
    %c0_i32_0 = arith.constant 0 : i32
    %c0_i32_1 = arith.constant 0 : i32
    return %c0_i32, %c0_i32_0 : i32, i32
  }
  func.func @transform_4(%arg0: i32) -> (i32, i32) {
    %c0_i32 = arith.constant 0 : i32
    %c0_i32_0 = arith.constant 0 : i32
    return %arg0, %c0_i32 : i32, i32
  }
  func.func @transform_5(%arg0: i32) -> (i32, i32) {
    %c0_i32 = arith.constant 0 : i32
    %c0_i32_0 = arith.constant 0 : i32
    return %arg0, %c0_i32 : i32, i32
  }
}

module attributes {stable_mosaic.version = 11 : i64} {
  func.func @_conv_bias_res_kernel(%arg0: i32, %arg1: memref<64x576xbf16, #tpu.memory_space<vmem>>, %arg2: memref<576x64xbf16, #tpu.memory_space<vmem>>, %arg3: memref<1x64xf32, #tpu.memory_space<vmem>>, %arg4: memref<64x64xbf16, #tpu.memory_space<vmem>>, %arg5: memref<64x64xbf16, #tpu.memory_space<vmem>>) attributes {dimension_semantics = [#tpu.dimension_semantics<parallel>], iteration_bounds = array<i64: 2>, scalar_prefetch = 0 : i64, scratch_operands = 0 : i64, tpu.core_type = #tpu.core_type<tc>, window_params = [{transform_indices = @transform_0, window_bounds = array<i64: 64, 576>}, {pipeline_mode = #tpu.pipeline_mode<synchronous>, transform_indices = @transform_1, window_bounds = array<i64: 576, 64>}, {pipeline_mode = #tpu.pipeline_mode<synchronous>, transform_indices = @transform_2, window_bounds = array<i64: 1, 64>}, {transform_indices = @transform_3, window_bounds = array<i64: 64, 64>}, {transform_indices = @transform_4, window_bounds = array<i64: 64, 64>}]} {
    %c0 = arith.constant 0 : index
    %c0_0 = arith.constant 0 : index
    %0 = vector.load %arg1[%c0, %c0_0] : memref<64x576xbf16, #tpu.memory_space<vmem>>, vector<64x576xbf16>
    %c0_1 = arith.constant 0 : index
    %c0_2 = arith.constant 0 : index
    %1 = vector.load %arg2[%c0_1, %c0_2] : memref<576x64xbf16, #tpu.memory_space<vmem>>, vector<576x64xbf16>
    %cst = arith.constant dense<0.000000e+00> : vector<64x64xf32>
    %2 = tpu.matmul %0, %1, %cst {dimension_numbers = #tpu.dot_dimension_numbers<[1], [0], [0], [1], [0, 0, 1, 1], [], []>} : vector<64x576xbf16>, vector<576x64xbf16>, vector<64x64xf32> -> vector<64x64xf32>
    %c0_3 = arith.constant 0 : index
    %c0_4 = arith.constant 0 : index
    %3 = vector.load %arg3[%c0_3, %c0_4] : memref<1x64xf32, #tpu.memory_space<vmem>>, vector<1x64xf32>
    %4 = vector.broadcast %3 : vector<1x64xf32> to vector<64x64xf32>
    %5 = arith.addf %2, %4 : vector<64x64xf32>
    %c0_5 = arith.constant 0 : index
    %c0_6 = arith.constant 0 : index
    %6 = vector.load %arg4[%c0_5, %c0_6] : memref<64x64xbf16, #tpu.memory_space<vmem>>, vector<64x64xbf16>
    %7 = arith.extf %6 : vector<64x64xbf16> to vector<64x64xf32>
    %8 = arith.addf %5, %7 : vector<64x64xf32>
    %9 = arith.truncf %8 : vector<64x64xf32> to vector<64x64xbf16>
    %c0_7 = arith.constant 0 : index
    %c0_8 = arith.constant 0 : index
    %10 = vector.load %arg5[%c0_7, %c0_8] : memref<64x64xbf16, #tpu.memory_space<vmem>>, vector<64x64xbf16>
    tpu.vector_store %arg5[%c0_7, %c0_8], %9 {strides = array<i32>} : memref<64x64xbf16, #tpu.memory_space<vmem>>, vector<64x64xbf16>,
    return
  }
  func.func @transform_0(%arg0: i32) -> (i32, i32) {
    %c0_i32 = arith.constant 0 : i32
    %c0_i32_0 = arith.constant 0 : i32
    return %arg0, %c0_i32 : i32, i32
  }
  func.func @transform_1(%arg0: i32) -> (i32, i32) {
    %c0_i32 = arith.constant 0 : i32
    %c0_i32_0 = arith.constant 0 : i32
    %c0_i32_1 = arith.constant 0 : i32
    return %c0_i32, %c0_i32_0 : i32, i32
  }
  func.func @transform_2(%arg0: i32) -> (i32, i32) {
    %c0_i32 = arith.constant 0 : i32
    %c0_i32_0 = arith.constant 0 : i32
    %c0_i32_1 = arith.constant 0 : i32
    return %c0_i32, %c0_i32_0 : i32, i32
  }
  func.func @transform_3(%arg0: i32) -> (i32, i32) {
    %c0_i32 = arith.constant 0 : i32
    %c0_i32_0 = arith.constant 0 : i32
    return %arg0, %c0_i32 : i32, i32
  }
  func.func @transform_4(%arg0: i32) -> (i32, i32) {
    %c0_i32 = arith.constant 0 : i32
    %c0_i32_0 = arith.constant 0 : i32
    return %arg0, %c0_i32 : i32, i32
  }
}

module attributes {stable_mosaic.version = 11 : i64} {
  func.func @_conv_bias_proj_kernel(%arg0: i32, %arg1: memref<32x576xbf16, #tpu.memory_space<vmem>>, %arg2: memref<576x128xbf16, #tpu.memory_space<vmem>>, %arg3: memref<1x128xf32, #tpu.memory_space<vmem>>, %arg4: memref<64x128xbf16, #tpu.memory_space<vmem>>, %arg5: memref<32x64xbf16, #tpu.memory_space<vmem>>, %arg6: memref<32x128xbf16, #tpu.memory_space<vmem>>) attributes {dimension_semantics = [#tpu.dimension_semantics<parallel>], iteration_bounds = array<i64: 1>, scalar_prefetch = 0 : i64, scratch_operands = 0 : i64, tpu.core_type = #tpu.core_type<tc>, window_params = [{transform_indices = @transform_0, window_bounds = array<i64: 32, 576>}, {pipeline_mode = #tpu.pipeline_mode<synchronous>, transform_indices = @transform_1, window_bounds = array<i64: 576, 128>}, {pipeline_mode = #tpu.pipeline_mode<synchronous>, transform_indices = @transform_2, window_bounds = array<i64: 1, 128>}, {pipeline_mode = #tpu.pipeline_mode<synchronous>, transform_indices = @transform_3, window_bounds = array<i64: 64, 128>}, {transform_indices = @transform_4, window_bounds = array<i64: 32, 64>}, {transform_indices = @transform_5, window_bounds = array<i64: 32, 128>}]} {
    %c0 = arith.constant 0 : index
    %c0_0 = arith.constant 0 : index
    %0 = vector.load %arg1[%c0, %c0_0] : memref<32x576xbf16, #tpu.memory_space<vmem>>, vector<32x576xbf16>
    %c0_1 = arith.constant 0 : index
    %c0_2 = arith.constant 0 : index
    %1 = vector.load %arg2[%c0_1, %c0_2] : memref<576x128xbf16, #tpu.memory_space<vmem>>, vector<576x128xbf16>
    %cst = arith.constant dense<0.000000e+00> : vector<32x128xf32>
    %2 = tpu.matmul %0, %1, %cst {dimension_numbers = #tpu.dot_dimension_numbers<[1], [0], [0], [1], [0, 0, 1, 1], [], []>} : vector<32x576xbf16>, vector<576x128xbf16>, vector<32x128xf32> -> vector<32x128xf32>
    %c0_3 = arith.constant 0 : index
    %c0_4 = arith.constant 0 : index
    %3 = vector.load %arg5[%c0_3, %c0_4] : memref<32x64xbf16, #tpu.memory_space<vmem>>, vector<32x64xbf16>
    %c0_5 = arith.constant 0 : index
    %c0_6 = arith.constant 0 : index
    %4 = vector.load %arg4[%c0_5, %c0_6] : memref<64x128xbf16, #tpu.memory_space<vmem>>, vector<64x128xbf16>
    %cst_7 = arith.constant dense<0.000000e+00> : vector<32x128xf32>
    %5 = tpu.matmul %3, %4, %cst_7 {dimension_numbers = #tpu.dot_dimension_numbers<[1], [0], [0], [1], [0, 0, 1, 1], [], []>} : vector<32x64xbf16>, vector<64x128xbf16>, vector<32x128xf32> -> vector<32x128xf32>
    %6 = arith.addf %2, %5 : vector<32x128xf32>
    %c0_8 = arith.constant 0 : index
    %c0_9 = arith.constant 0 : index
    %7 = vector.load %arg3[%c0_8, %c0_9] : memref<1x128xf32, #tpu.memory_space<vmem>>, vector<1x128xf32>
    %8 = vector.broadcast %7 : vector<1x128xf32> to vector<32x128xf32>
    %9 = arith.addf %6, %8 : vector<32x128xf32>
    %10 = arith.truncf %9 : vector<32x128xf32> to vector<32x128xbf16>
    %c0_10 = arith.constant 0 : index
    %c0_11 = arith.constant 0 : index
    %11 = vector.load %arg6[%c0_10, %c0_11] : memref<32x128xbf16, #tpu.memory_space<vmem>>, vector<32x128xbf16>
    tpu.vector_store %arg6[%c0_10, %c0_11], %10 {strides = array<i32>} : memref<32x128xbf16, #tpu.memory_space<vmem>>, vector<32x128xbf16>,
    return
  }
  func.func @transform_0(%arg0: i32) -> (i32, i32) {
    %c0_i32 = arith.constant 0 : i32
    %c0_i32_0 = arith.constant 0 : i32
    return %arg0, %c0_i32 : i32, i32
  }
  func.func @transform_1(%arg0: i32) -> (i32, i32) {
    %c0_i32 = arith.constant 0 : i32
    %c0_i32_0 = arith.constant 0 : i32
    %c0_i32_1 = arith.constant 0 : i32
    return %c0_i32, %c0_i32_0 : i32, i32
  }
  func.func @transform_2(%arg0: i32) -> (i32, i32) {
    %c0_i32 = arith.constant 0 : i32
    %c0_i32_0 = arith.constant 0 : i32
    %c0_i32_1 = arith.constant 0 : i32
    return %c0_i32, %c0_i32_0 : i32, i32
  }
  func.func @transform_3(%arg0: i32) -> (i32, i32) {
    %c0_i32 = arith.constant 0 : i32
    %c0_i32_0 = arith.constant 0 : i32
    %c0_i32_1 = arith.constant 0 : i32
    return %c0_i32, %c0_i32_0 : i32, i32
  }
  func.func @transform_4(%arg0: i32) -> (i32, i32) {
    %c0_i32 = arith.constant 0 : i32
    %c0_i32_0 = arith.constant 0 : i32
    return %arg0, %c0_i32 : i32, i32
  }
  func.func @transform_5(%arg0: i32) -> (i32, i32) {
    %c0_i32 = arith.constant 0 : i32
    %c0_i32_0 = arith.constant 0 : i32
    return %arg0, %c0_i32 : i32, i32
  }
}

module attributes {stable_mosaic.version = 11 : i64} {
  func.func @_conv_bias_res_kernel(%arg0: i32, %arg1: memref<32x1152xbf16, #tpu.memory_space<vmem>>, %arg2: memref<1152x128xbf16, #tpu.memory_space<vmem>>, %arg3: memref<1x128xf32, #tpu.memory_space<vmem>>, %arg4: memref<32x128xbf16, #tpu.memory_space<vmem>>, %arg5: memref<32x128xbf16, #tpu.memory_space<vmem>>) attributes {dimension_semantics = [#tpu.dimension_semantics<parallel>], iteration_bounds = array<i64: 1>, scalar_prefetch = 0 : i64, scratch_operands = 0 : i64, tpu.core_type = #tpu.core_type<tc>, window_params = [{transform_indices = @transform_0, window_bounds = array<i64: 32, 1152>}, {pipeline_mode = #tpu.pipeline_mode<synchronous>, transform_indices = @transform_1, window_bounds = array<i64: 1152, 128>}, {pipeline_mode = #tpu.pipeline_mode<synchronous>, transform_indices = @transform_2, window_bounds = array<i64: 1, 128>}, {transform_indices = @transform_3, window_bounds = array<i64: 32, 128>}, {transform_indices = @transform_4, window_bounds = array<i64: 32, 128>}]} {
    %c0 = arith.constant 0 : index
    %c0_0 = arith.constant 0 : index
    %0 = vector.load %arg1[%c0, %c0_0] : memref<32x1152xbf16, #tpu.memory_space<vmem>>, vector<32x1152xbf16>
    %c0_1 = arith.constant 0 : index
    %c0_2 = arith.constant 0 : index
    %1 = vector.load %arg2[%c0_1, %c0_2] : memref<1152x128xbf16, #tpu.memory_space<vmem>>, vector<1152x128xbf16>
    %cst = arith.constant dense<0.000000e+00> : vector<32x128xf32>
    %2 = tpu.matmul %0, %1, %cst {dimension_numbers = #tpu.dot_dimension_numbers<[1], [0], [0], [1], [0, 0, 1, 1], [], []>} : vector<32x1152xbf16>, vector<1152x128xbf16>, vector<32x128xf32> -> vector<32x128xf32>
    %c0_3 = arith.constant 0 : index
    %c0_4 = arith.constant 0 : index
    %3 = vector.load %arg3[%c0_3, %c0_4] : memref<1x128xf32, #tpu.memory_space<vmem>>, vector<1x128xf32>
    %4 = vector.broadcast %3 : vector<1x128xf32> to vector<32x128xf32>
    %5 = arith.addf %2, %4 : vector<32x128xf32>
    %c0_5 = arith.constant 0 : index
    %c0_6 = arith.constant 0 : index
    %6 = vector.load %arg4[%c0_5, %c0_6] : memref<32x128xbf16, #tpu.memory_space<vmem>>, vector<32x128xbf16>
    %7 = arith.extf %6 : vector<32x128xbf16> to vector<32x128xf32>
    %8 = arith.addf %5, %7 : vector<32x128xf32>
    %9 = arith.truncf %8 : vector<32x128xf32> to vector<32x128xbf16>
    %c0_7 = arith.constant 0 : index
    %c0_8 = arith.constant 0 : index
    %10 = vector.load %arg5[%c0_7, %c0_8] : memref<32x128xbf16, #tpu.memory_space<vmem>>, vector<32x128xbf16>
    tpu.vector_store %arg5[%c0_7, %c0_8], %9 {strides = array<i32>} : memref<32x128xbf16, #tpu.memory_space<vmem>>, vector<32x128xbf16>,
    return
  }
  func.func @transform_0(%arg0: i32) -> (i32, i32) {
    %c0_i32 = arith.constant 0 : i32
    %c0_i32_0 = arith.constant 0 : i32
    return %arg0, %c0_i32 : i32, i32
  }
  func.func @transform_1(%arg0: i32) -> (i32, i32) {
    %c0_i32 = arith.constant 0 : i32
    %c0_i32_0 = arith.constant 0 : i32
    %c0_i32_1 = arith.constant 0 : i32
    return %c0_i32, %c0_i32_0 : i32, i32
  }
  func.func @transform_2(%arg0: i32) -> (i32, i32) {
    %c0_i32 = arith.constant 0 : i32
    %c0_i32_0 = arith.constant 0 : i32
    %c0_i32_1 = arith.constant 0 : i32
    return %c0_i32, %c0_i32_0 : i32, i32
  }
  func.func @transform_3(%arg0: i32) -> (i32, i32) {
    %c0_i32 = arith.constant 0 : i32
    %c0_i32_0 = arith.constant 0 : i32
    return %arg0, %c0_i32 : i32, i32
  }
  func.func @transform_4(%arg0: i32) -> (i32, i32) {
    %c0_i32 = arith.constant 0 : i32
    %c0_i32_0 = arith.constant 0 : i32
    return %arg0, %c0_i32 : i32, i32
  }
}

module attributes {stable_mosaic.version = 11 : i64} {
  func.func @_conv_bias_res_kernel(%arg0: i32, %arg1: memref<32x1152xbf16, #tpu.memory_space<vmem>>, %arg2: memref<1152x128xbf16, #tpu.memory_space<vmem>>, %arg3: memref<1x128xf32, #tpu.memory_space<vmem>>, %arg4: memref<32x128xbf16, #tpu.memory_space<vmem>>, %arg5: memref<32x128xf32, #tpu.memory_space<vmem>>) attributes {dimension_semantics = [#tpu.dimension_semantics<parallel>], iteration_bounds = array<i64: 1>, scalar_prefetch = 0 : i64, scratch_operands = 0 : i64, tpu.core_type = #tpu.core_type<tc>, window_params = [{transform_indices = @transform_0, window_bounds = array<i64: 32, 1152>}, {pipeline_mode = #tpu.pipeline_mode<synchronous>, transform_indices = @transform_1, window_bounds = array<i64: 1152, 128>}, {pipeline_mode = #tpu.pipeline_mode<synchronous>, transform_indices = @transform_2, window_bounds = array<i64: 1, 128>}, {transform_indices = @transform_3, window_bounds = array<i64: 32, 128>}, {transform_indices = @transform_4, window_bounds = array<i64: 32, 128>}]} {
    %c0 = arith.constant 0 : index
    %c0_0 = arith.constant 0 : index
    %0 = vector.load %arg1[%c0, %c0_0] : memref<32x1152xbf16, #tpu.memory_space<vmem>>, vector<32x1152xbf16>
    %c0_1 = arith.constant 0 : index
    %c0_2 = arith.constant 0 : index
    %1 = vector.load %arg2[%c0_1, %c0_2] : memref<1152x128xbf16, #tpu.memory_space<vmem>>, vector<1152x128xbf16>
    %cst = arith.constant dense<0.000000e+00> : vector<32x128xf32>
    %2 = tpu.matmul %0, %1, %cst {dimension_numbers = #tpu.dot_dimension_numbers<[1], [0], [0], [1], [0, 0, 1, 1], [], []>} : vector<32x1152xbf16>, vector<1152x128xbf16>, vector<32x128xf32> -> vector<32x128xf32>
    %c0_3 = arith.constant 0 : index
    %c0_4 = arith.constant 0 : index
    %3 = vector.load %arg3[%c0_3, %c0_4] : memref<1x128xf32, #tpu.memory_space<vmem>>, vector<1x128xf32>
    %4 = vector.broadcast %3 : vector<1x128xf32> to vector<32x128xf32>
    %5 = arith.addf %2, %4 : vector<32x128xf32>
    %c0_5 = arith.constant 0 : index
    %c0_6 = arith.constant 0 : index
    %6 = vector.load %arg4[%c0_5, %c0_6] : memref<32x128xbf16, #tpu.memory_space<vmem>>, vector<32x128xbf16>
    %7 = arith.extf %6 : vector<32x128xbf16> to vector<32x128xf32>
    %8 = arith.addf %5, %7 : vector<32x128xf32>
    %c0_7 = arith.constant 0 : index
    %c0_8 = arith.constant 0 : index
    %9 = vector.load %arg5[%c0_7, %c0_8] : memref<32x128xf32, #tpu.memory_space<vmem>>, vector<32x128xf32>
    tpu.vector_store %arg5[%c0_7, %c0_8], %8 {strides = array<i32>} : memref<32x128xf32, #tpu.memory_space<vmem>>, vector<32x128xf32>,
    return
  }
  func.func @transform_0(%arg0: i32) -> (i32, i32) {
    %c0_i32 = arith.constant 0 : i32
    %c0_i32_0 = arith.constant 0 : i32
    return %arg0, %c0_i32 : i32, i32
  }
  func.func @transform_1(%arg0: i32) -> (i32, i32) {
    %c0_i32 = arith.constant 0 : i32
    %c0_i32_0 = arith.constant 0 : i32
    %c0_i32_1 = arith.constant 0 : i32
    return %c0_i32, %c0_i32_0 : i32, i32
  }
  func.func @transform_2(%arg0: i32) -> (i32, i32) {
    %c0_i32 = arith.constant 0 : i32
    %c0_i32_0 = arith.constant 0 : i32
    %c0_i32_1 = arith.constant 0 : i32
    return %c0_i32, %c0_i32_0 : i32, i32
  }
  func.func @transform_3(%arg0: i32) -> (i32, i32) {
    %c0_i32 = arith.constant 0 : i32
    %c0_i32_0 = arith.constant 0 : i32
    return %arg0, %c0_i32 : i32, i32
  }
  func.func @transform_4(%arg0: i32) -> (i32, i32) {
    %c0_i32 = arith.constant 0 : i32
    %c0_i32_0 = arith.constant 0 : i32
    return %arg0, %c0_i32 : i32, i32
  }
}

module attributes {stable_mosaic.version = 11 : i64} {
  func.func @_conv_bias_res_kernel(%arg0: i32, %arg1: memref<32x512xbf16, #tpu.memory_space<vmem>>, %arg2: memref<512x256xbf16, #tpu.memory_space<vmem>>, %arg3: memref<1x256xf32, #tpu.memory_space<vmem>>, %arg4: memref<32x256xbf16, #tpu.memory_space<vmem>>, %arg5: memref<32x256xbf16, #tpu.memory_space<vmem>>) attributes {dimension_semantics = [#tpu.dimension_semantics<parallel>], iteration_bounds = array<i64: 1>, scalar_prefetch = 0 : i64, scratch_operands = 0 : i64, tpu.core_type = #tpu.core_type<tc>, window_params = [{transform_indices = @transform_0, window_bounds = array<i64: 32, 512>}, {pipeline_mode = #tpu.pipeline_mode<synchronous>, transform_indices = @transform_1, window_bounds = array<i64: 512, 256>}, {pipeline_mode = #tpu.pipeline_mode<synchronous>, transform_indices = @transform_2, window_bounds = array<i64: 1, 256>}, {transform_indices = @transform_3, window_bounds = array<i64: 32, 256>}, {transform_indices = @transform_4, window_bounds = array<i64: 32, 256>}]} {
    %c0 = arith.constant 0 : index
    %c0_0 = arith.constant 0 : index
    %0 = vector.load %arg1[%c0, %c0_0] : memref<32x512xbf16, #tpu.memory_space<vmem>>, vector<32x512xbf16>
    %c0_1 = arith.constant 0 : index
    %c0_2 = arith.constant 0 : index
    %1 = vector.load %arg2[%c0_1, %c0_2] : memref<512x256xbf16, #tpu.memory_space<vmem>>, vector<512x256xbf16>
    %cst = arith.constant dense<0.000000e+00> : vector<32x256xf32>
    %2 = tpu.matmul %0, %1, %cst {dimension_numbers = #tpu.dot_dimension_numbers<[1], [0], [0], [1], [0, 0, 1, 1], [], []>} : vector<32x512xbf16>, vector<512x256xbf16>, vector<32x256xf32> -> vector<32x256xf32>
    %c0_3 = arith.constant 0 : index
    %c0_4 = arith.constant 0 : index
    %3 = vector.load %arg3[%c0_3, %c0_4] : memref<1x256xf32, #tpu.memory_space<vmem>>, vector<1x256xf32>
    %4 = vector.broadcast %3 : vector<1x256xf32> to vector<32x256xf32>
    %5 = arith.addf %2, %4 : vector<32x256xf32>
    %c0_5 = arith.constant 0 : index
    %c0_6 = arith.constant 0 : index
    %6 = vector.load %arg4[%c0_5, %c0_6] : memref<32x256xbf16, #tpu.memory_space<vmem>>, vector<32x256xbf16>
    %7 = arith.extf %6 : vector<32x256xbf16> to vector<32x256xf32>
    %8 = arith.addf %5, %7 : vector<32x256xf32>
    %9 = arith.truncf %8 : vector<32x256xf32> to vector<32x256xbf16>
    %c0_7 = arith.constant 0 : index
    %c0_8 = arith.constant 0 : index
    %10 = vector.load %arg5[%c0_7, %c0_8] : memref<32x256xbf16, #tpu.memory_space<vmem>>, vector<32x256xbf16>
    tpu.vector_store %arg5[%c0_7, %c0_8], %9 {strides = array<i32>} : memref<32x256xbf16, #tpu.memory_space<vmem>>, vector<32x256xbf16>,
    return
  }
  func.func @transform_0(%arg0: i32) -> (i32, i32) {
    %c0_i32 = arith.constant 0 : i32
    %c0_i32_0 = arith.constant 0 : i32
    return %arg0, %c0_i32 : i32, i32
  }
  func.func @transform_1(%arg0: i32) -> (i32, i32) {
    %c0_i32 = arith.constant 0 : i32
    %c0_i32_0 = arith.constant 0 : i32
    %c0_i32_1 = arith.constant 0 : i32
    return %c0_i32, %c0_i32_0 : i32, i32
  }
  func.func @transform_2(%arg0: i32) -> (i32, i32) {
    %c0_i32 = arith.constant 0 : i32
    %c0_i32_0 = arith.constant 0 : i32
    %c0_i32_1 = arith.constant 0 : i32
    return %c0_i32, %c0_i32_0 : i32, i32
  }
  func.func @transform_3(%arg0: i32) -> (i32, i32) {
    %c0_i32 = arith.constant 0 : i32
    %c0_i32_0 = arith.constant 0 : i32
    return %arg0, %c0_i32 : i32, i32
  }
  func.func @transform_4(%arg0: i32) -> (i32, i32) {
    %c0_i32 = arith.constant 0 : i32
    %c0_i32_0 = arith.constant 0 : i32
    return %arg0, %c0_i32 : i32, i32
  }
}

module attributes {stable_mosaic.version = 11 : i64} {
  func.func @_conv_bias_res_kernel(%arg0: i32, %arg1: memref<64x256xbf16, #tpu.memory_space<vmem>>, %arg2: memref<256x128xbf16, #tpu.memory_space<vmem>>, %arg3: memref<1x128xf32, #tpu.memory_space<vmem>>, %arg4: memref<64x128xbf16, #tpu.memory_space<vmem>>, %arg5: memref<64x128xf32, #tpu.memory_space<vmem>>) attributes {dimension_semantics = [#tpu.dimension_semantics<parallel>], iteration_bounds = array<i64: 2>, scalar_prefetch = 0 : i64, scratch_operands = 0 : i64, tpu.core_type = #tpu.core_type<tc>, window_params = [{transform_indices = @transform_0, window_bounds = array<i64: 64, 256>}, {pipeline_mode = #tpu.pipeline_mode<synchronous>, transform_indices = @transform_1, window_bounds = array<i64: 256, 128>}, {pipeline_mode = #tpu.pipeline_mode<synchronous>, transform_indices = @transform_2, window_bounds = array<i64: 1, 128>}, {transform_indices = @transform_3, window_bounds = array<i64: 64, 128>}, {transform_indices = @transform_4, window_bounds = array<i64: 64, 128>}]} {
    %c0 = arith.constant 0 : index
    %c0_0 = arith.constant 0 : index
    %0 = vector.load %arg1[%c0, %c0_0] : memref<64x256xbf16, #tpu.memory_space<vmem>>, vector<64x256xbf16>
    %c0_1 = arith.constant 0 : index
    %c0_2 = arith.constant 0 : index
    %1 = vector.load %arg2[%c0_1, %c0_2] : memref<256x128xbf16, #tpu.memory_space<vmem>>, vector<256x128xbf16>
    %cst = arith.constant dense<0.000000e+00> : vector<64x128xf32>
    %2 = tpu.matmul %0, %1, %cst {dimension_numbers = #tpu.dot_dimension_numbers<[1], [0], [0], [1], [0, 0, 1, 1], [], []>} : vector<64x256xbf16>, vector<256x128xbf16>, vector<64x128xf32> -> vector<64x128xf32>
    %c0_3 = arith.constant 0 : index
    %c0_4 = arith.constant 0 : index
    %3 = vector.load %arg3[%c0_3, %c0_4] : memref<1x128xf32, #tpu.memory_space<vmem>>, vector<1x128xf32>
    %4 = vector.broadcast %3 : vector<1x128xf32> to vector<64x128xf32>
    %5 = arith.addf %2, %4 : vector<64x128xf32>
    %c0_5 = arith.constant 0 : index
    %c0_6 = arith.constant 0 : index
    %6 = vector.load %arg4[%c0_5, %c0_6] : memref<64x128xbf16, #tpu.memory_space<vmem>>, vector<64x128xbf16>
    %7 = arith.extf %6 : vector<64x128xbf16> to vector<64x128xf32>
    %8 = arith.addf %5, %7 : vector<64x128xf32>
    %c0_7 = arith.constant 0 : index
    %c0_8 = arith.constant 0 : index
    %9 = vector.load %arg5[%c0_7, %c0_8] : memref<64x128xf32, #tpu.memory_space<vmem>>, vector<64x128xf32>
    tpu.vector_store %arg5[%c0_7, %c0_8], %8 {strides = array<i32>} : memref<64x128xf32, #tpu.memory_space<vmem>>, vector<64x128xf32>,
    return
  }
  func.func @transform_0(%arg0: i32) -> (i32, i32) {
    %c0_i32 = arith.constant 0 : i32
    %c0_i32_0 = arith.constant 0 : i32
    return %arg0, %c0_i32 : i32, i32
  }
  func.func @transform_1(%arg0: i32) -> (i32, i32) {
    %c0_i32 = arith.constant 0 : i32
    %c0_i32_0 = arith.constant 0 : i32
    %c0_i32_1 = arith.constant 0 : i32
    return %c0_i32, %c0_i32_0 : i32, i32
  }
  func.func @transform_2(%arg0: i32) -> (i32, i32) {
    %c0_i32 = arith.constant 0 : i32
    %c0_i32_0 = arith.constant 0 : i32
    %c0_i32_1 = arith.constant 0 : i32
    return %c0_i32, %c0_i32_0 : i32, i32
  }
  func.func @transform_3(%arg0: i32) -> (i32, i32) {
    %c0_i32 = arith.constant 0 : i32
    %c0_i32_0 = arith.constant 0 : i32
    return %arg0, %c0_i32 : i32, i32
  }
  func.func @transform_4(%arg0: i32) -> (i32, i32) {
    %c0_i32 = arith.constant 0 : i32
    %c0_i32_0 = arith.constant 0 : i32
    return %arg0, %c0_i32 : i32, i32
  }
}

</mosaic_0001>

<bundles_post_ra>
// kernel: sekd_forward.13
= control target key start
LH: loop header
LB: loop body
LE: loop exit
PB: predicated region body
PF: predicated region fallthrough
CT: control target
= control target key end

     0   :  { %8 = vsyncpa [#allocation3], 0  ;;  %s1038_s12 = smov 0   ;;  %s1244_s0 = inlined_call_operand.vmem [shape: bf16[512,25], index: 0, kind: input, shape index: {}]   ;;  %s1245_s1 = inlined_call_operand.vmem [shape: bf16[25,32], index: 1, kind: input, shape index: {}]   ;;  %s1246_s2 = inlined_call_operand.hbm [shape: f32[1,32], index: 2, kind: input, shape index: {}]   ;;  %s1247_s3 = inlined_call_operand.vmem [shape: bf16[512,32], index: 3, kind: output, shape index: {}]  }
   0x1 LB: > { %s768_s13 = sadd.s32 4294967295, %s1014_s12   ;;  %p770_p0 = scmp.ge.s32.totalorder %s1014_s12, 1  ;;  %s1014_s12 = sphi %s1038_s12, %s14_s12  }
   0x2   : > { %p113_p1 = scmp.lt.s32.totalorder %s1014_s12, 3  ;;  %p1052_p3 = scmp.eq.s32.totalorder %s768_s13, 0 }
   0x3   : > { %s1016_s16 = smov [#allocation2]   ;;  %s976_s21 = scalar_lea.hbm %s1246_s2, 16 }
   0x4   : > { %p1046_p2 = pnand %p770_p0, %p113_p1  ;;  %s129_s17 = sshll.u32 %s1016_s16, 4  ;;  %s130_s17 = int_to_ptr.vmem [resolvable:$true] %s129_s17 }
   0x5   : > { %s1252_s15 = scalar_select %p1052_p3, 1, 0 }
   0x6   : > { %s1251_s14 = scalar_select %p1046_p2, 1, 0 }
   0x7   : > { %p942_p4 = pneg %p1046_p2  ;;  %p977_p6 = scmp.ne.s32.totalorder %s1246_s2, %s976_s21 }
   0x8   : > { %p983_p10 = scmp.lt.u32.totalorder %s976_s21, %s1246_s2 }
   0x9   : > { %p1060_p5 = pnand %p1052_p3, %p942_p4 }
   0xb   : > { %p978_p7 = pneg %p1060_p5 }
   0xd   : > { %p979_p8 = pnand %p978_p7, %p977_p6 }
   0xf   : > { %p980_p9 = pneg %p979_p8 }
  0x11   : > { %p985_p11 = pnand %p983_p10, %p980_p9 }
  0x13   : > { %988 = shalt.err (!%p985_p11)
}
  0x14   : > { %s989_s26 = scalar_lea.vmem %s130_s17, 16  ;;  %s996_s27 = scalar_lea.vmem %s130_s17, 32 }
  0x15   : > { %p990_p12 = scmp.ne.s32.totalorder %s130_s17, %s989_s26  ;;  %p997_p1 = scmp.lt.s32.totalorder %s130_s17, %s130_s17 }
  0x16   : > { %p998_p4 = scmp.lt.s32.totalorder %s996_s27, %s989_s26 }
  0x17   : > { %p992_p13 = pnand %p990_p12, %p978_p7 }
  0x18   : > { %p999_p3 = por %p998_p4, %p997_p1 }
  0x19   : > { %p993_p0 = pneg %p992_p13 }
  0x1b   : > { %p1000_p2 = pnand %p999_p3, %p993_p0 }
  0x1d   : > { %1003 = shalt.err (!%p1000_p2)
}
  0x1e   : > { %945 = dma.hbm_to_vmem [thread:$0]  (!%p1060_p5), %s1246_s2, 16, %s130_s17, [#allocation3]  }
  0x1f   : > { %p1254_p6 = scmp.ne.s32.totalorder %s1251_s14, 0 }
  0x20   : > { %p1255_p8 = scmp.ne.s32.totalorder (!%p1254_p6), %s1252_s15, 0 }
  0x21   : > { %151 = sbr.rel (%p1254_p6) target bundleno = 296 (0x128), region = 32 }
  0x28   : > { %1009 = dma.done.wait (%p1255_p8), [#allocation3], 16  }
  0x29   : > { %1011 = vsyncadd (%p1255_p8), [#allocation3], 4294967280  ;;  %s775_s30 = sshll.u32 %s768_s13, 5  ;;  %vm371_vm0 = vcmask 1043456   ;;  %vm372_vm1 = vcmask 1044480   ;;  %v1017_v0 = vmov 65535  }
  0x2a   : > { %p176_p2 = scmp.lt.s32.totalorder %s775_s30, 63  ;;  %v373_v1 = vsel %vm371_vm0, 4294967295, %v1017_v0  ;;  %vm322_vm2 = vcmask 203776   ;;  %v958_v2 = vld [vmem:[%s1245_s1] sm:$0xff]   ;;  %v959_v4 = vld [vmem:[%s1245_s1 + $0x8] sm:$0x1f]  }
  0x2b   : > { %v374_v3 = vsel %vm372_vm1, %v373_v1, 0  ;;  %898 = vmatprep.subr.bf16.mxu0 %v958_v2  ;;  %934 = vmatprep.subr.bf16.mxu1 %v958_v2  ;;  %v1136_v22 = vld [vmem:[#allocation2] ss:$0 sm:$0xff]  ;;  %vm667_vm3 = vcmask 257024  }
  0x2c   : > { %s1257_s30 = smov (!%p176_p2, %s775_s30), 63  ;;  %899 = vmatpush3.bf16.msra.mxu0 %v958_v2  ;;  %936 = vmatpush3.bf16.msra.mxu1 %v958_v2  ;;  %v376_v6 = vand.u32 %v959_v4, %v374_v3 }
  0x2d   : > { %s776_s4 = sshll.u32 %s1257_s30, 2 }
  0x2e   : > { %s1096_s7 = scalar_lea.vmem %s1244_s0, %s776_s4  ;;  %900 = vmatprep.subr.bf16.mxu0 %v376_v6  ;;  %935 = vmatprep.subr.bf16.mxu1 %v376_v6  ;;  %s1145_s15 = scalar_lea.vmem %s1247_s3, %s776_s4 }
  0x2f   : > { %v960_v5 = vld [vmem:[%s1096_s7] sm:$0xff]   ;;  %v962_v8 = vld [vmem:[%s1096_s7 + $0x8] sm:$0xff]   ;;  %v964_v10 = vld [vmem:[%s1096_s7 + $0x10] sm:$0xff]  }
  0x30   : > { %v961_v7 = vld [vmem:[%s1096_s7 + $0x40] sm:$0xff]   ;;  %902 = vmatprep.mubr.msk.bf16.mxu0 %vm322_vm2, %v960_v5  ;;  %v963_v9 = vld [vmem:[%s1096_s7 + $0x48] sm:$0xff]   ;;  %901 = vmatpush3.bf16.msra.mxu0 %v376_v6  ;;  %v965_v11 = vld [vmem:[%s1096_s7 + $0x50] sm:$0xff]  }
  0x31   : > { %918 = vmatprep.mubr.msk.bf16.mxu1 %vm322_vm2, %v961_v7  ;;  %937 = vmatpush3.bf16.msra.mxu1 %v376_v6  ;;  %v966_v12 = vld [vmem:[%s1096_s7 + $0x18] sm:$0xff]   ;;  %v968_v14 = vld [vmem:[%s1096_s7 + $0x20] sm:$0xff]   ;;  %v970_v16 = vld [vmem:[%s1096_s7 + $0x28] sm:$0xff]  }
  0x32   : > { %v967_v13 = vld [vmem:[%s1096_s7 + $0x58] sm:$0xff]   ;;  %v969_v15 = vld [vmem:[%s1096_s7 + $0x60] sm:$0xff]   ;;  %v971_v17 = vld [vmem:[%s1096_s7 + $0x68] sm:$0xff]  }
  0x33   : > { %903 = vmatmul.mubr.msk.bf16.vlgmr.msra.gmra.mrb[0].mxu0 %vm322_vm2, %v962_v8  ;;  %v972_v18 = vld [vmem:[%s1096_s7 + $0x30] sm:$0xff]   ;;  %v974_v20 = vld [vmem:[%s1096_s7 + $0x38] sm:$0xff]  }
  0x34   : > { %919 = vmatmul.mubr.msk.bf16.vlgmr.msra.gmra.mrb[0].mxu1 %vm322_vm2, %v963_v9  ;;  %906 = vmatprep.mubr.msk.bf16.mxu0 %vm322_vm2, %v964_v10  ;;  %v973_v19 = vld [vmem:[%s1096_s7 + $0x70] sm:$0xff]   ;;  %v975_v21 = vld [vmem:[%s1096_s7 + $0x78] sm:$0xff]  }
  0x35   : > { %922 = vmatprep.mubr.msk.bf16.mxu1 %vm322_vm2, %v965_v11 }
  0x3b   : > { %907 = vmatmul.mubr.msk.bf16.gmra.mrb[4].mxu0 %vm322_vm2, %v966_v12 }
  0x3c   : > { %923 = vmatmul.mubr.msk.bf16.gmra.mrb[4].mxu1 %vm322_vm2, %v967_v13  ;;  %910 = vmatprep.mubr.msk.bf16.mxu0 %vm322_vm2, %v968_v14 }
  0x3d   : > { %926 = vmatprep.mubr.msk.bf16.mxu1 %vm322_vm2, %v969_v15 }
  0x43   : > { %911 = vmatmul.mubr.msk.bf16.gmra.mrb[8].mxu0 %vm322_vm2, %v970_v16 }
  0x44   : > { %927 = vmatmul.mubr.msk.bf16.gmra.mrb[8].mxu1 %vm322_vm2, %v971_v17  ;;  %914 = vmatprep.mubr.msk.bf16.mxu0 %vm322_vm2, %v972_v18 }
  0x45   : > { %930 = vmatprep.mubr.msk.bf16.mxu1 %vm322_vm2, %v973_v19 }
  0x4b   : > { %915 = vmatmul.mubr.msk.bf16.gmra.mrb[12].mxu0 %vm322_vm2, %v974_v20 }
  0x4c   : > { %931 = vmatmul.mubr.msk.bf16.gmra.mrb[12].mxu1 %vm322_vm2, %v975_v21 }
 0x106   : > { %v904_v23 = vpop.f32.mrb[0].mxu0 }
 0x107   : > { %v920_v24 = vpop.f32.mrb[0].mxu1  ;;  %v421_v25 = vadd.f32 %v904_v23, %v1136_v22  ;;  %v412_v27 = vpop.f32.mrb[1].mxu0 }
 0x108   : > { %v485_v26 = vadd.f32 %v920_v24, %v1136_v22  ;;  %v476_v28 = vpop.f32.mrb[1].mxu1  ;;  %v413_v29 = vadd.f32 %v1136_v22, %v412_v27  ;;  %v905_v31 = vpop.f32.mrb[2].mxu0 }
 0x109   : > { %v477_v30 = vadd.f32 %v1136_v22, %v476_v28  ;;  %v921_v32 = vpop.f32.mrb[2].mxu1  ;;  %v850_v33 = vpack.c.bf16 %v421_v25, %v421_v25  ;;  %v424_v35 = vadd.f32 %v905_v31, %v1136_v22  ;;  %v415_v37 = vpop.f32.mrb[3].mxu0 }
 0x10a   : > { %v866_v34 = vpack.c.bf16 %v485_v26, %v485_v26  ;;  %v488_v36 = vadd.f32 %v921_v32, %v1136_v22  ;;  %v479_v38 = vpop.f32.mrb[3].mxu1  ;;  %v848_v39 = vpack.c.bf16 %v413_v29, %v413_v29  ;;  %v416_v41 = vadd.f32 %v1136_v22, %v415_v37 }
 0x10b   : > { %v864_v40 = vpack.c.bf16 %v477_v30, %v477_v30  ;;  %v480_v42 = vadd.f32 %v1136_v22, %v479_v38  ;;  %670 = vst.msk [vmem:[%s1145_s15 + $0x8] sm:$0xf] %vm667_vm3, %v850_v33  ;;  %v851_v43 = vpack.c.bf16 %v424_v35, %v424_v35 }
 0x10c   : > { %686 = vst.msk [vmem:[%s1145_s15 + $0x48] sm:$0xf] %vm667_vm3, %v866_v34  ;;  %v867_v44 = vpack.c.bf16 %v488_v36, %v488_v36  ;;  %668 = vst.msk [vmem:[%s1145_s15] sm:$0xf] %vm667_vm3, %v848_v39  ;;  %v849_v45 = vpack.c.bf16 %v416_v41, %v416_v41 }
 0x10d   : > { %684 = vst.msk [vmem:[%s1145_s15 + $0x40] sm:$0xf] %vm667_vm3, %v864_v40  ;;  %v865_v46 = vpack.c.bf16 %v480_v42, %v480_v42  ;;  %671 = vst.msk [vmem:[%s1145_s15 + $0xc] sm:$0xf] %vm667_vm3, %v851_v43 }
 0x10e   : > { %687 = vst.msk [vmem:[%s1145_s15 + $0x4c] sm:$0xf] %vm667_vm3, %v867_v44  ;;  %669 = vst.msk [vmem:[%s1145_s15 + $0x4] sm:$0xf] %vm667_vm3, %v849_v45  ;;  %v908_v47 = vpop.f32.mrb[4].mxu0 }
 0x10f   : > { %685 = vst.msk [vmem:[%s1145_s15 + $0x44] sm:$0xf] %vm667_vm3, %v865_v46  ;;  %v924_v48 = vpop.f32.mrb[4].mxu1  ;;  %v437_v49 = vadd.f32 %v908_v47, %v1136_v22  ;;  %v428_v51 = vpop.f32.mrb[5].mxu0 }
 0x110   : > { %v501_v50 = vadd.f32 %v924_v48, %v1136_v22  ;;  %v492_v52 = vpop.f32.mrb[5].mxu1  ;;  %v429_v53 = vadd.f32 %v1136_v22, %v428_v51  ;;  %v909_v55 = vpop.f32.mrb[6].mxu0 }
 0x111   : > { %v493_v54 = vadd.f32 %v1136_v22, %v492_v52  ;;  %v925_v56 = vpop.f32.mrb[6].mxu1  ;;  %v854_v57 = vpack.c.bf16 %v437_v49, %v437_v49  ;;  %v440_v59 = vadd.f32 %v909_v55, %v1136_v22  ;;  %v431_v61 = vpop.f32.mrb[7].mxu0 }
 0x112   : > { %v870_v58 = vpack.c.bf16 %v501_v50, %v501_v50  ;;  %v504_v60 = vadd.f32 %v925_v56, %v1136_v22  ;;  %v495_v62 = vpop.f32.mrb[7].mxu1  ;;  %v852_v63 = vpack.c.bf16 %v429_v53, %v429_v53  ;;  %v432_v1 = vadd.f32 %v1136_v22, %v431_v61 }
 0x113   : > { %v868_v0 = vpack.c.bf16 %v493_v54, %v493_v54  ;;  %v496_v2 = vadd.f32 %v1136_v22, %v495_v62  ;;  %674 = vst.msk [vmem:[%s1145_s15 + $0x18] sm:$0xf] %vm667_vm3, %v854_v57  ;;  %v855_v3 = vpack.c.bf16 %v440_v59, %v440_v59 }
 0x114   : > { %690 = vst.msk [vmem:[%s1145_s15 + $0x58] sm:$0xf] %vm667_vm3, %v870_v58  ;;  %v871_v4 = vpack.c.bf16 %v504_v60, %v504_v60  ;;  %672 = vst.msk [vmem:[%s1145_s15 + $0x10] sm:$0xf] %vm667_vm3, %v852_v63  ;;  %v853_v5 = vpack.c.bf16 %v432_v1, %v432_v1 }
 0x115   : > { %688 = vst.msk [vmem:[%s1145_s15 + $0x50] sm:$0xf] %vm667_vm3, %v868_v0  ;;  %v869_v6 = vpack.c.bf16 %v496_v2, %v496_v2  ;;  %675 = vst.msk [vmem:[%s1145_s15 + $0x1c] sm:$0xf] %vm667_vm3, %v855_v3 }
 0x116   : > { %691 = vst.msk [vmem:[%s1145_s15 + $0x5c] sm:$0xf] %vm667_vm3, %v871_v4  ;;  %673 = vst.msk [vmem:[%s1145_s15 + $0x14] sm:$0xf] %vm667_vm3, %v853_v5  ;;  %v912_v7 = vpop.f32.mrb[8].mxu0 }
 0x117   : > { %689 = vst.msk [vmem:[%s1145_s15 + $0x54] sm:$0xf] %vm667_vm3, %v869_v6  ;;  %v928_v8 = vpop.f32.mrb[8].mxu1  ;;  %v453_v9 = vadd.f32 %v912_v7, %v1136_v22  ;;  %v444_v11 = vpop.f32.mrb[9].mxu0 }
 0x118   : > { %v517_v10 = vadd.f32 %v928_v8, %v1136_v22  ;;  %v508_v12 = vpop.f32.mrb[9].mxu1  ;;  %v445_v13 = vadd.f32 %v1136_v22, %v444_v11  ;;  %v913_v15 = vpop.f32.mrb[10].mxu0 }
 0x119   : > { %v509_v14 = vadd.f32 %v1136_v22, %v508_v12  ;;  %v929_v16 = vpop.f32.mrb[10].mxu1  ;;  %v858_v17 = vpack.c.bf16 %v453_v9, %v453_v9  ;;  %v456_v19 = vadd.f32 %v913_v15, %v1136_v22  ;;  %v447_v21 = vpop.f32.mrb[11].mxu0 }
 0x11a   : > { %v874_v18 = vpack.c.bf16 %v517_v10, %v517_v10  ;;  %v520_v20 = vadd.f32 %v929_v16, %v1136_v22  ;;  %v511_v23 = vpop.f32.mrb[11].mxu1  ;;  %v856_v24 = vpack.c.bf16 %v445_v13, %v445_v13  ;;  %v448_v26 = vadd.f32 %v1136_v22, %v447_v21 }
 0x11b   : > { %v872_v25 = vpack.c.bf16 %v509_v14, %v509_v14  ;;  %v512_v27 = vadd.f32 %v1136_v22, %v511_v23  ;;  %678 = vst.msk [vmem:[%s1145_s15 + $0x28] sm:$0xf] %vm667_vm3, %v858_v17  ;;  %v859_v28 = vpack.c.bf16 %v456_v19, %v456_v19 }
 0x11c   : > { %694 = vst.msk [vmem:[%s1145_s15 + $0x68] sm:$0xf] %vm667_vm3, %v874_v18  ;;  %v875_v29 = vpack.c.bf16 %v520_v20, %v520_v20  ;;  %676 = vst.msk [vmem:[%s1145_s15 + $0x20] sm:$0xf] %vm667_vm3, %v856_v24  ;;  %v857_v30 = vpack.c.bf16 %v448_v26, %v448_v26 }
 0x11d   : > { %692 = vst.msk [vmem:[%s1145_s15 + $0x60] sm:$0xf] %vm667_vm3, %v872_v25  ;;  %v873_v31 = vpack.c.bf16 %v512_v27, %v512_v27  ;;  %679 = vst.msk [vmem:[%s1145_s15 + $0x2c] sm:$0xf] %vm667_vm3, %v859_v28 }
 0x11e   : > { %695 = vst.msk [vmem:[%s1145_s15 + $0x6c] sm:$0xf] %vm667_vm3, %v875_v29  ;;  %677 = vst.msk [vmem:[%s1145_s15 + $0x24] sm:$0xf] %vm667_vm3, %v857_v30  ;;  %v916_v32 = vpop.f32.mrb[12].mxu0 }
 0x11f   : > { %693 = vst.msk [vmem:[%s1145_s15 + $0x64] sm:$0xf] %vm667_vm3, %v873_v31  ;;  %v932_v33 = vpop.f32.mrb[12].mxu1  ;;  %v469_v34 = vadd.f32 %v916_v32, %v1136_v22  ;;  %v460_v36 = vpop.f32.mrb[13].mxu0 }
 0x120   : > { %v533_v35 = vadd.f32 %v932_v33, %v1136_v22  ;;  %v524_v37 = vpop.f32.mrb[13].mxu1  ;;  %v461_v38 = vadd.f32 %v1136_v22, %v460_v36  ;;  %v917_v40 = vpop.f32.mrb[14].mxu0 }
 0x121   : > { %v525_v39 = vadd.f32 %v1136_v22, %v524_v37  ;;  %v933_v41 = vpop.f32.mrb[14].mxu1  ;;  %v862_v42 = vpack.c.bf16 %v469_v34, %v469_v34  ;;  %v472_v44 = vadd.f32 %v917_v40, %v1136_v22  ;;  %v463_v46 = vpop.f32.mrb[15].mxu0 }
 0x122   : > { %v878_v43 = vpack.c.bf16 %v533_v35, %v533_v35  ;;  %v536_v45 = vadd.f32 %v933_v41, %v1136_v22  ;;  %v527_v47 = vpop.f32.mrb[15].mxu1  ;;  %v860_v48 = vpack.c.bf16 %v461_v38, %v461_v38  ;;  %v464_v50 = vadd.f32 %v1136_v22, %v463_v46 }
 0x123   : > { %v876_v49 = vpack.c.bf16 %v525_v39, %v525_v39  ;;  %v528_v51 = vadd.f32 %v1136_v22, %v527_v47  ;;  %682 = vst.msk [vmem:[%s1145_s15 + $0x38] sm:$0xf] %vm667_vm3, %v862_v42  ;;  %v863_v52 = vpack.c.bf16 %v472_v44, %v472_v44 }
 0x124   : > { %698 = vst.msk [vmem:[%s1145_s15 + $0x78] sm:$0xf] %vm667_vm3, %v878_v43  ;;  %v879_v53 = vpack.c.bf16 %v536_v45, %v536_v45  ;;  %680 = vst.msk [vmem:[%s1145_s15 + $0x30] sm:$0xf] %vm667_vm3, %v860_v48  ;;  %v861_v54 = vpack.c.bf16 %v464_v50, %v464_v50 }
 0x125   : > { %696 = vst.msk [vmem:[%s1145_s15 + $0x70] sm:$0xf] %vm667_vm3, %v876_v49  ;;  %v877_v55 = vpack.c.bf16 %v528_v51, %v528_v51  ;;  %683 = vst.msk [vmem:[%s1145_s15 + $0x3c] sm:$0xf] %vm667_vm3, %v863_v52 }
 0x126   : > { %699 = vst.msk [vmem:[%s1145_s15 + $0x7c] sm:$0xf] %vm667_vm3, %v879_v53  ;;  %681 = vst.msk [vmem:[%s1145_s15 + $0x34] sm:$0xf] %vm667_vm3, %v861_v54 }
 0x127   : > { %697 = vst.msk [vmem:[%s1145_s15 + $0x74] sm:$0xf] %vm667_vm3, %v877_v55 }
 0x128 PF: > { %s14_s12 = sadd.s32 1, %s1014_s12  }
 0x129   : > { %p11_p3 = scmp.ge.s32.totalorder %s14_s12, 4  }
 0x12b   :  { %13 = sbr.rel (!%p11_p3) target bundleno = 1 (0x1), region = 67 }
 0x132   :  { %722 = vsyncpa [#allocation3], 1 }
 0x133   :  { %724 = vsyncpa [#allocation3 + $0x1], 1 }

// kernel: sekd_forward.14
= control target key start
LH: loop header
LB: loop body
LE: loop exit
PB: predicated region body
PF: predicated region fallthrough
CT: control target
= control target key end

     0   :  { %s1923_s15 = smov 0   ;;  %s2234_s0 = inlined_call_operand.vmem [shape: bf16[512,288], index: 0, kind: input, shape index: {}]   ;;  %s2235_s1 = inlined_call_operand.vmem [shape: bf16[288,32], index: 1, kind: input, shape index: {}]   ;;  %s2236_s2 = inlined_call_operand.vmem [shape: f32[1,32], index: 2, kind: input, shape index: {}]   ;;  %s2237_s3 = inlined_call_operand.vmem [shape: bf16[512,32], index: 3, kind: input, shape index: {}]   ;;  %s2238_s4 = inlined_call_operand.vmem [shape: bf16[512,32], index: 4, kind: output, shape index: {}]  }
   0x1 LB: > { %s1378_s16 = sadd.s32 4294967295, %s1896_s15   ;;  %p1382_p0 = scmp.ge.s32.totalorder %s1896_s15, 1  ;;  %s1896_s15 = sphi %s1923_s15, %s14_s15  }
   0x2   : > { %p175_p1 = scmp.lt.s32.totalorder %s1896_s15, 3 }
   0x4   : > { %p176_p2 = pnand %p1382_p0, %p175_p1 }
   0x5   : > { %v1808_v0 = vld [vmem:[%s2235_s1 + $0x40] sm:$0xff] (!%p176_p2)   ;;  %s1383_s19 = sshll.u32 (!%p176_p2), %s1378_s16, 5  ;;  %v1810_v2 = vld [vmem:[%s2235_s1 + $0x48] sm:$0xff] (!%p176_p2)   ;;  %v1812_v4 = vld [vmem:[%s2235_s1 + $0x50] sm:$0xff] (!%p176_p2)   ;;  %vm682_vm0 = vcmask (!%p176_p2), 261120   ;;  %vm1277_vm1 = vcmask (!%p176_p2), 257024  }
   0x6   : > { %179 = sbr.rel (%p176_p2) target bundleno = 352 (0x160), region = 36  ;;  %v1809_v1 = vld [vmem:[%s2235_s1] sm:$0xff] (!%p176_p2)   ;;  %1617 = vmatprep.subr.bf16.mxu0 (!%p176_p2), %v1808_v0  ;;  %1783 = vmatprep.subr.bf16.mxu1 (!%p176_p2), %v1808_v0  ;;  %p208_p3 = scmp.lt.s32.totalorder (!%p176_p2), %s1383_s19, 63  ;;  %v1811_v3 = vld [vmem:[%s2235_s1 + $0x8] sm:$0xff] (!%p176_p2)   ;;  %v1813_v5 = vld [vmem:[%s2235_s1 + $0x10] sm:$0xff] (!%p176_p2)  }
   0x7   : > { %1618 = vmatpush3.bf16.msra.mxu0 (!%p176_p2), %v1809_v1  ;;  %1791 = vmatpush3.bf16.msra.mxu1 (!%p176_p2), %v1809_v1  ;;  %v1814_v6 = vld [vmem:[%s2235_s1 + $0x58] sm:$0xff] (!%p176_p2)   ;;  %v1816_v8 = vld [vmem:[%s2235_s1 + $0x60] sm:$0xff] (!%p176_p2)   ;;  %v1818_v10 = vld [vmem:[%s2235_s1 + $0x68] sm:$0xff] (!%p176_p2)  }
   0x8   : > { %1619 = vmatprep.subr.bf16.mxu0 (!%p176_p2), %v1810_v2  ;;  %1784 = vmatprep.subr.bf16.mxu1 (!%p176_p2), %v1810_v2  ;;  %v1815_v7 = vld [vmem:[%s2235_s1 + $0x18] sm:$0xff] (!%p176_p2)   ;;  %v1817_v9 = vld [vmem:[%s2235_s1 + $0x20] sm:$0xff] (!%p176_p2)   ;;  %v1819_v13 = vld [vmem:[%s2235_s1 + $0x28] sm:$0xff] (!%p176_p2)  }
   0x9   : > { %v1820_v14 = vld [vmem:[%s2235_s1 + $0x70] sm:$0xff] (!%p176_p2)   ;;  %v1822_v16 = vld [vmem:[%s2235_s1 + $0x78] sm:$0xff] (!%p176_p2)   ;;  %v1830_v18 = vld [vmem:[%s2235_s1 + $0x80] sm:$0xff] (!%p176_p2)  }
   0xa   : > { %v1821_v15 = vld [vmem:[%s2235_s1 + $0x30] sm:$0xff] (!%p176_p2)   ;;  %v1823_v17 = vld [vmem:[%s2235_s1 + $0x38] sm:$0xff] (!%p176_p2)   ;;  %v1843_v23 = vld [vmem:[%s2235_s1 + $0x88] sm:$0xff] (!%p176_p2)  }
   0xb   : > { %1620 = vmatpush3.bf16.msra.mxu0 (!%p176_p2), %v1811_v3  ;;  %1792 = vmatpush3.bf16.msra.mxu1 (!%p176_p2), %v1811_v3 }
   0xc   : > { %1621 = vmatprep.subr.bf16.mxu0 (!%p176_p2), %v1812_v4  ;;  %1785 = vmatprep.subr.bf16.mxu1 (!%p176_p2), %v1812_v4 }
   0xd   : > { %s2240_s19 = smov (!%p208_p3, %s1383_s19), 63 }
   0xe   : > { %s1799_s6 = smul.u32 12, %s2240_s19  ;;  %s1386_s8 = sshll.u32 %s2240_s19, 2 }
   0xf   : > { %1622 = vmatpush3.bf16.msra.mxu0 %v1813_v5  ;;  %1793 = vmatpush3.bf16.msra.mxu1 %v1813_v5  ;;  %s2079_s11 = scalar_lea.vmem %s2237_s3, %s1386_s8  ;;  %s2103_s17 = scalar_lea.vmem %s2238_s4, %s1386_s8 }
  0x10   : > { %1623 = vmatprep.subr.bf16.mxu0 %v1814_v6  ;;  %1786 = vmatprep.subr.bf16.mxu1 %v1814_v6  ;;  %s1964_s13 = scalar_lea.vmem %s2234_s0, %s1799_s6 }
  0x11   : > { %v1826_v11 = vld [vmem:[%s1964_s13 + $0x4] ss:$12 sps:$4 sm:$0xff]   ;;  %v1824_v19 = vld [vmem:[%s1964_s13] ss:$12 sps:$4 sm:$0xff]   ;;  %v1831_v21 = vld [vmem:[%s1964_s13 + $0x1c] ss:$12 sps:$4 sm:$0xff]  }
  0x12   : > { %v1829_v12 = vld [vmem:[%s1964_s13 + $0x124] ss:$12 sps:$4 sm:$0xff]   ;;  %763 = vmatprep.mubr.bf16.mxu0 %v1826_v11  ;;  %v1827_v20 = vld [vmem:[%s1964_s13 + $0x120] ss:$12 sps:$4 sm:$0xff]   ;;  %v1833_v22 = vld [vmem:[%s1964_s13 + $0x13c] ss:$12 sps:$4 sm:$0xff]  }
  0x13   : > { %1624 = vmatpush3.bf16.msra.mxu0 %v1815_v7  ;;  %1794 = vmatpush3.bf16.msra.mxu1 %v1815_v7  ;;  %v1835_v24 = vld [vmem:[%s1964_s13 + $0x18] ss:$12 sps:$4 sm:$0xff]   ;;  %v1837_v26 = vld [vmem:[%s1964_s13 + $0x34] ss:$12 sps:$4 sm:$0xff]   ;;  %v1841_v28 = vld [vmem:[%s1964_s13 + $0x30] ss:$12 sps:$4 sm:$0xff]  }
  0x14   : > { %1625 = vmatprep.subr.bf16.mxu0 %v1816_v8  ;;  %1787 = vmatprep.subr.bf16.mxu1 %v1816_v8  ;;  %v1836_v25 = vld [vmem:[%s1964_s13 + $0x138] ss:$12 sps:$4 sm:$0xff]   ;;  %v1839_v27 = vld [vmem:[%s1964_s13 + $0x154] ss:$12 sps:$4 sm:$0xff]   ;;  %v1842_v29 = vld [vmem:[%s1964_s13 + $0x150] ss:$12 sps:$4 sm:$0xff]  }
  0x15   : > { %859 = vmatprep.mubr.bf16.mxu1 %v1829_v12  ;;  %v1844_v30 = vld [vmem:[%s1964_s13 + $0x4c] ss:$12 sps:$4 sm:$0xff]   ;;  %v1848_v32 = vld [vmem:[%s1964_s13 + $0x48] ss:$12 sps:$4 sm:$0xff]   ;;  %v1850_v34 = vld [vmem:[%s1964_s13 + $0x64] ss:$12 sps:$4 sm:$0xff]  }
  0x16   : > { %v1846_v31 = vld [vmem:[%s1964_s13 + $0x16c] ss:$12 sps:$4 sm:$0xff]   ;;  %v1849_v33 = vld [vmem:[%s1964_s13 + $0x168] ss:$12 sps:$4 sm:$0xff]   ;;  %v1859_v41 = vld [vmem:[%s1964_s13 + $0x50] ss:$12 sps:$4 sm:$0xff]  }
  0x17   : > { %1626 = vmatpush3.bf16.msra.mxu0 %v1817_v9  ;;  %1795 = vmatpush3.bf16.msra.mxu1 %v1817_v9  ;;  %v1852_v35 = vld [vmem:[%s1964_s13 + $0x8] ss:$12 sps:$4 sm:$0xff]   ;;  %v1853_v36 = vld [vmem:[%s1964_s13 + $0x60] ss:$12 sps:$4 sm:$0xff]   ;;  %v1857_v39 = vld [vmem:[%s1964_s13 + $0x38] ss:$12 sps:$4 sm:$0xff]  }
  0x18   : > { %1627 = vmatprep.subr.bf16.mxu0 %v1818_v10  ;;  %1788 = vmatprep.subr.bf16.mxu1 %v1818_v10  ;;  %v1854_v37 = vld [vmem:[%s1964_s13 + $0x20] ss:$12 sps:$4 sm:$0xff]   ;;  %v1855_v38 = vld [vmem:[%s1964_s13 + $0x7c] ss:$12 sps:$4 sm:$0xff]   ;;  %v1858_v40 = vld [vmem:[%s1964_s13 + $0x78] ss:$12 sps:$4 sm:$0xff]  }
  0x19   : > { %v1860_v42 = vld [vmem:[%s1964_s13 + $0x94] ss:$12 sps:$4 sm:$0xff]   ;;  %v1863_v44 = vld [vmem:[%s1964_s13 + $0x90] ss:$12 sps:$4 sm:$0xff]   ;;  %v1865_v46 = vld [vmem:[%s1964_s13 + $0xac] ss:$12 sps:$4 sm:$0xff]  }
  0x1a   : > { %v1862_v43 = vld [vmem:[%s1964_s13 + $0x68] ss:$12 sps:$4 sm:$0xff]   ;;  %v1864_v45 = vld [vmem:[%s1964_s13 + $0x80] ss:$12 sps:$4 sm:$0xff]   ;;  %v1867_v47 = vld [vmem:[%s1964_s13 + $0x98] ss:$12 sps:$4 sm:$0xff]  }
  0x1b   : > { %1628 = vmatpush3.bf16.msra.mxu0 %v1819_v13  ;;  %1796 = vmatpush3.bf16.msra.mxu1 %v1819_v13  ;;  %v1868_v48 = vld [vmem:[%s1964_s13 + $0xa8] ss:$12 sps:$4 sm:$0xff]   ;;  %v1869_v49 = vld [vmem:[%s1964_s13 + $0xb0] ss:$12 sps:$4 sm:$0xff]   ;;  %v1873_v52 = vld [vmem:[%s1964_s13 + $0xc0] ss:$12 sps:$4 sm:$0xff]  }
  0x1c   : > { %1629 = vmatprep.subr.bf16.mxu0 %v1820_v14  ;;  %1789 = vmatprep.subr.bf16.mxu1 %v1820_v14  ;;  %v1870_v50 = vld [vmem:[%s1964_s13 + $0xc4] ss:$12 sps:$4 sm:$0xff]   ;;  %v1872_v51 = vld [vmem:[%s1964_s13 + $0xc8] ss:$12 sps:$4 sm:$0xff]   ;;  %v1874_v53 = vld [vmem:[%s1964_s13 + $0xe0] ss:$12 sps:$4 sm:$0xff]  }
  0x1d   : > { %v1875_v54 = vld [vmem:[%s1964_s13 + $0xdc] ss:$12 sps:$4 sm:$0xff]   ;;  %v1877_v55 = vld [vmem:[%s1964_s13 + $0xf8] ss:$12 sps:$4 sm:$0xff]   ;;  %v1880_v58 = vld [vmem:[%s1964_s13 + $0xf4] ss:$12 sps:$4 sm:$0xff]  }
  0x1e   : > { %v1878_v56 = vld [vmem:[%s1964_s13 + $0xd8] ss:$12 sps:$4 sm:$0xff]   ;;  %v1879_v57 = vld [vmem:[%s1964_s13 + $0x110] ss:$12 sps:$4 sm:$0xff]   ;;  %v1882_v59 = vld [vmem:[%s1964_s13 + $0x128] ss:$12 sps:$4 sm:$0xff]  }
  0x1f   : > { %1630 = vmatpush3.bf16.msra.mxu0 %v1821_v15  ;;  %1797 = vmatpush3.bf16.msra.mxu1 %v1821_v15  ;;  %v1883_v60 = vld [vmem:[%s1964_s13 + $0xf0] ss:$12 sps:$4 sm:$0xff]   ;;  %v1884_v61 = vld [vmem:[%s1964_s13 + $0x140] ss:$12 sps:$4 sm:$0xff]   ;;  %v1887_v63 = vld [vmem:[%s1964_s13 + $0x158] ss:$12 sps:$4 sm:$0xff]  }
  0x20   : > { %1631 = vmatprep.subr.bf16.mxu0 %v1822_v16  ;;  %1790 = vmatprep.subr.bf16.mxu1 %v1822_v16  ;;  %v1885_v62 = vld [vmem:[%s1964_s13 + $0x10c] ss:$12 sps:$4 sm:$0xff]   ;;  %v1888_v0 = vld [vmem:[%s1964_s13 + $0x108] ss:$12 sps:$4 sm:$0xff]   ;;  %v1889_v1 = vld [vmem:[%s1964_s13 + $0x170] ss:$12 sps:$4 sm:$0xff]  }
  0x23   : > { %1632 = vmatpush3.bf16.msra.mxu0 %v1823_v17  ;;  %1798 = vmatpush3.bf16.msra.mxu1 %v1823_v17 }
  0x24   : > { %1747 = vmatprep.subr.bf16.mxu1 %v1830_v18 }
  0x26   : > { %764 = vmatmul.mubr.bf16.vlgmr.msra.gmra.mrb[0].mxu0 %v1824_v19  ;;  %860 = vmatmul.mubr.bf16.vlgmr.msra.gmra.mrb[0].mxu1 %v1827_v20 }
  0x27   : > { %1748 = vmatpush3.bf16.msra.mxu1 %v1830_v18  ;;  %771 = vmatprep.mubr.bf16.mxu0 %v1831_v21 }
  0x28   : > { %867 = vmatprep.mubr.bf16.mxu1 %v1833_v22  ;;  %1749 = vmatprep.subr.bf16.mxu1 %v1843_v23 }
  0x2b   : > { %1750 = vmatpush3.bf16.msra.mxu1 %v1843_v23 }
  0x2e   : > { %772 = vmatmul.mubr.bf16.gmra.mrb[4].mxu0 %v1835_v24  ;;  %868 = vmatmul.mubr.bf16.gmra.mrb[4].mxu1 %v1836_v25 }
  0x2f   : > { %779 = vmatprep.mubr.bf16.mxu0 %v1837_v26  ;;  %875 = vmatprep.mubr.bf16.mxu1 %v1839_v27 }
  0x36   : > { %780 = vmatmul.mubr.bf16.gmra.mrb[8].mxu0 %v1841_v28  ;;  %876 = vmatmul.mubr.bf16.gmra.mrb[8].mxu1 %v1842_v29 }
  0x37   : > { %787 = vmatprep.mubr.bf16.mxu0 %v1844_v30  ;;  %883 = vmatprep.mubr.bf16.mxu1 %v1846_v31 }
  0x3e   : > { %788 = vmatmul.mubr.bf16.gmra.mrb[12].mxu0 %v1848_v32  ;;  %884 = vmatmul.mubr.bf16.gmra.mrb[12].mxu1 %v1849_v33 }
  0x3f   : > { %795 = vmatprep.mubr.bf16.mxu0 %v1850_v34  ;;  %1751 = vmatprep.mubr.msk.bf16.mxu1 %vm682_vm0, %v1852_v35 }
  0x46   : > { %796 = vmatmul.mubr.bf16.gmra.mrb[16].mxu0 %v1853_v36  ;;  %1752 = vmatmul.mubr.msk.bf16.vlgmr.msra.gmra.mrb[16].mxu1 %vm682_vm0, %v1854_v37 }
  0x47   : > { %803 = vmatprep.mubr.bf16.mxu0 %v1855_v38  ;;  %1755 = vmatprep.mubr.msk.bf16.mxu1 %vm682_vm0, %v1857_v39 }
  0x4e   : > { %804 = vmatmul.mubr.bf16.gmra.mrb[20].mxu0 %v1858_v40  ;;  %1756 = vmatmul.mubr.msk.bf16.gmra.mrb[20].mxu1 %vm682_vm0, %v1859_v41 }
  0x4f   : > { %811 = vmatprep.mubr.bf16.mxu0 %v1860_v42  ;;  %1759 = vmatprep.mubr.msk.bf16.mxu1 %vm682_vm0, %v1862_v43 }
  0x56   : > { %812 = vmatmul.mubr.bf16.gmra.mrb[24].mxu0 %v1863_v44  ;;  %1760 = vmatmul.mubr.msk.bf16.gmra.mrb[24].mxu1 %vm682_vm0, %v1864_v45 }
  0x57   : > { %819 = vmatprep.mubr.bf16.mxu0 %v1865_v46  ;;  %1763 = vmatprep.mubr.msk.bf16.mxu1 %vm682_vm0, %v1867_v47 }
  0x5e   : > { %820 = vmatmul.mubr.bf16.gmra.mrb[28].mxu0 %v1868_v48  ;;  %1764 = vmatmul.mubr.msk.bf16.gmra.mrb[28].mxu1 %vm682_vm0, %v1869_v49 }
  0x5f   : > { %827 = vmatprep.mubr.bf16.mxu0 %v1870_v50  ;;  %1767 = vmatprep.mubr.msk.bf16.mxu1 %vm682_vm0, %v1872_v51  ;;  %v1602_v50 = vld [vmem:[%s2079_s11 + $0x8] sm:$0xff]   ;;  %v2089_v51 = vld [vmem:[%s2236_s2] ss:$0 sm:$0xff] }
  0x66   : > { %828 = vmatmul.mubr.bf16.gmra.mrb[32].mxu0 %v1873_v52  ;;  %1768 = vmatmul.mubr.msk.bf16.gmra.mrb[32].mxu1 %vm682_vm0, %v1874_v53  ;;  %v1539_v52 = vld [vmem:[%s2079_s11] sm:$0xff]  }
  0x67   : > { %835 = vmatprep.mubr.bf16.mxu0 %v1875_v54  ;;  %1771 = vmatprep.mubr.msk.bf16.mxu1 %vm682_vm0, %v1877_v55  ;;  %v1544_v54 = vunpack.c.l.bf16 %v1602_v50 }
  0x6e   : > { %836 = vmatmul.mubr.bf16.gmra.mrb[36].mxu0 %v1878_v56  ;;  %1772 = vmatmul.mubr.msk.bf16.gmra.mrb[36].mxu1 %vm682_vm0, %v1879_v57 }
  0x6f   : > { %843 = vmatprep.mubr.bf16.mxu0 %v1880_v58  ;;  %1775 = vmatprep.mubr.msk.bf16.mxu1 %vm682_vm0, %v1882_v59  ;;  %v1540_v58 = vunpack.c.l.bf16 %v1539_v52 }
  0x76   : > { %844 = vmatmul.mubr.bf16.gmra.mrb[40].mxu0 %v1883_v60  ;;  %1776 = vmatmul.mubr.msk.bf16.gmra.mrb[40].mxu1 %vm682_vm0, %v1884_v61 }
  0x77   : > { %851 = vmatprep.mubr.bf16.mxu0 %v1885_v62  ;;  %1779 = vmatprep.mubr.msk.bf16.mxu1 %vm682_vm0, %v1887_v63  ;;  %v1545_v63 = vunpack.c.h.bf16 %v1602_v50 }
  0x7e   : > { %852 = vmatmul.mubr.bf16.gmra.mrb[44].mxu0 %v1888_v0  ;;  %1780 = vmatmul.mubr.msk.bf16.gmra.mrb[44].mxu1 %vm682_vm0, %v1889_v1 }
  0xf9   : > { %v1633_v2 = vpop.f32.mrb[0].mxu0  ;;  %v1705_v3 = vpop.f32.mrb[0].mxu1 }
  0xfa   : > { %v1634_v4 = vpop.f32.mrb[1].mxu0  ;;  %v1706_v5 = vpop.f32.mrb[1].mxu1 }
  0xfb   : > { %v1635_v6 = vadd.f32 %v1634_v4, %v1633_v2  ;;  %v1636_v7 = vpop.f32.mrb[2].mxu0  ;;  %v2057_v8 = vadd.f32 %v1706_v5, %v1705_v3  ;;  %v1708_v9 = vpop.f32.mrb[2].mxu1  ;;  %v1541_v5 = vunpack.c.h.bf16 %v1539_v52 }
  0xfc   : > { %v1637_v10 = vpop.f32.mrb[3].mxu0  ;;  %v1709_v11 = vpop.f32.mrb[3].mxu1 }
  0xfd   : > { %v1638_v12 = vadd.f32 %v1637_v10, %v1636_v7  ;;  %v2059_v13 = vadd.f32 %v1709_v11, %v1708_v9  ;;  %v766_v57 = vadd.f32 %v1635_v6, %v2089_v51 }
  0xff   : > { %v769_v4 = vadd.f32 %v1638_v12, %v2089_v51 }
 0x101   : > { %v1639_v14 = vpop.f32.mrb[4].mxu0  ;;  %v1711_v15 = vpop.f32.mrb[4].mxu1 }
 0x102   : > { %v1640_v16 = vpop.f32.mrb[5].mxu0  ;;  %v1712_v17 = vpop.f32.mrb[5].mxu1 }
 0x103   : > { %v1641_v18 = vadd.f32 %v1640_v16, %v1639_v14  ;;  %v1642_v19 = vpop.f32.mrb[6].mxu0  ;;  %v2061_v20 = vadd.f32 %v1712_v17, %v1711_v15  ;;  %v1714_v21 = vpop.f32.mrb[6].mxu1  ;;  %v1604_v16 = vld [vmem:[%s2079_s11 + $0x18] sm:$0xff]  }
 0x104   : > { %v1643_v22 = vpop.f32.mrb[7].mxu0  ;;  %v1715_v23 = vpop.f32.mrb[7].mxu1 }
 0x105   : > { %v1644_v24 = vadd.f32 %v1643_v22, %v1642_v19  ;;  %v2063_v25 = vadd.f32 %v1715_v23, %v1714_v21  ;;  %v774_v53 = vadd.f32 %v1641_v18, %v2089_v51  ;;  %v1603_v18 = vld [vmem:[%s2079_s11 + $0x10] sm:$0xff]  }
 0x107   : > { %v777_v62 = vadd.f32 %v1644_v24, %v2089_v51  ;;  %v1552_v24 = vunpack.c.l.bf16 %v1604_v16 }
 0x109   : > { %v1645_v26 = vpop.f32.mrb[8].mxu0  ;;  %v1717_v27 = vpop.f32.mrb[8].mxu1 }
 0x10a   : > { %v1646_v28 = vpop.f32.mrb[9].mxu0  ;;  %v1718_v29 = vpop.f32.mrb[9].mxu1 }
 0x10b   : > { %v2065_v30 = vadd.f32 %v1646_v28, %v1645_v26  ;;  %v1648_v31 = vpop.f32.mrb[10].mxu0  ;;  %v2067_v32 = vadd.f32 %v1718_v29, %v1717_v27  ;;  %v1720_v33 = vpop.f32.mrb[10].mxu1 }
 0x10c   : > { %v1649_v34 = vpop.f32.mrb[11].mxu0  ;;  %v1721_v35 = vpop.f32.mrb[11].mxu1 }
 0x10d   : > { %v2069_v36 = vadd.f32 %v1649_v34, %v1648_v31  ;;  %v2071_v37 = vadd.f32 %v1721_v35, %v1720_v33  ;;  %v782_v29 = vadd.f32 %v2065_v30, %v2089_v51  ;;  %v1548_v31 = vunpack.c.l.bf16 %v1603_v18 }
 0x10f   : > { %v785_v30 = vadd.f32 %v2069_v36, %v2089_v51 }
 0x111   : > { %v1651_v38 = vpop.f32.mrb[12].mxu0  ;;  %v1723_v39 = vpop.f32.mrb[12].mxu1 }
 0x112   : > { %v1652_v40 = vpop.f32.mrb[13].mxu0  ;;  %v1724_v41 = vpop.f32.mrb[13].mxu1 }
 0x113   : > { %v1653_v42 = vadd.f32 %v1652_v40, %v1651_v38  ;;  %v1654_v43 = vpop.f32.mrb[14].mxu0  ;;  %v2081_v44 = vadd.f32 %v1724_v41, %v1723_v39  ;;  %v1726_v45 = vpop.f32.mrb[14].mxu1  ;;  %v1553_v39 = vunpack.c.h.bf16 %v1604_v16 }
 0x114   : > { %v1655_v46 = vpop.f32.mrb[15].mxu0  ;;  %v1727_v47 = vpop.f32.mrb[15].mxu1 }
 0x115   : > { %v1656_v48 = vadd.f32 %v1655_v46, %v1654_v43  ;;  %v2083_v49 = vadd.f32 %v1727_v47, %v1726_v45  ;;  %v790_v23 = vadd.f32 %v1653_v42, %v2089_v51  ;;  %v1549_v45 = vunpack.c.h.bf16 %v1603_v18 }
 0x117   : > { %v793_v38 = vadd.f32 %v1656_v48, %v2089_v51 }
 0x119   : > { %v1657_v55 = vpop.f32.mrb[16].mxu0  ;;  %v1753_v56 = vpop.f32.mrb[16].mxu1 }
 0x11a   : > { %v935_v59 = vadd.f32 %v1753_v56, %v774_v53  ;;  %v1658_v60 = vpop.f32.mrb[17].mxu0  ;;  %v926_v61 = vpop.f32.mrb[17].mxu1 }
 0x11b   : > { %v2095_v0 = vadd.f32 %v1658_v60, %v1657_v55  ;;  %v927_v1 = vadd.f32 %v926_v61, %v766_v57  ;;  %v1660_v2 = vpop.f32.mrb[18].mxu0  ;;  %v1754_v3 = vpop.f32.mrb[18].mxu1  ;;  %v1606_v55 = vld [vmem:[%s2079_s11 + $0x28] sm:$0xff]  }
 0x11c   : > { %v1119_v7 = vadd.f32 %v1544_v54, %v935_v59  ;;  %v938_v6 = vadd.f32 %v1754_v3, %v777_v62  ;;  %v1661_v9 = vpop.f32.mrb[19].mxu0  ;;  %v929_v10 = vpop.f32.mrb[19].mxu1  ;;  %v1560_v62 = vunpack.c.l.bf16 %v1606_v55 }
 0x11d   : > { %v1117_v11 = vadd.f32 %v1540_v58, %v927_v1  ;;  %v2105_v14 = vadd.f32 %v1661_v9, %v1660_v2  ;;  %v930_v15 = vadd.f32 %v929_v10, %v769_v4  ;;  %v1605_v58 = vld [vmem:[%s2079_s11 + $0x20] sm:$0xff]   ;;  %v798_v3 = vadd.f32 %v2095_v0, %v2089_v51 }
 0x11e   : > { %v1508_v12 = vpack.c.bf16 %v1119_v7, %v1119_v7  ;;  %v1120_v17 = vadd.f32 %v1545_v63, %v938_v6  ;;  %v1556_v4 = vunpack.c.l.bf16 %v1605_v58  ;;  %v1561_v10 = vunpack.c.h.bf16 %v1606_v55 }
 0x11f   : > { %v1506_v19 = vpack.c.bf16 %v1117_v11, %v1117_v11  ;;  %v1118_v21 = vadd.f32 %v1541_v5, %v930_v15  ;;  %v801_v0 = vadd.f32 %v2105_v14, %v2089_v51 }
 0x120   : > { %1280 = vst.msk [vmem:[%s2103_s17 + $0x8] sm:$0xf] %vm1277_vm1, %v1508_v12  ;;  %v1509_v22 = vpack.c.bf16 %v1120_v17, %v1120_v17  ;;  %v1557_v17 = vunpack.c.h.bf16 %v1605_v58 }
 0x121   : > { %1278 = vst.msk [vmem:[%s2103_s17] sm:$0xf] %vm1277_vm1, %v1506_v19  ;;  %v1507_v26 = vpack.c.bf16 %v1118_v21, %v1118_v21  ;;  %v1663_v27 = vpop.f32.mrb[20].mxu0  ;;  %v1757_v28 = vpop.f32.mrb[20].mxu1 }
 0x122   : > { %1281 = vst.msk [vmem:[%s2103_s17 + $0xc] sm:$0xf] %vm1277_vm1, %v1509_v22  ;;  %v951_v33 = vadd.f32 %v1757_v28, %v790_v23  ;;  %v1664_v34 = vpop.f32.mrb[21].mxu0  ;;  %v942_v35 = vpop.f32.mrb[21].mxu1 }
 0x123   : > { %1279 = vst.msk [vmem:[%s2103_s17 + $0x4] sm:$0xf] %vm1277_vm1, %v1507_v26  ;;  %v1665_v40 = vadd.f32 %v1664_v34, %v1663_v27  ;;  %v943_v41 = vadd.f32 %v942_v35, %v782_v29  ;;  %v1666_v42 = vpop.f32.mrb[22].mxu0  ;;  %v1758_v43 = vpop.f32.mrb[22].mxu1  ;;  %v1607_v29 = vld [vmem:[%s2079_s11 + $0x30] sm:$0xff]  }
 0x124   : > { %v1123_v46 = vadd.f32 %v1552_v24, %v951_v33  ;;  %v954_v47 = vadd.f32 %v1758_v43, %v793_v38  ;;  %v1667_v50 = vpop.f32.mrb[23].mxu0  ;;  %v945_v52 = vpop.f32.mrb[23].mxu1 }
 0x125   : > { %v1121_v48 = vadd.f32 %v1548_v31, %v943_v41  ;;  %v1668_v53 = vadd.f32 %v1667_v50, %v1666_v42  ;;  %v946_v54 = vadd.f32 %v945_v52, %v785_v30  ;;  %v806_v61 = vadd.f32 %v1665_v40, %v2089_v51 }
 0x126   : > { %v1512_v56 = vpack.c.bf16 %v1123_v46, %v1123_v46  ;;  %v1124_v57 = vadd.f32 %v1553_v39, %v954_v47  ;;  %v1608_v39 = vld [vmem:[%s2079_s11 + $0x38] sm:$0xff]   ;;  %v1564_v41 = vunpack.c.l.bf16 %v1607_v29  ;;  %v1565_v52 = vunpack.c.h.bf16 %v1607_v29 }
 0x127   : > { %v1510_v59 = vpack.c.bf16 %v1121_v48, %v1121_v48  ;;  %v1122_v60 = vadd.f32 %v1549_v45, %v946_v54  ;;  %v809_v9 = vadd.f32 %v1668_v53, %v2089_v51  ;;  %v1568_v48 = vunpack.c.l.bf16 %v1608_v39 }
 0x128   : > { %1284 = vst.msk [vmem:[%s2103_s17 + $0x18] sm:$0xf] %vm1277_vm1, %v1512_v56  ;;  %v1513_v36 = vpack.c.bf16 %v1124_v57, %v1124_v57 }
 0x129   : > { %1282 = vst.msk [vmem:[%s2103_s17 + $0x10] sm:$0xf] %vm1277_vm1, %v1510_v59  ;;  %v1511_v63 = vpack.c.bf16 %v1122_v60, %v1122_v60  ;;  %v1669_v1 = vpop.f32.mrb[24].mxu0  ;;  %v1761_v2 = vpop.f32.mrb[24].mxu1  ;;  %v1569_v59 = vunpack.c.h.bf16 %v1608_v39 }
 0x12a   : > { %1285 = vst.msk [vmem:[%s2103_s17 + $0x1c] sm:$0xf] %vm1277_vm1, %v1513_v36  ;;  %v967_v5 = vadd.f32 %v1761_v2, %v806_v61  ;;  %v1670_v7 = vpop.f32.mrb[25].mxu0  ;;  %v958_v6 = vpop.f32.mrb[25].mxu1 }
 0x12b   : > { %1283 = vst.msk [vmem:[%s2103_s17 + $0x14] sm:$0xf] %vm1277_vm1, %v1511_v63  ;;  %v1671_v11 = vadd.f32 %v1670_v7, %v1669_v1  ;;  %v959_v15 = vadd.f32 %v958_v6, %v798_v3  ;;  %v1672_v16 = vpop.f32.mrb[26].mxu0  ;;  %v1762_v12 = vpop.f32.mrb[26].mxu1  ;;  %v1609_v6 = vld [vmem:[%s2079_s11 + $0x40] sm:$0xff]  }
 0x12c   : > { %v1127_v18 = vadd.f32 %v1560_v62, %v967_v5  ;;  %v970_v19 = vadd.f32 %v1762_v12, %v809_v9  ;;  %v1673_v21 = vpop.f32.mrb[27].mxu0  ;;  %v961_v22 = vpop.f32.mrb[27].mxu1 }
 0x12d   : > { %v1125_v23 = vadd.f32 %v1556_v4, %v959_v15  ;;  %v1674_v24 = vadd.f32 %v1673_v21, %v1672_v16  ;;  %v962_v26 = vadd.f32 %v961_v22, %v801_v0  ;;  %v814_v40 = vadd.f32 %v1671_v11, %v2089_v51 }
 0x12e   : > { %v1516_v27 = vpack.c.bf16 %v1127_v18, %v1127_v18  ;;  %v1128_v28 = vadd.f32 %v1561_v10, %v970_v19  ;;  %v1572_v19 = vunpack.c.l.bf16 %v1609_v6 }
 0x12f   : > { %v1514_v31 = vpack.c.bf16 %v1125_v23, %v1125_v23  ;;  %v1126_v33 = vadd.f32 %v1557_v17, %v962_v26  ;;  %v817_v50 = vadd.f32 %v1674_v24, %v2089_v51  ;;  %v1573_v24 = vunpack.c.h.bf16 %v1609_v6 }
 0x130   : > { %1288 = vst.msk [vmem:[%s2103_s17 + $0x28] sm:$0xf] %vm1277_vm1, %v1516_v27  ;;  %v1517_v14 = vpack.c.bf16 %v1128_v28, %v1128_v28 }
 0x131   : > { %1286 = vst.msk [vmem:[%s2103_s17 + $0x20] sm:$0xf] %vm1277_vm1, %v1514_v31  ;;  %v1515_v34 = vpack.c.bf16 %v1126_v33, %v1126_v33  ;;  %v1675_v35 = vpop.f32.mrb[28].mxu0  ;;  %v1765_v38 = vpop.f32.mrb[28].mxu1  ;;  %v1610_v33 = vld [vmem:[%s2079_s11 + $0x48] sm:$0xff]  }
 0x132   : > { %1289 = vst.msk [vmem:[%s2103_s17 + $0x2c] sm:$0xf] %vm1277_vm1, %v1517_v14  ;;  %v1676_v42 = vpop.f32.mrb[29].mxu0  ;;  %v974_v43 = vpop.f32.mrb[29].mxu1 }
 0x133   : > { %1287 = vst.msk [vmem:[%s2103_s17 + $0x24] sm:$0xf] %vm1277_vm1, %v1515_v34  ;;  %v1677_v30 = vadd.f32 %v1676_v42, %v1675_v35  ;;  %v975_v45 = vadd.f32 %v974_v43, %v814_v40  ;;  %v1678_v46 = vpop.f32.mrb[30].mxu0  ;;  %v1766_v47 = vpop.f32.mrb[30].mxu1 }
 0x134   : > { %v1679_v53 = vpop.f32.mrb[31].mxu0  ;;  %v977_v54 = vpop.f32.mrb[31].mxu1 }
 0x135   : > { %v822_v55 = vadd.f32 %v1677_v30, %v2089_v51  ;;  %v1129_v56 = vadd.f32 %v1564_v41, %v975_v45  ;;  %v1680_v57 = vadd.f32 %v1679_v53, %v1678_v46  ;;  %v978_v58 = vadd.f32 %v977_v54, %v817_v50  ;;  %v1613_v50 = vld [vmem:[%s2079_s11 + $0x60] sm:$0xff]  }
 0x136   : > { %v1576_v45 = vunpack.c.l.bf16 %v1610_v33  ;;  %v1577_v53 = vunpack.c.h.bf16 %v1610_v33  ;;  %v870_v54 = vadd.f32 %v2061_v20, %v2089_v51  ;;  %v1589_v20 = vunpack.c.h.bf16 %v1613_v50 }
 0x137   : > { %v983_v60 = vadd.f32 %v1765_v38, %v822_v55  ;;  %v1518_v36 = vpack.c.bf16 %v1129_v56, %v1129_v56  ;;  %v825_v61 = vadd.f32 %v1680_v57, %v2089_v51  ;;  %v1130_v62 = vadd.f32 %v1565_v52, %v978_v58 }
 0x139   : > { %v1131_v63 = vadd.f32 %v1568_v48, %v983_v60  ;;  %1290 = vst.msk [vmem:[%s2103_s17 + $0x30] sm:$0xf] %vm1277_vm1, %v1518_v36  ;;  %v986_v1 = vadd.f32 %v1766_v47, %v825_v61  ;;  %v1519_v2 = vpack.c.bf16 %v1130_v62, %v1130_v62  ;;  %v1681_v3 = vpop.f32.mrb[32].mxu0  ;;  %v1769_v4 = vpop.f32.mrb[32].mxu1  ;;  %v1614_v47 = vld [vmem:[%s2079_s11 + $0x68] sm:$0xff]   ;;  %v1611_v60 = vld [vmem:[%s2079_s11 + $0x50] sm:$0xff]   ;;  %v862_v36 = vadd.f32 %v2057_v8, %v2089_v51 }
 0x13a   : > { %v1682_v5 = vpop.f32.mrb[33].mxu0  ;;  %v990_v7 = vpop.f32.mrb[33].mxu1  ;;  %v1592_v55 = vunpack.c.l.bf16 %v1614_v47  ;;  %v1588_v61 = vunpack.c.l.bf16 %v1613_v50  ;;  %v1580_v8 = vunpack.c.l.bf16 %v1611_v60 }
 0x13b   : > { %v1520_v9 = vpack.c.bf16 %v1131_v63, %v1131_v63  ;;  %v1132_v10 = vadd.f32 %v1569_v59, %v986_v1  ;;  %1291 = vst.msk [vmem:[%s2103_s17 + $0x34] sm:$0xf] %vm1277_vm1, %v1519_v2  ;;  %v1683_v11 = vadd.f32 %v1682_v5, %v1681_v3  ;;  %v1684_v15 = vpop.f32.mrb[34].mxu0  ;;  %v1770_v16 = vpop.f32.mrb[34].mxu1  ;;  %v873_v2 = vadd.f32 %v2063_v25, %v2089_v51  ;;  %v1616_v25 = vld [vmem:[%s2079_s11 + $0x78] sm:$0xff]  }
 0x13c   : > { %v1685_v12 = vpop.f32.mrb[35].mxu0  ;;  %v993_v0 = vpop.f32.mrb[35].mxu1  ;;  %v1593_v3 = vunpack.c.h.bf16 %v1614_v47  ;;  %v1600_v33 = vunpack.c.l.bf16 %v1616_v25  ;;  %v1601_v47 = vunpack.c.h.bf16 %v1616_v25 }
 0x13d   : > { %1292 = vst.msk [vmem:[%s2103_s17 + $0x38] sm:$0xf] %vm1277_vm1, %v1520_v9  ;;  %v1521_v17 = vpack.c.bf16 %v1132_v10, %v1132_v10  ;;  %v830_v18 = vadd.f32 %v1683_v11, %v2089_v51  ;;  %v1686_v21 = vadd.f32 %v1685_v12, %v1684_v15  ;;  %v865_v12 = vadd.f32 %v2059_v13, %v2089_v51 }
 0x13f   : > { %1293 = vst.msk [vmem:[%s2103_s17 + $0x3c] sm:$0xf] %vm1277_vm1, %v1521_v17  ;;  %v991_v22 = vadd.f32 %v990_v7, %v830_v18  ;;  %v833_v23 = vadd.f32 %v1686_v21, %v2089_v51 }
 0x141   : > { %v1133_v26 = vadd.f32 %v1572_v19, %v991_v22  ;;  %v994_v27 = vadd.f32 %v993_v0, %v833_v23  ;;  %v1687_v28 = vpop.f32.mrb[36].mxu0  ;;  %v2164_v29 = vpop.f32.mrb[36].mxu1  ;;  %v1615_v22 = vld [vmem:[%s2079_s11 + $0x70] sm:$0xff]  }
 0x142   : > { %v1688_v31 = vpop.f32.mrb[37].mxu0  ;;  %v1006_v14 = vpop.f32.mrb[37].mxu1 }
 0x143   : > { %v1522_v34 = vpack.c.bf16 %v1133_v26, %v1133_v26  ;;  %v1134_v35 = vadd.f32 %v1573_v24, %v994_v27  ;;  %v1689_v38 = vadd.f32 %v1688_v31, %v1687_v28  ;;  %v1690_v39 = vpop.f32.mrb[38].mxu0  ;;  %v2167_v40 = vpop.f32.mrb[38].mxu1  ;;  %v1581_v26 = vunpack.c.h.bf16 %v1611_v60 }
 0x144   : > { %v1691_v41 = vpop.f32.mrb[39].mxu0  ;;  %v1009_v42 = vpop.f32.mrb[39].mxu1 }
 0x145   : > { %1294 = vst.msk [vmem:[%s2103_s17 + $0x40] sm:$0xf] %vm1277_vm1, %v1522_v34  ;;  %v1523_v43 = vpack.c.bf16 %v1134_v35, %v1134_v35  ;;  %v838_v30 = vadd.f32 %v1689_v38, %v2089_v51  ;;  %v1692_v46 = vadd.f32 %v1691_v41, %v1690_v39  ;;  %v886_v38 = vadd.f32 %v2081_v44, %v2089_v51 }
 0x146   : > { %v1596_v39 = vunpack.c.l.bf16 %v1615_v22  ;;  %v889_v44 = vadd.f32 %v2083_v49, %v2089_v51 }
 0x147   : > { %1295 = vst.msk [vmem:[%s2103_s17 + $0x44] sm:$0xf] %vm1277_vm1, %v1523_v43  ;;  %v999_v52 = vadd.f32 %v1769_v4, %v838_v30  ;;  %v841_v48 = vadd.f32 %v1692_v46, %v2089_v51  ;;  %v878_v46 = vadd.f32 %v2067_v32, %v2089_v51 }
 0x149   : > { %v1135_v56 = vadd.f32 %v1576_v45, %v999_v52  ;;  %v1002_v57 = vadd.f32 %v1770_v16, %v841_v48  ;;  %v1693_v58 = vpop.f32.mrb[40].mxu0  ;;  %v1777_v59 = vpop.f32.mrb[40].mxu1 }
 0x14a   : > { %v1031_v62 = vadd.f32 %v1777_v59, %v870_v54  ;;  %v1694_v63 = vpop.f32.mrb[41].mxu0  ;;  %v1022_v1 = vpop.f32.mrb[41].mxu1  ;;  %v1597_v54 = vunpack.c.h.bf16 %v1615_v22 }
 0x14b   : > { %v1524_v4 = vpack.c.bf16 %v1135_v56, %v1135_v56  ;;  %v1136_v5 = vadd.f32 %v1577_v53, %v1002_v57  ;;  %v1695_v7 = vadd.f32 %v1694_v63, %v1693_v58  ;;  %v1023_v6 = vadd.f32 %v1022_v1, %v862_v36  ;;  %v1696_v9 = vpop.f32.mrb[42].mxu0  ;;  %v1778_v10 = vpop.f32.mrb[42].mxu1 }
 0x14c   : > { %v1143_v11 = vadd.f32 %v1592_v55, %v1031_v62  ;;  %v1034_v15 = vadd.f32 %v1778_v10, %v873_v2  ;;  %v1697_v16 = vpop.f32.mrb[43].mxu0  ;;  %v1025_v0 = vpop.f32.mrb[43].mxu1  ;;  %v881_v62 = vadd.f32 %v2071_v37, %v2089_v51 }
 0x14d   : > { %1296 = vst.msk [vmem:[%s2103_s17 + $0x48] sm:$0xf] %vm1277_vm1, %v1524_v4  ;;  %v1525_v17 = vpack.c.bf16 %v1136_v5, %v1136_v5  ;;  %v846_v18 = vadd.f32 %v1695_v7, %v2089_v51  ;;  %v1141_v19 = vadd.f32 %v1588_v61, %v1023_v6  ;;  %v1698_v21 = vadd.f32 %v1697_v16, %v1696_v9 }
 0x14e   : > { %v1532_v23 = vpack.c.bf16 %v1143_v11, %v1143_v11  ;;  %v1144_v24 = vadd.f32 %v1593_v3, %v1034_v15  ;;  %v1026_v27 = vadd.f32 %v1025_v0, %v865_v12 }
 0x14f   : > { %1297 = vst.msk [vmem:[%s2103_s17 + $0x4c] sm:$0xf] %vm1277_vm1, %v1525_v17  ;;  %v1007_v13 = vadd.f32 %v1006_v14, %v846_v18  ;;  %v1530_v28 = vpack.c.bf16 %v1141_v19, %v1141_v19  ;;  %v849_v31 = vadd.f32 %v1698_v21, %v2089_v51  ;;  %v1612_v14 = vld [vmem:[%s2079_s11 + $0x58] sm:$0xff]  }
 0x150   : > { %1304 = vst.msk [vmem:[%s2103_s17 + $0x68] sm:$0xf] %vm1277_vm1, %v1532_v23  ;;  %v1533_v34 = vpack.c.bf16 %v1144_v24, %v1144_v24  ;;  %v1142_v35 = vadd.f32 %v1589_v20, %v1026_v27  ;;  %v1584_v60 = vunpack.c.l.bf16 %v1612_v14  ;;  %v1585_v9 = vunpack.c.h.bf16 %v1612_v14 }
 0x151   : > { %v1137_v41 = vadd.f32 %v1580_v8, %v1007_v13  ;;  %1302 = vst.msk [vmem:[%s2103_s17 + $0x60] sm:$0xf] %vm1277_vm1, %v1530_v28  ;;  %v1010_v43 = vadd.f32 %v1009_v42, %v849_v31  ;;  %v1699_v30 = vpop.f32.mrb[44].mxu0  ;;  %v1781_v45 = vpop.f32.mrb[44].mxu1 }
 0x152   : > { %1305 = vst.msk [vmem:[%s2103_s17 + $0x6c] sm:$0xf] %vm1277_vm1, %v1533_v34  ;;  %v1531_v50 = vpack.c.bf16 %v1142_v35, %v1142_v35  ;;  %v1047_v52 = vadd.f32 %v1781_v45, %v886_v38  ;;  %v1700_v48 = vpop.f32.mrb[45].mxu0  ;;  %v1038_v53 = vpop.f32.mrb[45].mxu1 }
 0x153   : > { %v1526_v42 = vpack.c.bf16 %v1137_v41, %v1137_v41  ;;  %v1138_v55 = vadd.f32 %v1581_v26, %v1010_v43  ;;  %v1701_v56 = vadd.f32 %v1700_v48, %v1699_v30  ;;  %v1039_v57 = vadd.f32 %v1038_v53, %v878_v46  ;;  %v1702_v58 = vpop.f32.mrb[46].mxu0  ;;  %v1782_v59 = vpop.f32.mrb[46].mxu1 }
 0x154   : > { %1303 = vst.msk [vmem:[%s2103_s17 + $0x64] sm:$0xf] %vm1277_vm1, %v1531_v50  ;;  %v1147_v32 = vadd.f32 %v1600_v33, %v1047_v52  ;;  %v1050_v36 = vadd.f32 %v1782_v59, %v889_v44  ;;  %v1703_v61 = vpop.f32.mrb[47].mxu0  ;;  %v1041_v63 = vpop.f32.mrb[47].mxu1 }
 0x155   : > { %1298 = vst.msk [vmem:[%s2103_s17 + $0x50] sm:$0xf] %vm1277_vm1, %v1526_v42  ;;  %v1527_v49 = vpack.c.bf16 %v1138_v55, %v1138_v55  ;;  %v854_v1 = vadd.f32 %v1701_v56, %v2089_v51  ;;  %v1145_v2 = vadd.f32 %v1596_v39, %v1039_v57  ;;  %v1704_v3 = vadd.f32 %v1703_v61, %v1702_v58 }
 0x156   : > { %v1536_v20 = vpack.c.bf16 %v1147_v32, %v1147_v32  ;;  %v1148_v4 = vadd.f32 %v1601_v47, %v1050_v36  ;;  %v1042_v5 = vadd.f32 %v1041_v63, %v881_v62 }
 0x157   : > { %1299 = vst.msk [vmem:[%s2103_s17 + $0x54] sm:$0xf] %vm1277_vm1, %v1527_v49  ;;  %v1015_v7 = vadd.f32 %v2164_v29, %v854_v1  ;;  %v1534_v37 = vpack.c.bf16 %v1145_v2, %v1145_v2  ;;  %v857_v6 = vadd.f32 %v1704_v3, %v2089_v51 }
 0x158   : > { %1308 = vst.msk [vmem:[%s2103_s17 + $0x78] sm:$0xf] %vm1277_vm1, %v1536_v20  ;;  %v1537_v10 = vpack.c.bf16 %v1148_v4, %v1148_v4  ;;  %v1146_v11 = vadd.f32 %v1597_v54, %v1042_v5 }
 0x159   : > { %v1139_v8 = vadd.f32 %v1584_v60, %v1015_v7  ;;  %1306 = vst.msk [vmem:[%s2103_s17 + $0x70] sm:$0xf] %vm1277_vm1, %v1534_v37  ;;  %v1018_v15 = vadd.f32 %v2167_v40, %v857_v6 }
 0x15a   : > { %1309 = vst.msk [vmem:[%s2103_s17 + $0x7c] sm:$0xf] %vm1277_vm1, %v1537_v10  ;;  %v1535_v16 = vpack.c.bf16 %v1146_v11, %v1146_v11 }
 0x15b   : > { %v1528_v12 = vpack.c.bf16 %v1139_v8, %v1139_v8  ;;  %v1140_v0 = vadd.f32 %v1585_v9, %v1018_v15 }
 0x15c   : > { %1307 = vst.msk [vmem:[%s2103_s17 + $0x74] sm:$0xf] %vm1277_vm1, %v1535_v16 }
 0x15d   : > { %1300 = vst.msk [vmem:[%s2103_s17 + $0x58] sm:$0xf] %vm1277_vm1, %v1528_v12  ;;  %v1529_v51 = vpack.c.bf16 %v1140_v0, %v1140_v0 }
 0x15f   : > { %1301 = vst.msk [vmem:[%s2103_s17 + $0x5c] sm:$0xf] %vm1277_vm1, %v1529_v51 }
 0x160 PF: > { %s14_s15 = sadd.s32 1, %s1896_s15  }
 0x161   : > { %p11_p4 = scmp.ge.s32.totalorder %s14_s15, 4  }
 0x163   :  { %13 = sbr.rel (!%p11_p4) target bundleno = 1 (0x1), region = 69 }

// kernel: sekd_forward.17
= control target key start
LH: loop header
LB: loop body
LE: loop exit
PB: predicated region body
PF: predicated region fallthrough
CT: control target
= control target key end

     0   :  { %s1115_s18 = smov 0   ;;  %s1246_s0 = inlined_call_operand.vmem [shape: bf16[128,288], index: 0, kind: input, shape index: {}]   ;;  %s1247_s1 = inlined_call_operand.vmem [shape: bf16[288,64], index: 1, kind: input, shape index: {}]   ;;  %s1248_s2 = inlined_call_operand.vmem [shape: f32[1,64], index: 2, kind: input, shape index: {}]   ;;  %s1249_s3 = inlined_call_operand.vmem [shape: bf16[32,64], index: 3, kind: input, shape index: {}]   ;;  %s1250_s4 = inlined_call_operand.vmem [shape: bf16[128,32], index: 4, kind: input, shape index: {}]   ;;  %s1251_s5 = inlined_call_operand.vmem [shape: bf16[128,64], index: 5, kind: output, shape index: {}]  }
   0x1 LB: > { %s862_s19 = sadd.s32 4294967295, %s1083_s18   ;;  %p866_p0 = scmp.ge.s32.totalorder %s1083_s18, 1  ;;  %s1083_s18 = sphi %s1115_s18, %s15_s18  }
   0x2   : > { %p200_p1 = scmp.lt.s32.totalorder %s1083_s18, 3 }
   0x4   : > { %p201_p2 = pnand %p866_p0, %p200_p1 }
   0x5   : > { %v1037_v0 = vld [vmem:[%s1247_s1 + $0x40] sm:$0xff] (!%p201_p2)   ;;  %s867_s22 = sshll.u32 (!%p201_p2), %s862_s19, 3  ;;  %v1039_v2 = vld [vmem:[%s1247_s1 + $0x48] sm:$0xff] (!%p201_p2)   ;;  %v1042_v5 = vld [vmem:[%s1247_s1 + $0x50] sm:$0xff] (!%p201_p2)   ;;  %vm350_vm0 = vcmask (!%p201_p2), 261120   ;;  %vm785_vm1 = vcmask (!%p201_p2), 519168  }
   0x6   : > { %204 = sbr.rel (%p201_p2) target bundleno = 286 (0x11e), region = 40  ;;  %v1038_v1 = vld [vmem:[%s1247_s1] sm:$0xff] (!%p201_p2)   ;;  %p235_p3 = scmp.lt.s32.totalorder (!%p201_p2), %s867_s22, 15  ;;  %942 = vmatprep.subr.bf16.mxu1 (!%p201_p2), %v1037_v0  ;;  %v1040_v3 = vld [vmem:[%s1247_s1 + $0x8] sm:$0xff] (!%p201_p2)   ;;  %v1043_v6 = vld [vmem:[%s1247_s1 + $0x10] sm:$0xff] (!%p201_p2)  }
   0x7   : > { %943 = vmatpush3.bf16.msra.mxu1 (!%p201_p2), %v1038_v1  ;;  %v1041_v4 = vld [vmem:[%s1249_s3] sm:$0xff] (!%p201_p2)   ;;  %v1044_v7 = vld [vmem:[%s1249_s3 + $0x8] sm:$0xff] (!%p201_p2)   ;;  %v1045_v8 = vld [vmem:[%s1247_s1 + $0x58] sm:$0xff] (!%p201_p2)  }
   0x8   : > { %944 = vmatprep.subr.bf16.mxu1 (!%p201_p2), %v1039_v2  ;;  %988 = vmatprep.subr.bf16.mxu0 (!%p201_p2), %v1041_v4  ;;  %v1046_v9 = vld [vmem:[%s1247_s1 + $0x18] sm:$0xff] (!%p201_p2)   ;;  %v1049_v12 = vld [vmem:[%s1247_s1 + $0x60] sm:$0xff] (!%p201_p2)   ;;  %v1051_v14 = vld [vmem:[%s1247_s1 + $0x68] sm:$0xff] (!%p201_p2)  }
   0x9   : > { %989 = vmatpush3.bf16.msra.mxu0 (!%p201_p2), %v1041_v4  ;;  %v1050_v13 = vld [vmem:[%s1247_s1 + $0x20] sm:$0xff] (!%p201_p2)   ;;  %v1052_v18 = vld [vmem:[%s1247_s1 + $0x28] sm:$0xff] (!%p201_p2)   ;;  %v1056_v19 = vld [vmem:[%s1247_s1 + $0x70] sm:$0xff] (!%p201_p2)  }
   0xa   : > { %990 = vmatprep.subr.bf16.mxu0 (!%p201_p2), %v1044_v7  ;;  %v1055_v17 = vld [vmem:[%s1247_s1 + $0x80] sm:$0xff] (!%p201_p2)   ;;  %v1058_v20 = vld [vmem:[%s1247_s1 + $0x88] sm:$0xff] (!%p201_p2)   ;;  %v1057_v21 = vld [vmem:[%s1247_s1 + $0x30] sm:$0xff] (!%p201_p2)  }
   0xb   : > { %945 = vmatpush3.bf16.msra.mxu1 (!%p201_p2), %v1040_v3  ;;  %v1059_v22 = vld [vmem:[%s1247_s1 + $0x78] sm:$0xff] (!%p201_p2)   ;;  %v917_v44 = vld [vmem:[%s1248_s2] ss:$0 sm:$0xff] (!%p201_p2) }
   0xc   : > { %946 = vmatprep.subr.bf16.mxu1 (!%p201_p2), %v1042_v5  ;;  %v1060_v24 = vld [vmem:[%s1247_s1 + $0x38] sm:$0xff] (!%p201_p2)  }
   0xd   : > { %s1253_s22 = smov (!%p235_p3, %s867_s22), 15  ;;  %991 = vmatpush3.bf16.msra.mxu0 %v1044_v7 }
   0xe   : > { %s870_s10 = sshll.u32 %s1253_s22, 2  ;;  %s1028_s28 = smul.u32 12, %s1253_s22  ;;  %1000 = vmatprep.subr.bf16.mxu0 %v1055_v17 }
   0xf   : > { %s245_s15 = scalar_lea.vmem %s1250_s4, %s870_s10  ;;  %947 = vmatpush3.bf16.msra.mxu1 %v1043_v6 }
  0x10   : > { %v1047_v10 = vld [vmem:[%s245_s15] sm:$0xff]   ;;  %v1048_v11 = vld [vmem:[%s245_s15 + $0x8] sm:$0xff]   ;;  %948 = vmatprep.subr.bf16.mxu1 %v1045_v8  ;;  %v1053_v15 = vld [vmem:[%s245_s15 + $0x10] sm:$0xff]   ;;  %s1186_s13 = scalar_lea.vmem %s1246_s0, %s1028_s28  ;;  %s1225_s28 = scalar_lea.vmem %s1251_s5, %s870_s10 }
  0x11   : > { %992 = vmatprep.mubr.msk.bf16.mxu0 %vm350_vm0, %v1047_v10  ;;  %v1054_v16 = vld [vmem:[%s245_s15 + $0x18] sm:$0xff]   ;;  %v1061_v23 = vld [vmem:[%s1186_s13 + $0x8] ss:$12 sps:$4 sm:$0xff]   ;;  %v1064_v25 = vld [vmem:[%s1186_s13 + $0x4] ss:$12 sps:$4 sm:$0xff]  }
  0x12   : > { %993 = vmatmul.mubr.msk.bf16.vlgmr.msra.gmra.mrb[0].mxu0 %vm350_vm0, %v1048_v11  ;;  %v1065_v26 = vld [vmem:[%s1186_s13 + $0x20] ss:$12 sps:$4 sm:$0xff]   ;;  %640 = vmatprep.mubr.bf16.mxu1 %v1064_v25  ;;  %v1066_v27 = vld [vmem:[%s1186_s13 + $0x38] ss:$12 sps:$4 sm:$0xff]   ;;  %v1067_v29 = vld [vmem:[%s1186_s13 + $0x1c] ss:$12 sps:$4 sm:$0xff]  }
  0x13   : > { %949 = vmatpush3.bf16.msra.mxu1 %v1046_v9  ;;  %996 = vmatprep.mubr.msk.bf16.mxu0 %vm350_vm0, %v1053_v15  ;;  %v1062_v28 = vld [vmem:[%s1186_s13] ss:$12 sps:$4 sm:$0xff]   ;;  %v1069_v30 = vld [vmem:[%s1186_s13 + $0x50] ss:$12 sps:$4 sm:$0xff]   ;;  %v1070_v31 = vld [vmem:[%s1186_s13 + $0x18] ss:$12 sps:$4 sm:$0xff]  }
  0x14   : > { %950 = vmatprep.subr.bf16.mxu1 %v1049_v12  ;;  %1001 = vmatpush3.bf16.msra.mxu0 %v1055_v17  ;;  %v1071_v32 = vld [vmem:[%s1186_s13 + $0x34] ss:$12 sps:$4 sm:$0xff]   ;;  %v1073_v33 = vld [vmem:[%s1186_s13 + $0x30] ss:$12 sps:$4 sm:$0xff]   ;;  %v1074_v34 = vld [vmem:[%s1186_s13 + $0x4c] ss:$12 sps:$4 sm:$0xff]  }
  0x15   : > { %1002 = vmatprep.subr.bf16.mxu0 %v1058_v20  ;;  %v1076_v35 = vld [vmem:[%s1186_s13 + $0x48] ss:$12 sps:$4 sm:$0xff]  }
  0x17   : > { %951 = vmatpush3.bf16.msra.mxu1 %v1050_v13 }
  0x18   : > { %952 = vmatprep.subr.bf16.mxu1 %v1051_v14  ;;  %1003 = vmatpush3.bf16.msra.mxu0 %v1058_v20 }
  0x1a   : > { %997 = vmatmul.mubr.msk.bf16.gmra.mrb[4].mxu0 %vm350_vm0, %v1054_v16 }
  0x1b   : > { %953 = vmatpush3.bf16.msra.mxu1 %v1052_v18  ;;  %1004 = vmatprep.mubr.msk.bf16.mxu0 %vm350_vm0, %v1061_v23 }
  0x1c   : > { %954 = vmatprep.subr.bf16.mxu1 %v1056_v19 }
  0x1f   : > { %955 = vmatpush3.bf16.msra.mxu1 %v1057_v21 }
  0x20   : > { %956 = vmatprep.subr.bf16.mxu1 %v1059_v22 }
  0x22   : > { %1005 = vmatmul.mubr.msk.bf16.vlgmr.msra.gmra.mrb[0].mxu0 %vm350_vm0, %v1065_v26 }
  0x23   : > { %957 = vmatpush3.bf16.msra.mxu1 %v1060_v24  ;;  %1008 = vmatprep.mubr.msk.bf16.mxu0 %vm350_vm0, %v1066_v27 }
  0x26   : > { %641 = vmatmul.mubr.bf16.vlgmr.msra.gmra.mrb[0].mxu1 %v1062_v28 }
  0x27   : > { %648 = vmatprep.mubr.bf16.mxu1 %v1067_v29 }
  0x2a   : > { %1009 = vmatmul.mubr.msk.bf16.gmra.mrb[4].mxu0 %vm350_vm0, %v1069_v30 }
  0x2e   : > { %649 = vmatmul.mubr.bf16.gmra.mrb[4].mxu1 %v1070_v31 }
  0x2f   : > { %656 = vmatprep.mubr.bf16.mxu1 %v1071_v32 }
  0x36   : > { %657 = vmatmul.mubr.bf16.gmra.mrb[8].mxu1 %v1073_v33 }
  0x37   : > { %664 = vmatprep.mubr.bf16.mxu1 %v1074_v34 }
  0x3e   : > { %665 = vmatmul.mubr.bf16.gmra.mrb[12].mxu1 %v1076_v35 }
  0xf5   : > { %v1006_v36 = vpop.f32.mrb[0].mxu0 }
  0xf6   : > { %v707_v37 = vpop.f32.mrb[1].mxu0 }
  0xf7   : > { %v1007_v38 = vpop.f32.mrb[2].mxu0 }
  0xf8   : > { %v710_v39 = vpop.f32.mrb[3].mxu0 }
  0xf9   : > { %v958_v40 = vpop.f32.mrb[0].mxu1 }
  0xfa   : > { %v959_v41 = vpop.f32.mrb[1].mxu1 }
  0xfb   : > { %v960_v42 = vadd.f32 %v959_v41, %v958_v40  ;;  %v961_v43 = vpop.f32.mrb[2].mxu1 }
  0xfc   : > { %v962_v45 = vpop.f32.mrb[3].mxu1 }
  0xfd   : > { %v1013_v46 = vadd.f32 %v960_v42, %v707_v37  ;;  %v963_v47 = vadd.f32 %v962_v45, %v961_v43  ;;  %v1010_v48 = vpop.f32.mrb[4].mxu0 }
  0xfe   : > { %v723_v49 = vpop.f32.mrb[5].mxu0 }
  0xff   : > { %v745_v50 = vadd.f32 %v1013_v46, %v917_v44  ;;  %v1015_v51 = vadd.f32 %v963_v47, %v710_v39  ;;  %v1011_v52 = vpop.f32.mrb[6].mxu0 }
 0x100   : > { %v726_v53 = vpop.f32.mrb[7].mxu0 }
 0x101   : > { %v928_v54 = vpack.c.bf16 %v745_v50, %v745_v50  ;;  %v746_v55 = vadd.f32 %v1015_v51, %v917_v44  ;;  %v964_v56 = vpop.f32.mrb[4].mxu1 }
 0x102   : > { %v965_v57 = vpop.f32.mrb[5].mxu1 }
 0x103   : > { %786 = vst.msk [vmem:[%s1225_s28] sm:$0xf] %vm785_vm1, %v928_v54  ;;  %v929_v58 = vpack.c.bf16 %v746_v55, %v746_v55  ;;  %v966_v59 = vadd.f32 %v965_v57, %v964_v56  ;;  %v967_v60 = vpop.f32.mrb[6].mxu1 }
 0x104   : > { %v968_v61 = vpop.f32.mrb[7].mxu1 }
 0x105   : > { %787 = vst.msk [vmem:[%s1225_s28 + $0x4] sm:$0xf] %vm785_vm1, %v929_v58  ;;  %v1012_v62 = vadd.f32 %v1006_v36, %v966_v59  ;;  %v969_v63 = vadd.f32 %v968_v61, %v967_v60 }
 0x107   : > { %v747_v0 = vadd.f32 %v1012_v62, %v917_v44  ;;  %v1014_v1 = vadd.f32 %v1007_v38, %v969_v63 }
 0x109   : > { %v930_v2 = vpack.c.bf16 %v747_v0, %v747_v0  ;;  %v748_v3 = vadd.f32 %v1014_v1, %v917_v44  ;;  %v970_v4 = vpop.f32.mrb[8].mxu1 }
 0x10a   : > { %v971_v5 = vpop.f32.mrb[9].mxu1 }
 0x10b   : > { %788 = vst.msk [vmem:[%s1225_s28 + $0x8] sm:$0xf] %vm785_vm1, %v930_v2  ;;  %v931_v6 = vpack.c.bf16 %v748_v3, %v748_v3  ;;  %v972_v7 = vadd.f32 %v971_v5, %v970_v4  ;;  %v973_v8 = vpop.f32.mrb[10].mxu1 }
 0x10c   : > { %v974_v9 = vpop.f32.mrb[11].mxu1 }
 0x10d   : > { %789 = vst.msk [vmem:[%s1225_s28 + $0xc] sm:$0xf] %vm785_vm1, %v931_v6  ;;  %v1017_v10 = vadd.f32 %v972_v7, %v723_v49  ;;  %v975_v11 = vadd.f32 %v974_v9, %v973_v8 }
 0x10f   : > { %v749_v12 = vadd.f32 %v1017_v10, %v917_v44  ;;  %v1019_v13 = vadd.f32 %v975_v11, %v726_v53 }
 0x111   : > { %v932_v14 = vpack.c.bf16 %v749_v12, %v749_v12  ;;  %v750_v15 = vadd.f32 %v1019_v13, %v917_v44  ;;  %v976_v16 = vpop.f32.mrb[12].mxu1 }
 0x112   : > { %v977_v17 = vpop.f32.mrb[13].mxu1 }
 0x113   : > { %790 = vst.msk [vmem:[%s1225_s28 + $0x10] sm:$0xf] %vm785_vm1, %v932_v14  ;;  %v933_v18 = vpack.c.bf16 %v750_v15, %v750_v15  ;;  %v978_v19 = vadd.f32 %v977_v17, %v976_v16  ;;  %v979_v20 = vpop.f32.mrb[14].mxu1 }
 0x114   : > { %v980_v21 = vpop.f32.mrb[15].mxu1 }
 0x115   : > { %791 = vst.msk [vmem:[%s1225_s28 + $0x14] sm:$0xf] %vm785_vm1, %v933_v18  ;;  %v1016_v22 = vadd.f32 %v1010_v48, %v978_v19  ;;  %v981_v23 = vadd.f32 %v980_v21, %v979_v20 }
 0x117   : > { %v751_v24 = vadd.f32 %v1016_v22, %v917_v44  ;;  %v1018_v25 = vadd.f32 %v1011_v52, %v981_v23 }
 0x119   : > { %v934_v26 = vpack.c.bf16 %v751_v24, %v751_v24  ;;  %v752_v27 = vadd.f32 %v1018_v25, %v917_v44 }
 0x11b   : > { %792 = vst.msk [vmem:[%s1225_s28 + $0x18] sm:$0xf] %vm785_vm1, %v934_v26  ;;  %v935_v28 = vpack.c.bf16 %v752_v27, %v752_v27 }
 0x11d   : > { %793 = vst.msk [vmem:[%s1225_s28 + $0x1c] sm:$0xf] %vm785_vm1, %v935_v28 }
 0x11e PF: > { %s15_s18 = sadd.s32 1, %s1083_s18  }
 0x11f   : > { %p12_p4 = scmp.ge.s32.totalorder %s15_s18, 4  }
 0x121   :  { %14 = sbr.rel (!%p12_p4) target bundleno = 1 (0x1), region = 73 }

// kernel: sekd_forward.18
= control target key start
LH: loop header
LB: loop body
LE: loop exit
PB: predicated region body
PF: predicated region fallthrough
CT: control target
= control target key end

     0   :  { %s1314_s15 = smov 0   ;;  %s1501_s0 = inlined_call_operand.vmem [shape: bf16[128,576], index: 0, kind: input, shape index: {}]   ;;  %s1502_s1 = inlined_call_operand.vmem [shape: bf16[576,64], index: 1, kind: input, shape index: {}]   ;;  %s1503_s2 = inlined_call_operand.vmem [shape: f32[1,64], index: 2, kind: input, shape index: {}]   ;;  %s1504_s3 = inlined_call_operand.vmem [shape: bf16[128,64], index: 3, kind: input, shape index: {}]   ;;  %s1505_s4 = inlined_call_operand.vmem [shape: bf16[128,64], index: 4, kind: output, shape index: {}]  }
   0x1 LB: > { %s987_s16 = sadd.s32 4294967295, %s1287_s15   ;;  %p991_p0 = scmp.ge.s32.totalorder %s1287_s15, 1  ;;  %s1287_s15 = sphi %s1314_s15, %s14_s15  }
   0x2   : > { %p175_p1 = scmp.lt.s32.totalorder %s1287_s15, 3 }
   0x4   : > { %p176_p2 = pnand %p991_p0, %p175_p1 }
   0x5   : > { %v1217_v0 = vld [vmem:[%s1502_s1 + $0x40] sm:$0xff] (!%p176_p2)   ;;  %v1221_v4 = vld [vmem:[%s1502_s1 + $0x48] sm:$0xff] (!%p176_p2)   ;;  %v1225_v8 = vld [vmem:[%s1502_s1 + $0x50] sm:$0xff] (!%p176_p2)   ;;  %s992_s23 = sshll.u32 (!%p176_p2), %s987_s16, 3  ;;  %vm646_vm0 = vcmask (!%p176_p2), 523264   ;;  %vm910_vm1 = vcmask (!%p176_p2), 519168  }
   0x6   : > { %179 = sbr.rel (%p176_p2) target bundleno = 294 (0x126), region = 36  ;;  %v1218_v1 = vld [vmem:[%s1502_s1 + $0xc0] sm:$0xff] (!%p176_p2)   ;;  %1096 = vmatprep.subr.bf16.mxu0 (!%p176_p2), %v1217_v0  ;;  %v1222_v5 = vld [vmem:[%s1502_s1 + $0xc8] sm:$0xff] (!%p176_p2)   ;;  %v1226_v9 = vld [vmem:[%s1502_s1 + $0xd0] sm:$0xff] (!%p176_p2)   ;;  %p208_p3 = scmp.lt.s32.totalorder (!%p176_p2), %s992_s23, 15 }
   0x7   : > { %v1219_v2 = vld [vmem:[%s1502_s1] sm:$0xff] (!%p176_p2)   ;;  %1136 = vmatprep.subr.bf16.mxu1 (!%p176_p2), %v1218_v1  ;;  %v1223_v6 = vld [vmem:[%s1502_s1 + $0x8] sm:$0xff] (!%p176_p2)   ;;  %v1227_v10 = vld [vmem:[%s1502_s1 + $0x10] sm:$0xff] (!%p176_p2)  }
   0x8   : > { %v1220_v3 = vld [vmem:[%s1502_s1 + $0x80] sm:$0xff] (!%p176_p2)   ;;  %1097 = vmatpush3.bf16.msra.mxu0 (!%p176_p2), %v1219_v2  ;;  %v1224_v7 = vld [vmem:[%s1502_s1 + $0x88] sm:$0xff] (!%p176_p2)   ;;  %v1228_v11 = vld [vmem:[%s1502_s1 + $0x90] sm:$0xff] (!%p176_p2)  }
   0x9   : > { %1137 = vmatpush3.bf16.msra.mxu1 (!%p176_p2), %v1220_v3  ;;  %1098 = vmatprep.subr.bf16.mxu0 (!%p176_p2), %v1221_v4  ;;  %v1229_v12 = vld [vmem:[%s1502_s1 + $0x58] sm:$0xff] (!%p176_p2)   ;;  %v1233_v16 = vld [vmem:[%s1502_s1 + $0x60] sm:$0xff] (!%p176_p2)   ;;  %v1237_v20 = vld [vmem:[%s1502_s1 + $0x68] sm:$0xff] (!%p176_p2)  }
   0xa   : > { %1138 = vmatprep.subr.bf16.mxu1 (!%p176_p2), %v1222_v5  ;;  %v1230_v13 = vld [vmem:[%s1502_s1 + $0xd8] sm:$0xff] (!%p176_p2)   ;;  %v1234_v17 = vld [vmem:[%s1502_s1 + $0xe0] sm:$0xff] (!%p176_p2)   ;;  %v1238_v21 = vld [vmem:[%s1502_s1 + $0xe8] sm:$0xff] (!%p176_p2)  }
   0xb   : > { %v1231_v14 = vld [vmem:[%s1502_s1 + $0x18] sm:$0xff] (!%p176_p2)   ;;  %v1235_v18 = vld [vmem:[%s1502_s1 + $0x20] sm:$0xff] (!%p176_p2)   ;;  %v1239_v22 = vld [vmem:[%s1502_s1 + $0x28] sm:$0xff] (!%p176_p2)  }
   0xc   : > { %1099 = vmatpush3.bf16.msra.mxu0 (!%p176_p2), %v1223_v6  ;;  %v1232_v15 = vld [vmem:[%s1502_s1 + $0x98] sm:$0xff] (!%p176_p2)   ;;  %v1236_v19 = vld [vmem:[%s1502_s1 + $0xa0] sm:$0xff] (!%p176_p2)   ;;  %v1240_v23 = vld [vmem:[%s1502_s1 + $0xa8] sm:$0xff] (!%p176_p2)  }
   0xd   : > { %1139 = vmatpush3.bf16.msra.mxu1 %v1224_v7  ;;  %1100 = vmatprep.subr.bf16.mxu0 %v1225_v8  ;;  %s1507_s23 = smov (!%p208_p3, %s992_s23), 15  ;;  %v1241_v24 = vld [vmem:[%s1502_s1 + $0x70] sm:$0xff]   ;;  %v1245_v28 = vld [vmem:[%s1502_s1 + $0x78] sm:$0xff]   ;;  %v1255_v36 = vld [vmem:[%s1502_s1 + $0x100] sm:$0xff]  }
   0xe   : > { %1140 = vmatprep.subr.bf16.mxu1 %v1226_v9  ;;  %v1242_v25 = vld [vmem:[%s1502_s1 + $0xf0] sm:$0xff]   ;;  %s1208_s21 = smul.u32 20, %s1507_s23  ;;  %v1246_v29 = vld [vmem:[%s1502_s1 + $0xf8] sm:$0xff]   ;;  %v1262_v39 = vld [vmem:[%s1502_s1 + $0x108] sm:$0xff]   ;;  %s995_s24 = sshll.u32 %s1507_s23, 2 }
   0xf   : > { %v1243_v26 = vld [vmem:[%s1502_s1 + $0x30] sm:$0xff]   ;;  %v1247_v30 = vld [vmem:[%s1502_s1 + $0x38] sm:$0xff]   ;;  %v1463_v58 = vld [vmem:[%s1503_s2] ss:$0 sm:$0xff]  ;;  %s218_s27 = scalar_lea.vmem %s1504_s3, %s995_s24  ;;  %s224_s30 = scalar_lea.vmem %s1505_s4, %s995_s24 }
  0x10   : > { %1101 = vmatpush3.bf16.msra.mxu0 %v1227_v10  ;;  %v1244_v27 = vld [vmem:[%s1502_s1 + $0xb0] sm:$0xff]   ;;  %s1420_s6 = scalar_lea.vmem %s1501_s0, %s1208_s21  ;;  %v1248_v31 = vld [vmem:[%s1502_s1 + $0xb8] sm:$0xff]  }
  0x11   : > { %1141 = vmatpush3.bf16.msra.mxu1 %v1228_v11  ;;  %1102 = vmatprep.subr.bf16.mxu0 %v1229_v12  ;;  %v1249_v32 = vld [vmem:[%s1420_s6] ss:$20 sps:$4 sm:$0xff]   ;;  %v1251_v33 = vld [vmem:[%s1420_s6 + $0x4] ss:$20 sps:$4 sm:$0xff]   ;;  %v1252_v34 = vld [vmem:[%s1420_s6 + $0x8] ss:$20 sps:$4 sm:$0xff]  }
  0x12   : > { %1142 = vmatprep.subr.bf16.mxu1 %v1230_v13  ;;  %v1254_v35 = vld [vmem:[%s1420_s6 + $0xc] ss:$20 sps:$4 sm:$0xff]   ;;  %691 = vmatprep.mubr.bf16.mxu0 %v1251_v33  ;;  %v1258_v38 = vld [vmem:[%s1420_s6 + $0x34] ss:$20 sps:$4 sm:$0xff]   ;;  %v1261_v41 = vld [vmem:[%s1420_s6 + $0x30] ss:$20 sps:$4 sm:$0xff]  }
  0x13   : > { %756 = vmatprep.mubr.bf16.mxu1 %v1254_v35  ;;  %v1256_v37 = vld [vmem:[%s1420_s6 + $0x2c] ss:$20 sps:$4 sm:$0xff]   ;;  %v1260_v40 = vld [vmem:[%s1420_s6 + $0x28] ss:$20 sps:$4 sm:$0xff]   ;;  %v1269_v44 = vld [vmem:[%s1502_s1 + $0x110] sm:$0xff]  }
  0x14   : > { %1103 = vmatpush3.bf16.msra.mxu0 %v1231_v14  ;;  %v1263_v42 = vld [vmem:[%s1420_s6 + $0x54] ss:$20 sps:$4 sm:$0xff]   ;;  %v1265_v43 = vld [vmem:[%s1420_s6 + $0x5c] ss:$20 sps:$4 sm:$0xff]   ;;  %v1268_v47 = vld [vmem:[%s1420_s6 + $0x58] ss:$20 sps:$4 sm:$0xff]  }
  0x15   : > { %1143 = vmatpush3.bf16.msra.mxu1 %v1232_v15  ;;  %1104 = vmatprep.subr.bf16.mxu0 %v1233_v16  ;;  %v1276_v45 = vld [vmem:[%s1502_s1 + $0x118] sm:$0xff]   ;;  %v1267_v46 = vld [vmem:[%s1420_s6 + $0x50] ss:$20 sps:$4 sm:$0xff]   ;;  %v1275_v51 = vld [vmem:[%s1420_s6 + $0x80] ss:$20 sps:$4 sm:$0xff]  }
  0x16   : > { %1144 = vmatprep.subr.bf16.mxu1 %v1234_v17  ;;  %v1270_v48 = vld [vmem:[%s1420_s6 + $0x7c] ss:$20 sps:$4 sm:$0xff]   ;;  %v1272_v49 = vld [vmem:[%s1420_s6 + $0x84] ss:$20 sps:$4 sm:$0xff]   ;;  %v1278_v53 = vld [vmem:[%s1420_s6 + $0x60] ss:$20 sps:$4 sm:$0xff]  }
  0x17   : > { %v1274_v50 = vld [vmem:[%s1420_s6 + $0x78] ss:$20 sps:$4 sm:$0xff]   ;;  %v1277_v52 = vld [vmem:[%s1420_s6 + $0x10] ss:$20 sps:$4 sm:$0xff]   ;;  %v1280_v55 = vld [vmem:[%s1420_s6 + $0x88] ss:$20 sps:$4 sm:$0xff]  }
  0x18   : > { %1105 = vmatpush3.bf16.msra.mxu0 %v1235_v18  ;;  %v1279_v54 = vld [vmem:[%s1420_s6 + $0x38] ss:$20 sps:$4 sm:$0xff]  }
  0x19   : > { %1145 = vmatpush3.bf16.msra.mxu1 %v1236_v19  ;;  %1106 = vmatprep.subr.bf16.mxu0 %v1237_v20 }
  0x1a   : > { %1146 = vmatprep.subr.bf16.mxu1 %v1238_v21 }
  0x1c   : > { %1107 = vmatpush3.bf16.msra.mxu0 %v1239_v22 }
  0x1d   : > { %1147 = vmatpush3.bf16.msra.mxu1 %v1240_v23  ;;  %1108 = vmatprep.subr.bf16.mxu0 %v1241_v24 }
  0x1e   : > { %1148 = vmatprep.subr.bf16.mxu1 %v1242_v25 }
  0x20   : > { %1109 = vmatpush3.bf16.msra.mxu0 %v1243_v26 }
  0x21   : > { %1149 = vmatpush3.bf16.msra.mxu1 %v1244_v27  ;;  %1110 = vmatprep.subr.bf16.mxu0 %v1245_v28 }
  0x22   : > { %1150 = vmatprep.subr.bf16.mxu1 %v1246_v29 }
  0x24   : > { %1111 = vmatpush3.bf16.msra.mxu0 %v1247_v30 }
  0x25   : > { %1151 = vmatpush3.bf16.msra.mxu1 %v1248_v31  ;;  %1184 = vmatprep.subr.bf16.mxu0 %v1255_v36 }
  0x26   : > { %1200 = vmatprep.subr.bf16.mxu1 %v1255_v36 }
  0x27   : > { %692 = vmatmul.mubr.bf16.vlgmr.msra.gmra.mrb[0].mxu0 %v1249_v32 }
  0x28   : > { %757 = vmatmul.mubr.bf16.vlgmr.msra.gmra.mrb[0].mxu1 %v1252_v34  ;;  %1185 = vmatpush3.bf16.msra.mxu0 %v1255_v36 }
  0x29   : > { %1204 = vmatpush3.bf16.msra.mxu1 %v1255_v36  ;;  %699 = vmatprep.mubr.bf16.mxu0 %v1256_v37 }
  0x2a   : > { %764 = vmatprep.mubr.bf16.mxu1 %v1258_v38  ;;  %1186 = vmatprep.subr.bf16.mxu0 %v1262_v39 }
  0x2b   : > { %1201 = vmatprep.subr.bf16.mxu1 %v1262_v39 }
  0x2c   : > { %1187 = vmatpush3.bf16.msra.mxu0 %v1262_v39 }
  0x2d   : > { %1205 = vmatpush3.bf16.msra.mxu1 %v1262_v39  ;;  %1188 = vmatprep.subr.bf16.mxu0 %v1269_v44 }
  0x2e   : > { %1202 = vmatprep.subr.bf16.mxu1 %v1269_v44 }
  0x2f   : > { %700 = vmatmul.mubr.bf16.gmra.mrb[4].mxu0 %v1260_v40 }
  0x30   : > { %765 = vmatmul.mubr.bf16.gmra.mrb[4].mxu1 %v1261_v41  ;;  %707 = vmatprep.mubr.bf16.mxu0 %v1263_v42 }
  0x31   : > { %772 = vmatprep.mubr.bf16.mxu1 %v1265_v43  ;;  %1189 = vmatpush3.bf16.msra.mxu0 %v1269_v44 }
  0x32   : > { %1206 = vmatpush3.bf16.msra.mxu1 %v1269_v44  ;;  %1190 = vmatprep.subr.bf16.mxu0 %v1276_v45 }
  0x33   : > { %1203 = vmatprep.subr.bf16.mxu1 %v1276_v45 }
  0x35   : > { %1191 = vmatpush3.bf16.msra.mxu0 %v1276_v45 }
  0x36   : > { %1207 = vmatpush3.bf16.msra.mxu1 %v1276_v45 }
  0x37   : > { %708 = vmatmul.mubr.bf16.gmra.mrb[8].mxu0 %v1267_v46 }
  0x38   : > { %773 = vmatmul.mubr.bf16.gmra.mrb[8].mxu1 %v1268_v47  ;;  %715 = vmatprep.mubr.bf16.mxu0 %v1270_v48 }
  0x39   : > { %780 = vmatprep.mubr.bf16.mxu1 %v1272_v49 }
  0x3f   : > { %716 = vmatmul.mubr.bf16.gmra.mrb[12].mxu0 %v1274_v50 }
  0x40   : > { %781 = vmatmul.mubr.bf16.gmra.mrb[12].mxu1 %v1275_v51  ;;  %1192 = vmatprep.mubr.msk.bf16.mxu0 %vm646_vm0, %v1277_v52 }
  0x41   : > { %1196 = vmatprep.mubr.msk.bf16.mxu1 %vm646_vm0, %v1278_v53  ;;  %v1093_v53 = vld [vmem:[%s218_s27 + $0x8] sm:$0xff]  }
  0x47   : > { %1193 = vmatmul.mubr.msk.bf16.vlgmr.msra.gmra.mrb[16].mxu0 %vm646_vm0, %v1279_v54 }
  0x48   : > { %1197 = vmatmul.mubr.msk.bf16.vlgmr.msra.gmra.mrb[16].mxu1 %vm646_vm0, %v1280_v55  ;;  %v1095_v55 = vld [vmem:[%s218_s27 + $0x18] sm:$0xff]  }
  0xfa   : > { %v1112_v56 = vpop.f32.mrb[0].mxu0 }
  0xfb   : > { %v1152_v57 = vpop.f32.mrb[0].mxu1  ;;  %v1113_v59 = vpop.f32.mrb[1].mxu0 }
  0xfc   : > { %v1114_v60 = vadd.f32 %v1113_v59, %v1112_v56  ;;  %v1153_v61 = vpop.f32.mrb[1].mxu1  ;;  %v1115_v62 = vpop.f32.mrb[2].mxu0  ;;  %v1078_v56 = vld [vmem:[%s218_s27] sm:$0xff]  }
  0xfd   : > { %v1154_v63 = vadd.f32 %v1153_v61, %v1152_v57  ;;  %v1155_v0 = vpop.f32.mrb[2].mxu1  ;;  %v1116_v1 = vpop.f32.mrb[3].mxu0  ;;  %v1083_v61 = vunpack.c.l.bf16 %v1093_v53 }
  0xfe   : > { %v694_v2 = vadd.f32 %v1114_v60, %v1463_v58  ;;  %v1117_v3 = vadd.f32 %v1116_v1, %v1115_v62  ;;  %v1156_v4 = vpop.f32.mrb[3].mxu1  ;;  %v1094_v60 = vld [vmem:[%s218_s27 + $0x10] sm:$0xff]  }
  0xff   : > { %v1157_v5 = vadd.f32 %v1156_v4, %v1155_v0  ;;  %v1079_v0 = vunpack.c.l.bf16 %v1078_v56 }
 0x100   : > { %v697_v6 = vadd.f32 %v1117_v3, %v1463_v58  ;;  %v1467_v7 = vadd.f32 %v1154_v63, %v694_v2  ;;  %v1091_v63 = vunpack.c.l.bf16 %v1095_v55 }
 0x102   : > { %v1118_v8 = vpop.f32.mrb[4].mxu0  ;;  %v1469_v9 = vadd.f32 %v1157_v5, %v697_v6  ;;  %v1087_v5 = vunpack.c.l.bf16 %v1094_v60  ;;  %v1084_v6 = vunpack.c.h.bf16 %v1093_v53 }
 0x103   : > { %v1158_v10 = vpop.f32.mrb[4].mxu1  ;;  %v1119_v11 = vpop.f32.mrb[5].mxu0 }
 0x104   : > { %v1120_v12 = vadd.f32 %v1119_v11, %v1118_v8  ;;  %v1159_v13 = vpop.f32.mrb[5].mxu1  ;;  %v1121_v14 = vpop.f32.mrb[6].mxu0  ;;  %v1092_v8 = vunpack.c.h.bf16 %v1095_v55 }
 0x105   : > { %v1160_v15 = vadd.f32 %v1159_v13, %v1158_v10  ;;  %v1161_v16 = vpop.f32.mrb[6].mxu1  ;;  %v1122_v17 = vpop.f32.mrb[7].mxu0  ;;  %v1080_v13 = vunpack.c.h.bf16 %v1078_v56 }
 0x106   : > { %v702_v18 = vadd.f32 %v1120_v12, %v1463_v58  ;;  %v1123_v19 = vadd.f32 %v1122_v17, %v1121_v14  ;;  %v1162_v20 = vpop.f32.mrb[7].mxu1 }
 0x107   : > { %v1163_v21 = vadd.f32 %v1162_v20, %v1161_v16 }
 0x108   : > { %v705_v22 = vadd.f32 %v1123_v19, %v1463_v58  ;;  %v767_v23 = vadd.f32 %v1160_v15, %v702_v18  ;;  %v1088_v19 = vunpack.c.h.bf16 %v1094_v60 }
 0x10a   : > { %v1124_v24 = vpop.f32.mrb[8].mxu0  ;;  %v770_v25 = vadd.f32 %v1163_v21, %v705_v22 }
 0x10b   : > { %v1164_v26 = vpop.f32.mrb[8].mxu1  ;;  %v1125_v27 = vpop.f32.mrb[9].mxu0 }
 0x10c   : > { %v1126_v28 = vadd.f32 %v1125_v27, %v1124_v24  ;;  %v1165_v29 = vpop.f32.mrb[9].mxu1  ;;  %v1127_v30 = vpop.f32.mrb[10].mxu0 }
 0x10d   : > { %v1166_v31 = vadd.f32 %v1165_v29, %v1164_v26  ;;  %v1167_v32 = vpop.f32.mrb[10].mxu1  ;;  %v1128_v33 = vpop.f32.mrb[11].mxu0 }
 0x10e   : > { %v710_v34 = vadd.f32 %v1126_v28, %v1463_v58  ;;  %v1129_v35 = vadd.f32 %v1128_v33, %v1127_v30  ;;  %v1168_v36 = vpop.f32.mrb[11].mxu1 }
 0x10f   : > { %v1169_v37 = vadd.f32 %v1168_v36, %v1167_v32 }
 0x110   : > { %v713_v38 = vadd.f32 %v1129_v35, %v1463_v58  ;;  %v775_v39 = vadd.f32 %v1166_v31, %v710_v34 }
 0x112   : > { %v1130_v40 = vpop.f32.mrb[12].mxu0  ;;  %v778_v41 = vadd.f32 %v1169_v37, %v713_v38 }
 0x113   : > { %v1170_v42 = vpop.f32.mrb[12].mxu1  ;;  %v1131_v43 = vpop.f32.mrb[13].mxu0 }
 0x114   : > { %v1132_v44 = vadd.f32 %v1131_v43, %v1130_v40  ;;  %v1171_v45 = vpop.f32.mrb[13].mxu1  ;;  %v1133_v46 = vpop.f32.mrb[14].mxu0 }
 0x115   : > { %v1172_v47 = vadd.f32 %v1171_v45, %v1170_v42  ;;  %v1173_v48 = vpop.f32.mrb[14].mxu1  ;;  %v1134_v49 = vpop.f32.mrb[15].mxu0 }
 0x116   : > { %v718_v50 = vadd.f32 %v1132_v44, %v1463_v58  ;;  %v1135_v51 = vadd.f32 %v1134_v49, %v1133_v46  ;;  %v1174_v52 = vpop.f32.mrb[15].mxu1 }
 0x117   : > { %v1175_v54 = vadd.f32 %v1174_v52, %v1173_v48 }
 0x118   : > { %v721_v57 = vadd.f32 %v1135_v51, %v1463_v58  ;;  %v783_v59 = vadd.f32 %v1172_v47, %v718_v50 }
 0x11a   : > { %v1194_v62 = vpop.f32.mrb[16].mxu0  ;;  %v786_v1 = vadd.f32 %v1175_v54, %v721_v57 }
 0x11b   : > { %v832_v2 = vadd.f32 %v1194_v62, %v767_v23  ;;  %v1198_v3 = vpop.f32.mrb[16].mxu1  ;;  %v823_v4 = vpop.f32.mrb[17].mxu0 }
 0x11c   : > { %v848_v10 = vadd.f32 %v1198_v3, %v783_v59  ;;  %v824_v11 = vadd.f32 %v823_v4, %v1467_v7  ;;  %v839_v12 = vpop.f32.mrb[17].mxu1  ;;  %v1195_v58 = vpop.f32.mrb[18].mxu0 }
 0x11d   : > { %v872_v14 = vadd.f32 %v1083_v61, %v832_v2  ;;  %v840_v15 = vadd.f32 %v839_v12, %v775_v39  ;;  %v835_v16 = vadd.f32 %v1195_v58, %v770_v25  ;;  %v1199_v17 = vpop.f32.mrb[18].mxu1  ;;  %v826_v18 = vpop.f32.mrb[19].mxu0 }
 0x11e   : > { %v876_v20 = vadd.f32 %v1091_v63, %v848_v10  ;;  %v870_v21 = vadd.f32 %v1079_v0, %v824_v11  ;;  %v851_v22 = vadd.f32 %v1199_v17, %v786_v1  ;;  %v827_v23 = vadd.f32 %v826_v18, %v1469_v9  ;;  %v842_v7 = vpop.f32.mrb[19].mxu1 }
 0x11f   : > { %v1071_v24 = vpack.c.bf16 %v872_v14, %v872_v14  ;;  %v874_v26 = vadd.f32 %v1087_v5, %v840_v15  ;;  %v873_v27 = vadd.f32 %v1084_v6, %v835_v16  ;;  %v843_v28 = vadd.f32 %v842_v7, %v778_v41 }
 0x120   : > { %v1075_v29 = vpack.c.bf16 %v876_v20, %v876_v20  ;;  %v1069_v25 = vpack.c.bf16 %v870_v21, %v870_v21  ;;  %v877_v30 = vadd.f32 %v1092_v8, %v851_v22  ;;  %v871_v31 = vadd.f32 %v1080_v13, %v827_v23 }
 0x121   : > { %913 = vst.msk [vmem:[%s224_s30 + $0x8] sm:$0xf] %vm910_vm1, %v1071_v24  ;;  %v1073_v32 = vpack.c.bf16 %v874_v26, %v874_v26  ;;  %v1072_v33 = vpack.c.bf16 %v873_v27, %v873_v27  ;;  %v875_v34 = vadd.f32 %v1088_v19, %v843_v28 }
 0x122   : > { %917 = vst.msk [vmem:[%s224_s30 + $0x18] sm:$0xf] %vm910_vm1, %v1075_v29  ;;  %911 = vst.msk [vmem:[%s224_s30] sm:$0xf] %vm910_vm1, %v1069_v25  ;;  %v1076_v35 = vpack.c.bf16 %v877_v30, %v877_v30  ;;  %v1070_v9 = vpack.c.bf16 %v871_v31, %v871_v31 }
 0x123   : > { %915 = vst.msk [vmem:[%s224_s30 + $0x10] sm:$0xf] %vm910_vm1, %v1073_v32  ;;  %914 = vst.msk [vmem:[%s224_s30 + $0xc] sm:$0xf] %vm910_vm1, %v1072_v33  ;;  %v1074_v36 = vpack.c.bf16 %v875_v34, %v875_v34 }
 0x124   : > { %918 = vst.msk [vmem:[%s224_s30 + $0x1c] sm:$0xf] %vm910_vm1, %v1076_v35  ;;  %912 = vst.msk [vmem:[%s224_s30 + $0x4] sm:$0xf] %vm910_vm1, %v1070_v9 }
 0x125   : > { %916 = vst.msk [vmem:[%s224_s30 + $0x14] sm:$0xf] %vm910_vm1, %v1074_v36 }
 0x126 PF: > { %s14_s15 = sadd.s32 1, %s1287_s15  }
 0x127   : > { %p11_p4 = scmp.ge.s32.totalorder %s14_s15, 4  }
 0x129   :  { %13 = sbr.rel (!%p11_p4) target bundleno = 1 (0x1), region = 69 }

// kernel: sekd_forward.20
= control target key start
LH: loop header
LB: loop body
LE: loop exit
PB: predicated region body
PF: predicated region fallthrough
CT: control target
= control target key end

     0   :  { %vm151_vm0 = vcmask 523264   ;;  %s1096_s3 = inlined_call_operand.vmem [shape: bf16[64,128], index: 3, kind: input, shape index: {}]   ;;  %s1097_s1 = inlined_call_operand.vmem [shape: bf16[576,128], index: 1, kind: input, shape index: {}]   ;;  %s1098_s4 = inlined_call_operand.vmem [shape: bf16[32,64], index: 4, kind: input, shape index: {}]   ;;  %s1099_s0 = inlined_call_operand.vmem [shape: bf16[32,576], index: 0, kind: input, shape index: {}]   ;;  %s1100_s2 = inlined_call_operand.vmem [shape: f32[1,128], index: 2, kind: input, shape index: {}]   ;;  %s1101_s5 = inlined_call_operand.vmem [shape: bf16[32,128], index: 5, kind: output, shape index: {}]  }
   0x1   :  { %v841_v0 = vld [vmem:[%s1096_s3] sm:$0xff]   ;;  %v842_v1 = vld [vmem:[%s1096_s3 + $0x8] sm:$0xff]   ;;  %v845_v4 = vld [vmem:[%s1096_s3 + $0x10] sm:$0xff]  }
   0x2   :  { %805 = vmatprep.subr.bf16.mxu1 %v841_v0  ;;  %v843_v2 = vld [vmem:[%s1097_s1 + $0xc0] sm:$0xff]   ;;  %v846_v5 = vld [vmem:[%s1097_s1 + $0xc8] sm:$0xff]   ;;  %v848_v7 = vld [vmem:[%s1096_s3 + $0x18] sm:$0xff]  }
   0x3   :  { %806 = vmatpush3.bf16.msra.mxu1 %v841_v0  ;;  %v844_v3 = vld [vmem:[%s1097_s1 + $0x80] sm:$0xff]   ;;  %771 = vmatprep.subr.bf16.mxu0 %v843_v2  ;;  %v847_v6 = vld [vmem:[%s1097_s1 + $0x88] sm:$0xff]   ;;  %v849_v8 = vld [vmem:[%s1097_s1 + $0xd0] sm:$0xff]  }
   0x4   :  { %807 = vmatprep.subr.bf16.mxu1 %v842_v1  ;;  %772 = vmatpush3.bf16.msra.mxu0 %v844_v3  ;;  %v850_v9 = vld [vmem:[%s1098_s4] sm:$0xff]   ;;  %v851_v10 = vld [vmem:[%s1097_s1 + $0x90] sm:$0xff]   ;;  %v852_v11 = vld [vmem:[%s1098_s4 + $0x8] sm:$0xff]  }
   0x5   :  { %773 = vmatprep.subr.bf16.mxu0 %v846_v5  ;;  %813 = vmatprep.mubr.msk.bf16.mxu1 %vm151_vm0, %v850_v9  ;;  %v853_v12 = vld [vmem:[%s1097_s1 + $0x40] sm:$0xff]   ;;  %v855_v14 = vld [vmem:[%s1097_s1 + $0xd8] sm:$0xff]   ;;  %v857_v16 = vld [vmem:[%s1097_s1 + $0x48] sm:$0xff]  }
   0x6   :  { %v854_v13 = vld [vmem:[%s1097_s1] sm:$0xff]   ;;  %v856_v15 = vld [vmem:[%s1097_s1 + $0x98] sm:$0xff]   ;;  %v858_v17 = vld [vmem:[%s1097_s1 + $0x8] sm:$0xff]  }
   0x7   :  { %808 = vmatpush3.bf16.msra.mxu1 %v842_v1  ;;  %v859_v18 = vld [vmem:[%s1097_s1 + $0xe0] sm:$0xff]   ;;  %v861_v20 = vld [vmem:[%s1097_s1 + $0x50] sm:$0xff]   ;;  %v863_v22 = vld [vmem:[%s1097_s1 + $0xe8] sm:$0xff]  }
   0x8   :  { %809 = vmatprep.subr.bf16.mxu1 %v845_v4  ;;  %774 = vmatpush3.bf16.msra.mxu0 %v847_v6  ;;  %v860_v19 = vld [vmem:[%s1097_s1 + $0xa0] sm:$0xff]   ;;  %v862_v21 = vld [vmem:[%s1097_s1 + $0x10] sm:$0xff]   ;;  %v864_v23 = vld [vmem:[%s1097_s1 + $0xa8] sm:$0xff]  }
   0x9   :  { %775 = vmatprep.subr.bf16.mxu0 %v849_v8  ;;  %v865_v24 = vld [vmem:[%s1097_s1 + $0x58] sm:$0xff]   ;;  %v867_v26 = vld [vmem:[%s1097_s1 + $0xf0] sm:$0xff]   ;;  %v869_v28 = vld [vmem:[%s1097_s1 + $0x60] sm:$0xff]  }
   0xa   :  { %v866_v25 = vld [vmem:[%s1097_s1 + $0x18] sm:$0xff]   ;;  %v868_v27 = vld [vmem:[%s1097_s1 + $0xb0] sm:$0xff]   ;;  %v870_v29 = vld [vmem:[%s1097_s1 + $0x20] sm:$0xff]  }
   0xb   :  { %810 = vmatpush3.bf16.msra.mxu1 %v845_v4  ;;  %v871_v30 = vld [vmem:[%s1097_s1 + $0xf8] sm:$0xff]   ;;  %v873_v32 = vld [vmem:[%s1097_s1 + $0x68] sm:$0xff]   ;;  %v878_v36 = vld [vmem:[%s1097_s1 + $0x100] sm:$0xff]  }
   0xc   :  { %811 = vmatprep.subr.bf16.mxu1 %v848_v7  ;;  %776 = vmatpush3.bf16.msra.mxu0 %v851_v10  ;;  %v872_v31 = vld [vmem:[%s1097_s1 + $0xb8] sm:$0xff]   ;;  %v874_v33 = vld [vmem:[%s1097_s1 + $0x28] sm:$0xff]   ;;  %v879_v37 = vld [vmem:[%s1097_s1 + $0x70] sm:$0xff]  }
   0xd   :  { %777 = vmatprep.subr.bf16.mxu0 %v855_v14  ;;  %v875_v34 = vld [vmem:[%s1099_s0 + $0x8] ss:$20 sps:$4 sm:$0xff]   ;;  %v877_v35 = vld [vmem:[%s1099_s0 + $0xc] ss:$20 sps:$4 sm:$0xff]   ;;  %v880_v38 = vld [vmem:[%s1097_s1 + $0x30] sm:$0xff]  }
   0xe   :  { %560 = vmatprep.mubr.bf16.mxu0 %v877_v35  ;;  %v881_v39 = vld [vmem:[%s1097_s1 + $0x108] sm:$0xff]   ;;  %v882_v40 = vld [vmem:[%s1097_s1 + $0x78] sm:$0xff]   ;;  %v886_v43 = vld [vmem:[%s1099_s0 + $0x30] ss:$20 sps:$4 sm:$0xff]  }
   0xf   :  { %812 = vmatpush3.bf16.msra.mxu1 %v848_v7  ;;  %v883_v41 = vld [vmem:[%s1097_s1 + $0x38] sm:$0xff]   ;;  %v884_v42 = vld [vmem:[%s1099_s0 + $0x34] ss:$20 sps:$4 sm:$0xff]   ;;  %v892_v48 = vld [vmem:[%s1099_s0 + $0x10] ss:$20 sps:$4 sm:$0xff]  }
  0x10   :  { %743 = vmatprep.subr.bf16.mxu1 %v853_v12  ;;  %778 = vmatpush3.bf16.msra.mxu0 %v856_v15  ;;  %v887_v44 = vld [vmem:[%s1097_s1 + $0x110] sm:$0xff]   ;;  %v890_v46 = vld [vmem:[%s1099_s0 + $0x4] ss:$20 sps:$4 sm:$0xff]   ;;  %v894_v49 = vld [vmem:[%s1099_s0 + $0x2c] ss:$20 sps:$4 sm:$0xff]  }
  0x11   :  { %779 = vmatprep.subr.bf16.mxu0 %v859_v18  ;;  %v888_v45 = vld [vmem:[%s1099_s0] ss:$20 sps:$4 sm:$0xff]   ;;  %v891_v47 = vld [vmem:[%s1097_s1 + $0x118] sm:$0xff]  }
  0x12   :  { %814 = vmatmul.mubr.msk.bf16.vlgmr.msra.gmra.mrb[0].mxu1 %vm151_vm0, %v852_v11  ;;  %v893_v50 = vld [vmem:[%s1099_s0 + $0x38] ss:$20 sps:$4 sm:$0xff]   ;;  %v896_v51 = vld [vmem:[%s1099_s0 + $0x28] ss:$20 sps:$4 sm:$0xff]  }
  0x13   :  { %744 = vmatpush3.bf16.msra.mxu1 %v854_v13  ;;  %511 = vmatprep.mubr.bf16.mxu1 %v890_v46 }
  0x14   :  { %745 = vmatprep.subr.bf16.mxu1 %v857_v16  ;;  %780 = vmatpush3.bf16.msra.mxu0 %v860_v19 }
  0x15   :  { %781 = vmatprep.subr.bf16.mxu0 %v863_v22 }
  0x17   :  { %746 = vmatpush3.bf16.msra.mxu1 %v858_v17 }
  0x18   :  { %747 = vmatprep.subr.bf16.mxu1 %v861_v20  ;;  %782 = vmatpush3.bf16.msra.mxu0 %v864_v23  ;;  %v717_v20 = vld [vmem:[%s1100_s2] ss:$0 sm:$0xff] }
  0x19   :  { %783 = vmatprep.subr.bf16.mxu0 %v867_v26 }
  0x1b   :  { %748 = vmatpush3.bf16.msra.mxu1 %v862_v21 }
  0x1c   :  { %749 = vmatprep.subr.bf16.mxu1 %v865_v24  ;;  %784 = vmatpush3.bf16.msra.mxu0 %v868_v27 }
  0x1d   :  { %785 = vmatprep.subr.bf16.mxu0 %v871_v30 }
  0x1f   :  { %750 = vmatpush3.bf16.msra.mxu1 %v866_v25 }
  0x20   :  { %751 = vmatprep.subr.bf16.mxu1 %v869_v28  ;;  %786 = vmatpush3.bf16.msra.mxu0 %v872_v31 }
  0x21   :  { %817 = vmatprep.subr.bf16.mxu0 %v878_v36 }
  0x23   :  { %752 = vmatpush3.bf16.msra.mxu1 %v870_v29  ;;  %561 = vmatmul.mubr.bf16.vlgmr.msra.gmra.mrb[0].mxu0 %v875_v34 }
  0x24   :  { %753 = vmatprep.subr.bf16.mxu1 %v873_v32  ;;  %818 = vmatpush3.bf16.msra.mxu0 %v878_v36 }
  0x25   :  { %819 = vmatprep.subr.bf16.mxu0 %v881_v39  ;;  %568 = vmatprep.mubr.bf16.mxu0 %v884_v42 }
  0x27   :  { %754 = vmatpush3.bf16.msra.mxu1 %v874_v33 }
  0x28   :  { %755 = vmatprep.subr.bf16.mxu1 %v879_v37  ;;  %820 = vmatpush3.bf16.msra.mxu0 %v881_v39 }
  0x29   :  { %821 = vmatprep.subr.bf16.mxu0 %v887_v44 }
  0x2b   :  { %756 = vmatpush3.bf16.msra.mxu1 %v880_v38  ;;  %569 = vmatmul.mubr.bf16.gmra.mrb[4].mxu0 %v886_v43 }
  0x2c   :  { %757 = vmatprep.subr.bf16.mxu1 %v882_v40  ;;  %822 = vmatpush3.bf16.msra.mxu0 %v887_v44 }
  0x2d   :  { %823 = vmatprep.subr.bf16.mxu0 %v891_v47  ;;  %825 = vmatprep.mubr.msk.bf16.mxu0 %vm151_vm0, %v892_v48 }
  0x2f   :  { %758 = vmatpush3.bf16.msra.mxu1 %v883_v41 }
  0x30   :  { %824 = vmatpush3.bf16.msra.mxu0 %v891_v47 }
  0x32   :  { %512 = vmatmul.mubr.bf16.vlgmr.msra.gmra.mrb[4].mxu1 %v888_v45 }
  0x33   :  { %519 = vmatprep.mubr.bf16.mxu1 %v894_v49  ;;  %826 = vmatmul.mubr.msk.bf16.vlgmr.msra.gmra.mrb[8].mxu0 %vm151_vm0, %v893_v50 }
  0x3a   :  { %520 = vmatmul.mubr.bf16.gmra.mrb[8].mxu1 %v896_v51 }
  0xe5   :  { %v815_v52 = vpop.f32.mrb[0].mxu1 }
  0xe6   :  { %v192_v53 = vpop.f32.mrb[1].mxu1 }
  0xe7   :  { %v816_v54 = vpop.f32.mrb[2].mxu1 }
  0xe8   :  { %v195_v55 = vpop.f32.mrb[3].mxu1 }
  0xf6   :  { %v787_v56 = vpop.f32.mrb[0].mxu0 }
  0xf7   :  { %v788_v57 = vpop.f32.mrb[1].mxu0 }
  0xf8   :  { %v789_v58 = vadd.f32 %v788_v57, %v787_v56  ;;  %v790_v59 = vpop.f32.mrb[2].mxu0 }
  0xf9   :  { %v791_v60 = vpop.f32.mrb[3].mxu0 }
  0xfa   :  { %v792_v61 = vadd.f32 %v791_v60, %v790_v59 }
  0xfe   :  { %v793_v62 = vpop.f32.mrb[4].mxu0 }
  0xff   :  { %v794_v63 = vpop.f32.mrb[5].mxu0 }
 0x100   :  { %v795_v0 = vadd.f32 %v794_v63, %v793_v62  ;;  %v796_v1 = vpop.f32.mrb[6].mxu0 }
 0x101   :  { %v797_v2 = vpop.f32.mrb[7].mxu0 }
 0x102   :  { %v798_v4 = vadd.f32 %v797_v2, %v796_v1 }
 0x105   :  { %v759_v3 = vpop.f32.mrb[4].mxu1 }
 0x106   :  { %v760_v5 = vpop.f32.mrb[5].mxu1  ;;  %v827_v11 = vpop.f32.mrb[8].mxu0 }
 0x107   :  { %v761_v6 = vadd.f32 %v760_v5, %v759_v3  ;;  %v762_v7 = vpop.f32.mrb[6].mxu1  ;;  %v611_v12 = vpop.f32.mrb[9].mxu0 }
 0x108   :  { %v763_v8 = vpop.f32.mrb[7].mxu1  ;;  %v828_v15 = vpop.f32.mrb[10].mxu0 }
 0x109   :  { %v514_v9 = vadd.f32 %v761_v6, %v192_v53  ;;  %v764_v10 = vadd.f32 %v763_v8, %v762_v7  ;;  %v614_v16 = vpop.f32.mrb[11].mxu0 }
 0x10b   :  { %v517_v13 = vadd.f32 %v764_v10, %v195_v55  ;;  %v563_v14 = vadd.f32 %v789_v58, %v514_v9 }
 0x10d   :  { %v612_v17 = vadd.f32 %v611_v12, %v563_v14  ;;  %v765_v18 = vpop.f32.mrb[8].mxu1  ;;  %v566_v19 = vadd.f32 %v792_v61, %v517_v13 }
 0x10e   :  { %v766_v21 = vpop.f32.mrb[9].mxu1 }
 0x10f   :  { %v767_v22 = vadd.f32 %v766_v21, %v765_v18  ;;  %v615_v23 = vadd.f32 %v614_v16, %v566_v19  ;;  %v768_v24 = vpop.f32.mrb[10].mxu1  ;;  %v633_v26 = vadd.f32 %v717_v20, %v612_v17 }
 0x110   :  { %v769_v25 = vpop.f32.mrb[11].mxu1 }
 0x111   :  { %v522_v27 = vadd.f32 %v815_v52, %v767_v22  ;;  %v634_v28 = vadd.f32 %v717_v20, %v615_v23  ;;  %v770_v29 = vadd.f32 %v769_v25, %v768_v24 }
 0x113   :  { %v571_v30 = vadd.f32 %v795_v0, %v522_v27  ;;  %v729_v31 = vpack.c.bf16 %v634_v28, %v633_v26  ;;  %v525_v32 = vadd.f32 %v816_v54, %v770_v29 }
 0x115   :  { %v620_v33 = vadd.f32 %v827_v11, %v571_v30  ;;  %730 = vst [vmem:[%s1101_s5] sm:$0xff] %v729_v31   ;;  %v574_v34 = vadd.f32 %v798_v4, %v525_v32 }
 0x117   :  { %v623_v35 = vadd.f32 %v828_v15, %v574_v34  ;;  %v635_v36 = vadd.f32 %v717_v20, %v620_v33 }
 0x119   :  { %v636_v37 = vadd.f32 %v717_v20, %v623_v35 }
 0x11b   :  { %v734_v38 = vpack.c.bf16 %v636_v37, %v635_v36 }
 0x11d   :  { %736 = vst [vmem:[%s1101_s5 + $0x8] sm:$0xff] %v734_v38  }

// kernel: sekd_forward.25
= control target key start
LH: loop header
LB: loop body
LE: loop exit
PB: predicated region body
PF: predicated region fallthrough
CT: control target
= control target key end

     0   :  { %s1677_s0 = inlined_call_operand.vmem [shape: bf16[32,1152], index: 0, kind: input, shape index: {}]   ;;  %s1678_s1 = inlined_call_operand.vmem [shape: bf16[1152,128], index: 1, kind: input, shape index: {}]   ;;  %s1679_s2 = inlined_call_operand.vmem [shape: f32[1,128], index: 2, kind: input, shape index: {}]   ;;  %s1680_s3 = inlined_call_operand.vmem [shape: bf16[32,128], index: 3, kind: input, shape index: {}]   ;;  %s1681_s4 = inlined_call_operand.hbm [shape: f32[32,128], index: 4, kind: output, shape index: {}]  }
   0x1   :  { %v1236_v0 = vld [vmem:[%s1678_s1 + $0x40] sm:$0xff]   ;;  %v1240_v4 = vld [vmem:[%s1678_s1 + $0x48] sm:$0xff]   ;;  %v1244_v8 = vld [vmem:[%s1678_s1 + $0x50] sm:$0xff]  }
   0x2   :  { %v1237_v1 = vld [vmem:[%s1678_s1] sm:$0xff]   ;;  %1091 = vmatprep.subr.bf16.mxu0 %v1236_v0  ;;  %v1241_v5 = vld [vmem:[%s1678_s1 + $0x8] sm:$0xff]   ;;  %v1245_v9 = vld [vmem:[%s1678_s1 + $0x10] sm:$0xff]  }
   0x3   :  { %v1238_v2 = vld [vmem:[%s1678_s1 + $0xc0] sm:$0xff]   ;;  %1092 = vmatpush3.bf16.msra.mxu0 %v1237_v1  ;;  %v1242_v6 = vld [vmem:[%s1678_s1 + $0xc8] sm:$0xff]   ;;  %v1246_v10 = vld [vmem:[%s1678_s1 + $0xd0] sm:$0xff]  }
   0x4   :  { %v1239_v3 = vld [vmem:[%s1678_s1 + $0x80] sm:$0xff]   ;;  %1119 = vmatprep.subr.bf16.mxu1 %v1238_v2  ;;  %1093 = vmatprep.subr.bf16.mxu0 %v1240_v4  ;;  %v1243_v7 = vld [vmem:[%s1678_s1 + $0x88] sm:$0xff]   ;;  %v1247_v11 = vld [vmem:[%s1678_s1 + $0x90] sm:$0xff]  }
   0x5   :  { %1120 = vmatpush3.bf16.msra.mxu1 %v1239_v3  ;;  %v1248_v12 = vld [vmem:[%s1678_s1 + $0x58] sm:$0xff]   ;;  %v1252_v16 = vld [vmem:[%s1678_s1 + $0x60] sm:$0xff]   ;;  %v1256_v20 = vld [vmem:[%s1678_s1 + $0x68] sm:$0xff]  }
   0x6   :  { %1121 = vmatprep.subr.bf16.mxu1 %v1242_v6  ;;  %v1249_v13 = vld [vmem:[%s1678_s1 + $0x18] sm:$0xff]   ;;  %v1253_v17 = vld [vmem:[%s1678_s1 + $0x20] sm:$0xff]   ;;  %v1257_v21 = vld [vmem:[%s1678_s1 + $0x28] sm:$0xff]  }
   0x7   :  { %1094 = vmatpush3.bf16.msra.mxu0 %v1241_v5  ;;  %v1250_v14 = vld [vmem:[%s1678_s1 + $0xd8] sm:$0xff]   ;;  %v1254_v18 = vld [vmem:[%s1678_s1 + $0xe0] sm:$0xff]   ;;  %v1258_v22 = vld [vmem:[%s1678_s1 + $0xe8] sm:$0xff]  }
   0x8   :  { %1095 = vmatprep.subr.bf16.mxu0 %v1244_v8  ;;  %v1251_v15 = vld [vmem:[%s1678_s1 + $0x98] sm:$0xff]   ;;  %v1255_v19 = vld [vmem:[%s1678_s1 + $0xa0] sm:$0xff]   ;;  %v1259_v23 = vld [vmem:[%s1678_s1 + $0xa8] sm:$0xff]  }
   0x9   :  { %1122 = vmatpush3.bf16.msra.mxu1 %v1243_v7  ;;  %v1260_v24 = vld [vmem:[%s1678_s1 + $0x70] sm:$0xff]   ;;  %v1264_v28 = vld [vmem:[%s1678_s1 + $0x78] sm:$0xff]   ;;  %v1267_v31 = vld [vmem:[%s1677_s0] ss:$36 sps:$4 sm:$0xff]  }
   0xa   :  { %1123 = vmatprep.subr.bf16.mxu1 %v1246_v10  ;;  %v1261_v25 = vld [vmem:[%s1678_s1 + $0x30] sm:$0xff]   ;;  %v1265_v29 = vld [vmem:[%s1678_s1 + $0x38] sm:$0xff]   ;;  %v1269_v32 = vld [vmem:[%s1677_s0 + $0x4] ss:$36 sps:$4 sm:$0xff]  }
   0xb   :  { %1096 = vmatpush3.bf16.msra.mxu0 %v1245_v9  ;;  %v1262_v26 = vld [vmem:[%s1678_s1 + $0xf0] sm:$0xff]   ;;  %v1266_v30 = vld [vmem:[%s1678_s1 + $0xf8] sm:$0xff]   ;;  %746 = vmatprep.mubr.bf16.mxu0 %v1269_v32  ;;  %v1271_v34 = vld [vmem:[%s1678_s1 + $0x140] sm:$0xff]  }
   0xc   :  { %1097 = vmatprep.subr.bf16.mxu0 %v1248_v12  ;;  %v1263_v27 = vld [vmem:[%s1678_s1 + $0xb0] sm:$0xff]   ;;  %v1270_v33 = vld [vmem:[%s1678_s1 + $0xb8] sm:$0xff]   ;;  %v1272_v35 = vld [vmem:[%s1677_s0 + $0x8] ss:$36 sps:$4 sm:$0xff]  }
   0xd   :  { %1124 = vmatpush3.bf16.msra.mxu1 %v1247_v11  ;;  %v1274_v36 = vld [vmem:[%s1677_s0 + $0xc] ss:$36 sps:$4 sm:$0xff]   ;;  %v1275_v37 = vld [vmem:[%s1678_s1 + $0x100] sm:$0xff]   ;;  %v1286_v48 = vld [vmem:[%s1678_s1 + $0x158] sm:$0xff]  }
   0xe   :  { %1125 = vmatprep.subr.bf16.mxu1 %v1250_v14  ;;  %795 = vmatprep.mubr.bf16.mxu1 %v1274_v36  ;;  %v1276_v38 = vld [vmem:[%s1678_s1 + $0x1c0] sm:$0xff]   ;;  %v1278_v40 = vld [vmem:[%s1678_s1 + $0x148] sm:$0xff]   ;;  %v1282_v44 = vld [vmem:[%s1678_s1 + $0x150] sm:$0xff]  }
   0xf   :  { %1098 = vmatpush3.bf16.msra.mxu0 %v1249_v13  ;;  %v1277_v39 = vld [vmem:[%s1678_s1 + $0x180] sm:$0xff]   ;;  %v1279_v41 = vld [vmem:[%s1678_s1 + $0x108] sm:$0xff]   ;;  %v1283_v45 = vld [vmem:[%s1678_s1 + $0x110] sm:$0xff]  }
  0x10   :  { %1099 = vmatprep.subr.bf16.mxu0 %v1252_v16  ;;  %v1280_v42 = vld [vmem:[%s1678_s1 + $0x1c8] sm:$0xff]   ;;  %v1284_v46 = vld [vmem:[%s1678_s1 + $0x1d0] sm:$0xff]   ;;  %v1287_v49 = vld [vmem:[%s1678_s1 + $0x118] sm:$0xff]  }
  0x11   :  { %1126 = vmatpush3.bf16.msra.mxu1 %v1251_v15  ;;  %v1281_v43 = vld [vmem:[%s1678_s1 + $0x188] sm:$0xff]   ;;  %v1285_v47 = vld [vmem:[%s1678_s1 + $0x190] sm:$0xff]   ;;  %v1288_v50 = vld [vmem:[%s1678_s1 + $0x1d8] sm:$0xff]  }
  0x12   :  { %1127 = vmatprep.subr.bf16.mxu1 %v1254_v18  ;;  %v1289_v51 = vld [vmem:[%s1678_s1 + $0x198] sm:$0xff]   ;;  %v1290_v52 = vld [vmem:[%s1678_s1 + $0x160] sm:$0xff]   ;;  %v1294_v56 = vld [vmem:[%s1678_s1 + $0x168] sm:$0xff]  }
  0x13   :  { %1100 = vmatpush3.bf16.msra.mxu0 %v1253_v17  ;;  %v1291_v53 = vld [vmem:[%s1678_s1 + $0x120] sm:$0xff]   ;;  %v1295_v57 = vld [vmem:[%s1677_s0 + $0x4c] ss:$36 sps:$4 sm:$0xff]   ;;  %v1300_v61 = vld [vmem:[%s1677_s0 + $0x54] ss:$36 sps:$4 sm:$0xff]  }
  0x14   :  { %1101 = vmatprep.subr.bf16.mxu0 %v1256_v20  ;;  %v1292_v54 = vld [vmem:[%s1678_s1 + $0x1e0] sm:$0xff]   ;;  %v1297_v58 = vld [vmem:[%s1678_s1 + $0x128] sm:$0xff]   ;;  %v1303_v63 = vld [vmem:[%s1677_s0 + $0x50] ss:$36 sps:$4 sm:$0xff]  }
  0x15   :  { %1128 = vmatpush3.bf16.msra.mxu1 %v1255_v19  ;;  %v1293_v55 = vld [vmem:[%s1678_s1 + $0x1a0] sm:$0xff]   ;;  %v1298_v59 = vld [vmem:[%s1677_s0 + $0x48] ss:$36 sps:$4 sm:$0xff]   ;;  %v1304_v0 = vld [vmem:[%s1678_s1 + $0x170] sm:$0xff]  }
  0x16   :  { %1129 = vmatprep.subr.bf16.mxu1 %v1258_v22  ;;  %v1299_v60 = vld [vmem:[%s1678_s1 + $0x1e8] sm:$0xff]   ;;  %v1305_v1 = vld [vmem:[%s1678_s1 + $0x130] sm:$0xff]   ;;  %v1308_v4 = vld [vmem:[%s1678_s1 + $0x178] sm:$0xff]  }
  0x17   :  { %1102 = vmatpush3.bf16.msra.mxu0 %v1257_v21  ;;  %v1302_v62 = vld [vmem:[%s1678_s1 + $0x1a8] sm:$0xff]   ;;  %v1306_v2 = vld [vmem:[%s1678_s1 + $0x1f0] sm:$0xff]   ;;  %v1309_v5 = vld [vmem:[%s1678_s1 + $0x138] sm:$0xff]  }
  0x18   :  { %1103 = vmatprep.subr.bf16.mxu0 %v1260_v24  ;;  %v1307_v3 = vld [vmem:[%s1678_s1 + $0x1b0] sm:$0xff]   ;;  %v1310_v6 = vld [vmem:[%s1678_s1 + $0x1f8] sm:$0xff]   ;;  %v1315_v10 = vld [vmem:[%s1678_s1 + $0x200] sm:$0xff]  }
  0x19   :  { %1130 = vmatpush3.bf16.msra.mxu1 %v1259_v23  ;;  %v1311_v7 = vld [vmem:[%s1677_s0 + $0x10] ss:$36 sps:$4 sm:$0xff]   ;;  %v1314_v9 = vld [vmem:[%s1678_s1 + $0x1b8] sm:$0xff]   ;;  %v1319_v13 = vld [vmem:[%s1678_s1 + $0x208] sm:$0xff]  }
  0x1a   :  { %1131 = vmatprep.subr.bf16.mxu1 %v1262_v26  ;;  %v1313_v8 = vld [vmem:[%s1677_s0 + $0x14] ss:$36 sps:$4 sm:$0xff]   ;;  %v1318_v12 = vld [vmem:[%s1677_s0 + $0x1c] ss:$36 sps:$4 sm:$0xff]   ;;  %v1324_v17 = vld [vmem:[%s1677_s0 + $0x64] ss:$36 sps:$4 sm:$0xff]  }
  0x1b   :  { %1104 = vmatpush3.bf16.msra.mxu0 %v1261_v25  ;;  %v1316_v11 = vld [vmem:[%s1677_s0 + $0x18] ss:$36 sps:$4 sm:$0xff]   ;;  %v1323_v16 = vld [vmem:[%s1678_s1 + $0x210] sm:$0xff]   ;;  %v1326_v18 = vld [vmem:[%s1677_s0 + $0x60] ss:$36 sps:$4 sm:$0xff]  }
  0x1c   :  { %1105 = vmatprep.subr.bf16.mxu0 %v1264_v28  ;;  %v1320_v14 = vld [vmem:[%s1677_s0 + $0x5c] ss:$36 sps:$4 sm:$0xff]  }
  0x1d   :  { %1132 = vmatpush3.bf16.msra.mxu1 %v1263_v27  ;;  %v1322_v15 = vld [vmem:[%s1677_s0 + $0x58] ss:$36 sps:$4 sm:$0xff]   ;;  %v1328_v20 = vld [vmem:[%s1678_s1 + $0x220] sm:$0xff]  }
  0x1e   :  { %1133 = vmatprep.subr.bf16.mxu1 %v1266_v30  ;;  %v1327_v19 = vld [vmem:[%s1678_s1 + $0x218] sm:$0xff]   ;;  %v1332_v21 = vld [vmem:[%s1677_s0 + $0x20] ss:$36 sps:$4 sm:$0xff]  }
  0x1f   :  { %1106 = vmatpush3.bf16.msra.mxu0 %v1265_v29 }
  0x20   :  { %1147 = vmatprep.subr.bf16.mxu0 %v1271_v34 }
  0x21   :  { %1134 = vmatpush3.bf16.msra.mxu1 %v1270_v33 }
  0x22   :  { %747 = vmatmul.mubr.bf16.vlgmr.msra.gmra.mrb[0].mxu0 %v1267_v31  ;;  %1175 = vmatprep.subr.bf16.mxu1 %v1276_v38 }
  0x23   :  { %1148 = vmatpush3.bf16.msra.mxu0 %v1275_v37  ;;  %754 = vmatprep.mubr.bf16.mxu0 %v1295_v57 }
  0x24   :  { %796 = vmatmul.mubr.bf16.vlgmr.msra.gmra.mrb[0].mxu1 %v1272_v35  ;;  %1149 = vmatprep.subr.bf16.mxu0 %v1278_v40 }
  0x25   :  { %1176 = vmatpush3.bf16.msra.mxu1 %v1277_v39  ;;  %803 = vmatprep.mubr.bf16.mxu1 %v1300_v61 }
  0x26   :  { %1177 = vmatprep.subr.bf16.mxu1 %v1280_v42 }
  0x27   :  { %1150 = vmatpush3.bf16.msra.mxu0 %v1279_v41 }
  0x28   :  { %1151 = vmatprep.subr.bf16.mxu0 %v1282_v44 }
  0x29   :  { %1178 = vmatpush3.bf16.msra.mxu1 %v1281_v43 }
  0x2a   :  { %1179 = vmatprep.subr.bf16.mxu1 %v1284_v46  ;;  %755 = vmatmul.mubr.bf16.gmra.mrb[4].mxu0 %v1298_v59 }
  0x2b   :  { %1152 = vmatpush3.bf16.msra.mxu0 %v1283_v45  ;;  %844 = vmatprep.mubr.bf16.mxu0 %v1313_v8 }
  0x2c   :  { %1153 = vmatprep.subr.bf16.mxu0 %v1286_v48  ;;  %804 = vmatmul.mubr.bf16.gmra.mrb[4].mxu1 %v1303_v63 }
  0x2d   :  { %1180 = vmatpush3.bf16.msra.mxu1 %v1285_v47  ;;  %893 = vmatprep.mubr.bf16.mxu1 %v1318_v12 }
  0x2e   :  { %1181 = vmatprep.subr.bf16.mxu1 %v1288_v50 }
  0x2f   :  { %1154 = vmatpush3.bf16.msra.mxu0 %v1287_v49 }
  0x30   :  { %1155 = vmatprep.subr.bf16.mxu0 %v1290_v52 }
  0x31   :  { %1182 = vmatpush3.bf16.msra.mxu1 %v1289_v51 }
  0x32   :  { %1183 = vmatprep.subr.bf16.mxu1 %v1292_v54 }
  0x33   :  { %1156 = vmatpush3.bf16.msra.mxu0 %v1291_v53 }
  0x34   :  { %1157 = vmatprep.subr.bf16.mxu0 %v1294_v56 }
  0x35   :  { %1184 = vmatpush3.bf16.msra.mxu1 %v1293_v55 }
  0x36   :  { %1185 = vmatprep.subr.bf16.mxu1 %v1299_v60 }
  0x37   :  { %1158 = vmatpush3.bf16.msra.mxu0 %v1297_v58 }
  0x38   :  { %1159 = vmatprep.subr.bf16.mxu0 %v1304_v0 }
  0x39   :  { %1186 = vmatpush3.bf16.msra.mxu1 %v1302_v62 }
  0x3a   :  { %1187 = vmatprep.subr.bf16.mxu1 %v1306_v2 }
  0x3b   :  { %1160 = vmatpush3.bf16.msra.mxu0 %v1305_v1 }
  0x3c   :  { %1161 = vmatprep.subr.bf16.mxu0 %v1308_v4 }
  0x3d   :  { %1188 = vmatpush3.bf16.msra.mxu1 %v1307_v3 }
  0x3e   :  { %1189 = vmatprep.subr.bf16.mxu1 %v1310_v6 }
  0x3f   :  { %1162 = vmatpush3.bf16.msra.mxu0 %v1309_v5 }
  0x40   :  { %1213 = vmatprep.subr.bf16.mxu0 %v1315_v10 }
  0x41   :  { %1190 = vmatpush3.bf16.msra.mxu1 %v1314_v9 }
  0x42   :  { %845 = vmatmul.mubr.bf16.vlgmr.msra.gmra.mrb[8].mxu0 %v1311_v7 }
  0x43   :  { %1214 = vmatpush3.bf16.msra.mxu0 %v1315_v10  ;;  %852 = vmatprep.mubr.bf16.mxu0 %v1320_v14 }
  0x44   :  { %894 = vmatmul.mubr.bf16.vlgmr.msra.gmra.mrb[8].mxu1 %v1316_v11  ;;  %1215 = vmatprep.subr.bf16.mxu0 %v1319_v13 }
  0x45   :  { %901 = vmatprep.mubr.bf16.mxu1 %v1324_v17 }
  0x47   :  { %1216 = vmatpush3.bf16.msra.mxu0 %v1319_v13 }
  0x48   :  { %1217 = vmatprep.subr.bf16.mxu0 %v1323_v16 }
  0x4a   :  { %853 = vmatmul.mubr.bf16.gmra.mrb[12].mxu0 %v1322_v15 }
  0x4b   :  { %1218 = vmatpush3.bf16.msra.mxu0 %v1323_v16 }
  0x4c   :  { %902 = vmatmul.mubr.bf16.gmra.mrb[12].mxu1 %v1326_v18  ;;  %1219 = vmatprep.subr.bf16.mxu0 %v1327_v19 }
  0x4d   :  { %9 = vsyncpa [#allocation3], 0  ;;  %1229 = vmatprep.mubr.bf16.mxu0 %v1332_v21  ;;  %v1329_v22 = vld [vmem:[%s1678_s1 + $0x228] sm:$0xff]   ;;  %v1330_v23 = vld [vmem:[%s1678_s1 + $0x230] sm:$0xff]   ;;  %s1358_s16 = smov [#allocation2]  }
  0x4e   :  { %v1331_v24 = vld [vmem:[%s1678_s1 + $0x238] sm:$0xff]   ;;  %v1333_v25 = vld [vmem:[%s1677_s0 + $0x68] ss:$36 sps:$4 sm:$0xff]   ;;  %v991_v27 = vld [vmem:[%s1679_s2] ss:$0 sm:$0xff]  ;;  %s980_s17 = sshll.u32 %s1358_s16, 4  ;;  %s981_s17 = int_to_ptr.vmem [resolvable:$true] %s980_s17 }
  0x4f   :  { %1220 = vmatpush3.bf16.msra.mxu0 %v1327_v19  ;;  %p1339_p1 = scmp.lt.s32.totalorder %s981_s17, %s981_s17 }
  0x50   :  { %1221 = vmatprep.subr.bf16.mxu0 %v1328_v20 }
  0x53   :  { %1222 = vmatpush3.bf16.msra.mxu0 %v1328_v20 }
  0x54   :  { %1223 = vmatprep.subr.bf16.mxu0 %v1329_v22 }
  0x57   :  { %1224 = vmatpush3.bf16.msra.mxu0 %v1329_v22 }
  0x58   :  { %1225 = vmatprep.subr.bf16.mxu0 %v1330_v23 }
  0x5b   :  { %1226 = vmatpush3.bf16.msra.mxu0 %v1330_v23 }
  0x5c   :  { %1227 = vmatprep.subr.bf16.mxu0 %v1331_v24 }
  0x5f   :  { %1228 = vmatpush3.bf16.msra.mxu0 %v1331_v24 }
  0x62   :  { %1230 = vmatmul.mubr.bf16.vlgmr.msra.gmra.mrb[16].mxu0 %v1333_v25 }
  0xf5   :  { %v1107_v26 = vpop.f32.mrb[0].mxu0 }
  0xf6   :  { %v1108_v28 = vpop.f32.mrb[1].mxu0 }
  0xf7   :  { %v1109_v29 = vadd.f32 %v1108_v28, %v1107_v26  ;;  %v1110_v30 = vpop.f32.mrb[2].mxu0  ;;  %v1135_v31 = vpop.f32.mrb[0].mxu1  ;;  %v1083_v28 = vld [vmem:[%s1680_s3] sm:$0xff]  }
  0xf8   :  { %v1111_v32 = vpop.f32.mrb[3].mxu0  ;;  %v1136_v35 = vpop.f32.mrb[1].mxu1 }
  0xf9   :  { %v749_v33 = vadd.f32 %v1109_v29, %v991_v27  ;;  %v1112_v34 = vadd.f32 %v1111_v32, %v1110_v30  ;;  %v1137_v36 = vadd.f32 %v1136_v35, %v1135_v31  ;;  %v1138_v37 = vpop.f32.mrb[2].mxu1  ;;  %v1084_v31 = vunpack.c.l.bf16 %v1083_v28 }
  0xfa   :  { %v1139_v39 = vpop.f32.mrb[3].mxu1 }
  0xfb   :  { %v752_v38 = vadd.f32 %v1112_v34, %v991_v27  ;;  %v798_v40 = vadd.f32 %v1137_v36, %v749_v33  ;;  %v1140_v41 = vadd.f32 %v1139_v39, %v1138_v37  ;;  %v1085_v37 = vunpack.c.h.bf16 %v1083_v28 }
  0xfd   :  { %v801_v42 = vadd.f32 %v1140_v41, %v752_v38  ;;  %v1113_v43 = vpop.f32.mrb[4].mxu0 }
  0xfe   :  { %v1114_v44 = vpop.f32.mrb[5].mxu0 }
  0xff   :  { %v1115_v45 = vadd.f32 %v1114_v44, %v1113_v43  ;;  %v1116_v46 = vpop.f32.mrb[6].mxu0  ;;  %v1141_v47 = vpop.f32.mrb[4].mxu1 }
 0x100   :  { %v1117_v48 = vpop.f32.mrb[7].mxu0  ;;  %v1142_v51 = vpop.f32.mrb[5].mxu1 }
 0x101   :  { %v757_v49 = vadd.f32 %v1115_v45, %v991_v27  ;;  %v1118_v50 = vadd.f32 %v1117_v48, %v1116_v46  ;;  %v1143_v52 = vadd.f32 %v1142_v51, %v1141_v47  ;;  %v1144_v53 = vpop.f32.mrb[6].mxu1 }
 0x102   :  { %v1145_v55 = vpop.f32.mrb[7].mxu1 }
 0x103   :  { %v760_v54 = vadd.f32 %v1118_v50, %v991_v27  ;;  %v806_v56 = vadd.f32 %v1143_v52, %v757_v49  ;;  %v1146_v57 = vadd.f32 %v1145_v55, %v1144_v53  ;;  %v1090_v27 = vld [vmem:[%s1680_s3 + $0x8] sm:$0xff]   ;;  %s1334_s3 = scalar_lea.vmem %s981_s17, 512 }
 0x104   :  { %v1088_v29 = vunpack.c.l.bf16 %v1090_v27  ;;  %v1089_v34 = vunpack.c.h.bf16 %v1090_v27  ;;  %p1335_p0 = scmp.ne.s32.totalorder %s981_s17, %s1334_s3  ;;  %p1340_p2 = scmp.lt.s32.totalorder %s1334_s3, %s1334_s3 }
 0x105   :  { %v809_v58 = vadd.f32 %v1146_v57, %v760_v54 }
 0x106   :  { %p1341_p3 = por %p1340_p2, %p1339_p1 }
 0x108   :  { %p1342_p4 = pnand %p1341_p3, %p1335_p0 }
 0x115   :  { %v1163_v59 = vpop.f32.mrb[8].mxu0 }
 0x116   :  { %v1164_v60 = vpop.f32.mrb[9].mxu0 }
 0x117   :  { %v1165_v61 = vadd.f32 %v1164_v60, %v1163_v59  ;;  %v1166_v62 = vpop.f32.mrb[10].mxu0  ;;  %v1191_v63 = vpop.f32.mrb[8].mxu1 }
 0x118   :  { %v1167_v0 = vpop.f32.mrb[11].mxu0  ;;  %v1192_v3 = vpop.f32.mrb[9].mxu1 }
 0x119   :  { %v847_v1 = vadd.f32 %v1165_v61, %v798_v40  ;;  %v1168_v2 = vadd.f32 %v1167_v0, %v1166_v62  ;;  %v1193_v4 = vadd.f32 %v1192_v3, %v1191_v63  ;;  %v1194_v5 = vpop.f32.mrb[10].mxu1 }
 0x11a   :  { %v1195_v7 = vpop.f32.mrb[11].mxu1 }
 0x11b   :  { %v850_v6 = vadd.f32 %v1168_v2, %v801_v42  ;;  %v1196_v8 = vadd.f32 %v1195_v7, %v1194_v5  ;;  %v896_v9 = vadd.f32 %v1193_v4, %v847_v1 }
 0x11d   :  { %v1169_v10 = vpop.f32.mrb[12].mxu0  ;;  %v899_v12 = vadd.f32 %v1196_v8, %v850_v6 }
 0x11e   :  { %v1170_v11 = vpop.f32.mrb[13].mxu0 }
 0x11f   :  { %v1171_v13 = vadd.f32 %v1170_v11, %v1169_v10  ;;  %v1172_v14 = vpop.f32.mrb[14].mxu0  ;;  %v1197_v15 = vpop.f32.mrb[12].mxu1 }
 0x120   :  { %v1173_v16 = vpop.f32.mrb[15].mxu0  ;;  %v1198_v19 = vpop.f32.mrb[13].mxu1 }
 0x121   :  { %v855_v17 = vadd.f32 %v1171_v13, %v806_v56  ;;  %v1174_v18 = vadd.f32 %v1173_v16, %v1172_v14  ;;  %v1199_v20 = vadd.f32 %v1198_v19, %v1197_v15  ;;  %v1200_v21 = vpop.f32.mrb[14].mxu1 }
 0x122   :  { %v1201_v23 = vpop.f32.mrb[15].mxu1 }
 0x123   :  { %v858_v22 = vadd.f32 %v1174_v18, %v809_v58  ;;  %v1202_v24 = vadd.f32 %v1201_v23, %v1200_v21  ;;  %v904_v25 = vadd.f32 %v1199_v20, %v855_v17 }
 0x125   :  { %v907_v26 = vadd.f32 %v1202_v24, %v858_v22 }
 0x135   :  { %v1231_v30 = vpop.f32.mrb[16].mxu0 }
 0x136   :  { %v953_v32 = vadd.f32 %v1231_v30, %v904_v25  ;;  %v944_v33 = vpop.f32.mrb[17].mxu0 }
 0x137   :  { %v945_v35 = vadd.f32 %v944_v33, %v896_v9  ;;  %v1232_v36 = vpop.f32.mrb[18].mxu0 }
 0x138   :  { %v969_v38 = vadd.f32 %v1088_v29, %v953_v32  ;;  %v956_v39 = vadd.f32 %v1232_v36, %v907_v26  ;;  %v947_v40 = vpop.f32.mrb[19].mxu0 }
 0x139   :  { %v967_v41 = vadd.f32 %v1084_v31, %v945_v35  ;;  %v948_v42 = vadd.f32 %v947_v40, %v899_v12 }
 0x13a   :  { %973 = vst [vmem:[#allocation2 + $0x10] sm:$0xff] %v969_v38  ;;  %v970_v43 = vadd.f32 %v1089_v34, %v956_v39 }
 0x13b   :  { %971 = vst [vmem:[#allocation2] sm:$0xff] %v967_v41  ;;  %v968_v44 = vadd.f32 %v1085_v37, %v948_v42 }
 0x13c   :  { %974 = vst [vmem:[#allocation2 + $0x18] sm:$0xff] %v970_v43 }
 0x13d   :  { %972 = vst [vmem:[#allocation2 + $0x8] sm:$0xff] %v968_v44 }
 0x13e   :  { %1345 = shalt.err (!%p1342_p4)
}
 0x13f   :  { %s1346_s20 = scalar_lea.hbm %s1681_s4, 512 }
 0x140   :  { %p1347_p5 = scmp.ne.s32.totalorder %s1681_s4, %s1346_s20  ;;  %p1350_p6 = scmp.lt.u32.totalorder %s1346_s20, %s1681_s4 }
 0x142   :  { %p1352_p7 = pnand %p1350_p6, %p1347_p5 }
 0x144   :  { %1355 = shalt.err (!%p1352_p7)
}
 0x145   :  { %s1359_s25 = smov 128   ;;  %s1360_s26 = smov 8  }
 0x146   :  { %986 = dma.vmem_to_hbm [thread:$0]  %s981_s17, 512, %s1681_s4, [#allocation3], %s1359_s25, %s1359_s25, %s1360_s26  }
 0x147   :  { %1356 = dma.done.wait [#allocation3], 512  }
 0x148   :  { %1357 = vsyncadd [#allocation3], 4294966784 }
 0x149   :  { %990 = vsyncpa [#allocation3], 1 }

// kernel: sekd_forward.21
= control target key start
LH: loop header
LB: loop body
LE: loop exit
PB: predicated region body
PF: predicated region fallthrough
CT: control target
= control target key end

     0   :  { %s1663_s1 = inlined_call_operand.vmem [shape: bf16[1152,128], index: 1, kind: input, shape index: {}]   ;;  %s1664_s0 = inlined_call_operand.vmem [shape: bf16[32,1152], index: 0, kind: input, shape index: {}]   ;;  %s1665_s2 = inlined_call_operand.vmem [shape: f32[1,128], index: 2, kind: input, shape index: {}]   ;;  %s1666_s3 = inlined_call_operand.vmem [shape: bf16[32,128], index: 3, kind: input, shape index: {}]   ;;  %s1667_s4 = inlined_call_operand.vmem [shape: bf16[32,128], index: 4, kind: output, shape index: {}]  }
   0x1   :  { %v1255_v0 = vld [vmem:[%s1663_s1 + $0x40] sm:$0xff]   ;;  %v1259_v4 = vld [vmem:[%s1663_s1 + $0x48] sm:$0xff]   ;;  %v1263_v8 = vld [vmem:[%s1663_s1 + $0x50] sm:$0xff]  }
   0x2   :  { %v1256_v1 = vld [vmem:[%s1663_s1] sm:$0xff]   ;;  %1113 = vmatprep.subr.bf16.mxu0 %v1255_v0  ;;  %v1260_v5 = vld [vmem:[%s1663_s1 + $0x8] sm:$0xff]   ;;  %v1264_v9 = vld [vmem:[%s1663_s1 + $0x10] sm:$0xff]  }
   0x3   :  { %v1257_v2 = vld [vmem:[%s1663_s1 + $0xc0] sm:$0xff]   ;;  %1114 = vmatpush3.bf16.msra.mxu0 %v1256_v1  ;;  %v1261_v6 = vld [vmem:[%s1663_s1 + $0xc8] sm:$0xff]   ;;  %v1265_v10 = vld [vmem:[%s1663_s1 + $0xd0] sm:$0xff]  }
   0x4   :  { %v1258_v3 = vld [vmem:[%s1663_s1 + $0x80] sm:$0xff]   ;;  %1141 = vmatprep.subr.bf16.mxu1 %v1257_v2  ;;  %1115 = vmatprep.subr.bf16.mxu0 %v1259_v4  ;;  %v1262_v7 = vld [vmem:[%s1663_s1 + $0x88] sm:$0xff]   ;;  %v1266_v11 = vld [vmem:[%s1663_s1 + $0x90] sm:$0xff]  }
   0x5   :  { %1142 = vmatpush3.bf16.msra.mxu1 %v1258_v3  ;;  %v1267_v12 = vld [vmem:[%s1663_s1 + $0x58] sm:$0xff]   ;;  %v1271_v16 = vld [vmem:[%s1663_s1 + $0x60] sm:$0xff]   ;;  %v1275_v20 = vld [vmem:[%s1663_s1 + $0x68] sm:$0xff]  }
   0x6   :  { %1143 = vmatprep.subr.bf16.mxu1 %v1261_v6  ;;  %v1268_v13 = vld [vmem:[%s1663_s1 + $0x18] sm:$0xff]   ;;  %v1272_v17 = vld [vmem:[%s1663_s1 + $0x20] sm:$0xff]   ;;  %v1276_v21 = vld [vmem:[%s1663_s1 + $0x28] sm:$0xff]  }
   0x7   :  { %1116 = vmatpush3.bf16.msra.mxu0 %v1260_v5  ;;  %v1269_v14 = vld [vmem:[%s1663_s1 + $0xd8] sm:$0xff]   ;;  %v1273_v18 = vld [vmem:[%s1663_s1 + $0xe0] sm:$0xff]   ;;  %v1277_v22 = vld [vmem:[%s1663_s1 + $0xe8] sm:$0xff]  }
   0x8   :  { %1117 = vmatprep.subr.bf16.mxu0 %v1263_v8  ;;  %v1270_v15 = vld [vmem:[%s1663_s1 + $0x98] sm:$0xff]   ;;  %v1274_v19 = vld [vmem:[%s1663_s1 + $0xa0] sm:$0xff]   ;;  %v1278_v23 = vld [vmem:[%s1663_s1 + $0xa8] sm:$0xff]  }
   0x9   :  { %1144 = vmatpush3.bf16.msra.mxu1 %v1262_v7  ;;  %v1279_v24 = vld [vmem:[%s1663_s1 + $0x70] sm:$0xff]   ;;  %v1283_v28 = vld [vmem:[%s1663_s1 + $0x78] sm:$0xff]   ;;  %v1286_v31 = vld [vmem:[%s1664_s0] ss:$36 sps:$4 sm:$0xff]  }
   0xa   :  { %1145 = vmatprep.subr.bf16.mxu1 %v1265_v10  ;;  %v1280_v25 = vld [vmem:[%s1663_s1 + $0x30] sm:$0xff]   ;;  %v1284_v29 = vld [vmem:[%s1663_s1 + $0x38] sm:$0xff]   ;;  %v1288_v32 = vld [vmem:[%s1664_s0 + $0x4] ss:$36 sps:$4 sm:$0xff]  }
   0xb   :  { %1118 = vmatpush3.bf16.msra.mxu0 %v1264_v9  ;;  %v1281_v26 = vld [vmem:[%s1663_s1 + $0xf0] sm:$0xff]   ;;  %v1285_v30 = vld [vmem:[%s1663_s1 + $0xf8] sm:$0xff]   ;;  %745 = vmatprep.mubr.bf16.mxu0 %v1288_v32  ;;  %v1290_v34 = vld [vmem:[%s1663_s1 + $0x140] sm:$0xff]  }
   0xc   :  { %1119 = vmatprep.subr.bf16.mxu0 %v1267_v12  ;;  %v1282_v27 = vld [vmem:[%s1663_s1 + $0xb0] sm:$0xff]   ;;  %v1289_v33 = vld [vmem:[%s1663_s1 + $0xb8] sm:$0xff]   ;;  %v1291_v35 = vld [vmem:[%s1664_s0 + $0x8] ss:$36 sps:$4 sm:$0xff]  }
   0xd   :  { %1146 = vmatpush3.bf16.msra.mxu1 %v1266_v11  ;;  %v1293_v36 = vld [vmem:[%s1664_s0 + $0xc] ss:$36 sps:$4 sm:$0xff]   ;;  %v1294_v37 = vld [vmem:[%s1663_s1 + $0x100] sm:$0xff]   ;;  %v1305_v48 = vld [vmem:[%s1663_s1 + $0x158] sm:$0xff]  }
   0xe   :  { %1147 = vmatprep.subr.bf16.mxu1 %v1269_v14  ;;  %794 = vmatprep.mubr.bf16.mxu1 %v1293_v36  ;;  %v1295_v38 = vld [vmem:[%s1663_s1 + $0x1c0] sm:$0xff]   ;;  %v1297_v40 = vld [vmem:[%s1663_s1 + $0x148] sm:$0xff]   ;;  %v1301_v44 = vld [vmem:[%s1663_s1 + $0x150] sm:$0xff]  }
   0xf   :  { %1120 = vmatpush3.bf16.msra.mxu0 %v1268_v13  ;;  %v1296_v39 = vld [vmem:[%s1663_s1 + $0x180] sm:$0xff]   ;;  %v1298_v41 = vld [vmem:[%s1663_s1 + $0x108] sm:$0xff]   ;;  %v1302_v45 = vld [vmem:[%s1663_s1 + $0x110] sm:$0xff]  }
  0x10   :  { %1121 = vmatprep.subr.bf16.mxu0 %v1271_v16  ;;  %v1299_v42 = vld [vmem:[%s1663_s1 + $0x1c8] sm:$0xff]   ;;  %v1303_v46 = vld [vmem:[%s1663_s1 + $0x1d0] sm:$0xff]   ;;  %v1306_v49 = vld [vmem:[%s1663_s1 + $0x118] sm:$0xff]  }
  0x11   :  { %1148 = vmatpush3.bf16.msra.mxu1 %v1270_v15  ;;  %v1300_v43 = vld [vmem:[%s1663_s1 + $0x188] sm:$0xff]   ;;  %v1304_v47 = vld [vmem:[%s1663_s1 + $0x190] sm:$0xff]   ;;  %v1307_v50 = vld [vmem:[%s1663_s1 + $0x1d8] sm:$0xff]  }
  0x12   :  { %1149 = vmatprep.subr.bf16.mxu1 %v1273_v18  ;;  %v1308_v51 = vld [vmem:[%s1663_s1 + $0x198] sm:$0xff]   ;;  %v1309_v52 = vld [vmem:[%s1663_s1 + $0x160] sm:$0xff]   ;;  %v1313_v56 = vld [vmem:[%s1663_s1 + $0x168] sm:$0xff]  }
  0x13   :  { %1122 = vmatpush3.bf16.msra.mxu0 %v1272_v17  ;;  %v1310_v53 = vld [vmem:[%s1663_s1 + $0x120] sm:$0xff]   ;;  %v1314_v57 = vld [vmem:[%s1664_s0 + $0x4c] ss:$36 sps:$4 sm:$0xff]   ;;  %v1319_v61 = vld [vmem:[%s1664_s0 + $0x54] ss:$36 sps:$4 sm:$0xff]  }
  0x14   :  { %1123 = vmatprep.subr.bf16.mxu0 %v1275_v20  ;;  %v1311_v54 = vld [vmem:[%s1663_s1 + $0x1e0] sm:$0xff]   ;;  %v1316_v58 = vld [vmem:[%s1663_s1 + $0x128] sm:$0xff]   ;;  %v1322_v63 = vld [vmem:[%s1664_s0 + $0x50] ss:$36 sps:$4 sm:$0xff]  }
  0x15   :  { %1150 = vmatpush3.bf16.msra.mxu1 %v1274_v19  ;;  %v1312_v55 = vld [vmem:[%s1663_s1 + $0x1a0] sm:$0xff]   ;;  %v1317_v59 = vld [vmem:[%s1664_s0 + $0x48] ss:$36 sps:$4 sm:$0xff]   ;;  %v1323_v0 = vld [vmem:[%s1663_s1 + $0x170] sm:$0xff]  }
  0x16   :  { %1151 = vmatprep.subr.bf16.mxu1 %v1277_v22  ;;  %v1318_v60 = vld [vmem:[%s1663_s1 + $0x1e8] sm:$0xff]   ;;  %v1324_v1 = vld [vmem:[%s1663_s1 + $0x130] sm:$0xff]   ;;  %v1327_v4 = vld [vmem:[%s1663_s1 + $0x178] sm:$0xff]  }
  0x17   :  { %1124 = vmatpush3.bf16.msra.mxu0 %v1276_v21  ;;  %v1321_v62 = vld [vmem:[%s1663_s1 + $0x1a8] sm:$0xff]   ;;  %v1325_v2 = vld [vmem:[%s1663_s1 + $0x1f0] sm:$0xff]   ;;  %v1328_v5 = vld [vmem:[%s1663_s1 + $0x138] sm:$0xff]  }
  0x18   :  { %1125 = vmatprep.subr.bf16.mxu0 %v1279_v24  ;;  %v1326_v3 = vld [vmem:[%s1663_s1 + $0x1b0] sm:$0xff]   ;;  %v1329_v6 = vld [vmem:[%s1663_s1 + $0x1f8] sm:$0xff]   ;;  %v1334_v10 = vld [vmem:[%s1663_s1 + $0x200] sm:$0xff]  }
  0x19   :  { %1152 = vmatpush3.bf16.msra.mxu1 %v1278_v23  ;;  %v1330_v7 = vld [vmem:[%s1664_s0 + $0x10] ss:$36 sps:$4 sm:$0xff]   ;;  %v1333_v9 = vld [vmem:[%s1663_s1 + $0x1b8] sm:$0xff]   ;;  %v1338_v13 = vld [vmem:[%s1663_s1 + $0x208] sm:$0xff]  }
  0x1a   :  { %1153 = vmatprep.subr.bf16.mxu1 %v1281_v26  ;;  %v1332_v8 = vld [vmem:[%s1664_s0 + $0x14] ss:$36 sps:$4 sm:$0xff]   ;;  %v1337_v12 = vld [vmem:[%s1664_s0 + $0x1c] ss:$36 sps:$4 sm:$0xff]   ;;  %v1343_v17 = vld [vmem:[%s1664_s0 + $0x64] ss:$36 sps:$4 sm:$0xff]  }
  0x1b   :  { %1126 = vmatpush3.bf16.msra.mxu0 %v1280_v25  ;;  %v1335_v11 = vld [vmem:[%s1664_s0 + $0x18] ss:$36 sps:$4 sm:$0xff]   ;;  %v1342_v16 = vld [vmem:[%s1663_s1 + $0x210] sm:$0xff]   ;;  %v1345_v18 = vld [vmem:[%s1664_s0 + $0x60] ss:$36 sps:$4 sm:$0xff]  }
  0x1c   :  { %1127 = vmatprep.subr.bf16.mxu0 %v1283_v28  ;;  %v1339_v14 = vld [vmem:[%s1664_s0 + $0x5c] ss:$36 sps:$4 sm:$0xff]   ;;  %v1348_v22 = vld [vmem:[%s1663_s1 + $0x228] sm:$0xff]   ;;  %v1349_v23 = vld [vmem:[%s1663_s1 + $0x230] sm:$0xff]  }
  0x1d   :  { %1154 = vmatpush3.bf16.msra.mxu1 %v1282_v27  ;;  %v1341_v15 = vld [vmem:[%s1664_s0 + $0x58] ss:$36 sps:$4 sm:$0xff]   ;;  %v1347_v20 = vld [vmem:[%s1663_s1 + $0x220] sm:$0xff]   ;;  %v1352_v25 = vld [vmem:[%s1664_s0 + $0x68] ss:$36 sps:$4 sm:$0xff]  }
  0x1e   :  { %1155 = vmatprep.subr.bf16.mxu1 %v1285_v30  ;;  %v1346_v19 = vld [vmem:[%s1663_s1 + $0x218] sm:$0xff]   ;;  %v1351_v21 = vld [vmem:[%s1664_s0 + $0x20] ss:$36 sps:$4 sm:$0xff]  }
  0x1f   :  { %1128 = vmatpush3.bf16.msra.mxu0 %v1284_v29  ;;  %v1350_v24 = vld [vmem:[%s1663_s1 + $0x238] sm:$0xff]   ;;  %v994_v27 = vld [vmem:[%s1665_s2] ss:$0 sm:$0xff] }
  0x20   :  { %1169 = vmatprep.subr.bf16.mxu0 %v1290_v34 }
  0x21   :  { %1156 = vmatpush3.bf16.msra.mxu1 %v1289_v33 }
  0x22   :  { %746 = vmatmul.mubr.bf16.vlgmr.msra.gmra.mrb[0].mxu0 %v1286_v31  ;;  %1197 = vmatprep.subr.bf16.mxu1 %v1295_v38 }
  0x23   :  { %1170 = vmatpush3.bf16.msra.mxu0 %v1294_v37  ;;  %753 = vmatprep.mubr.bf16.mxu0 %v1314_v57 }
  0x24   :  { %795 = vmatmul.mubr.bf16.vlgmr.msra.gmra.mrb[0].mxu1 %v1291_v35  ;;  %1171 = vmatprep.subr.bf16.mxu0 %v1297_v40 }
  0x25   :  { %1198 = vmatpush3.bf16.msra.mxu1 %v1296_v39  ;;  %802 = vmatprep.mubr.bf16.mxu1 %v1319_v61 }
  0x26   :  { %1199 = vmatprep.subr.bf16.mxu1 %v1299_v42 }
  0x27   :  { %1172 = vmatpush3.bf16.msra.mxu0 %v1298_v41 }
  0x28   :  { %1173 = vmatprep.subr.bf16.mxu0 %v1301_v44 }
  0x29   :  { %1200 = vmatpush3.bf16.msra.mxu1 %v1300_v43 }
  0x2a   :  { %1201 = vmatprep.subr.bf16.mxu1 %v1303_v46  ;;  %754 = vmatmul.mubr.bf16.gmra.mrb[4].mxu0 %v1317_v59 }
  0x2b   :  { %1174 = vmatpush3.bf16.msra.mxu0 %v1302_v45  ;;  %843 = vmatprep.mubr.bf16.mxu0 %v1332_v8 }
  0x2c   :  { %1175 = vmatprep.subr.bf16.mxu0 %v1305_v48  ;;  %803 = vmatmul.mubr.bf16.gmra.mrb[4].mxu1 %v1322_v63 }
  0x2d   :  { %1202 = vmatpush3.bf16.msra.mxu1 %v1304_v47  ;;  %892 = vmatprep.mubr.bf16.mxu1 %v1337_v12 }
  0x2e   :  { %1203 = vmatprep.subr.bf16.mxu1 %v1307_v50 }
  0x2f   :  { %1176 = vmatpush3.bf16.msra.mxu0 %v1306_v49 }
  0x30   :  { %1177 = vmatprep.subr.bf16.mxu0 %v1309_v52 }
  0x31   :  { %1204 = vmatpush3.bf16.msra.mxu1 %v1308_v51 }
  0x32   :  { %1205 = vmatprep.subr.bf16.mxu1 %v1311_v54 }
  0x33   :  { %1178 = vmatpush3.bf16.msra.mxu0 %v1310_v53 }
  0x34   :  { %1179 = vmatprep.subr.bf16.mxu0 %v1313_v56 }
  0x35   :  { %1206 = vmatpush3.bf16.msra.mxu1 %v1312_v55 }
  0x36   :  { %1207 = vmatprep.subr.bf16.mxu1 %v1318_v60 }
  0x37   :  { %1180 = vmatpush3.bf16.msra.mxu0 %v1316_v58 }
  0x38   :  { %1181 = vmatprep.subr.bf16.mxu0 %v1323_v0 }
  0x39   :  { %1208 = vmatpush3.bf16.msra.mxu1 %v1321_v62 }
  0x3a   :  { %1209 = vmatprep.subr.bf16.mxu1 %v1325_v2 }
  0x3b   :  { %1182 = vmatpush3.bf16.msra.mxu0 %v1324_v1 }
  0x3c   :  { %1183 = vmatprep.subr.bf16.mxu0 %v1327_v4 }
  0x3d   :  { %1210 = vmatpush3.bf16.msra.mxu1 %v1326_v3 }
  0x3e   :  { %1211 = vmatprep.subr.bf16.mxu1 %v1329_v6 }
  0x3f   :  { %1184 = vmatpush3.bf16.msra.mxu0 %v1328_v5 }
  0x40   :  { %1235 = vmatprep.subr.bf16.mxu0 %v1334_v10 }
  0x41   :  { %1212 = vmatpush3.bf16.msra.mxu1 %v1333_v9 }
  0x42   :  { %844 = vmatmul.mubr.bf16.vlgmr.msra.gmra.mrb[8].mxu0 %v1330_v7 }
  0x43   :  { %1236 = vmatpush3.bf16.msra.mxu0 %v1334_v10  ;;  %851 = vmatprep.mubr.bf16.mxu0 %v1339_v14 }
  0x44   :  { %893 = vmatmul.mubr.bf16.vlgmr.msra.gmra.mrb[8].mxu1 %v1335_v11  ;;  %1237 = vmatprep.subr.bf16.mxu0 %v1338_v13 }
  0x45   :  { %900 = vmatprep.mubr.bf16.mxu1 %v1343_v17 }
  0x47   :  { %1238 = vmatpush3.bf16.msra.mxu0 %v1338_v13 }
  0x48   :  { %1239 = vmatprep.subr.bf16.mxu0 %v1342_v16 }
  0x4a   :  { %852 = vmatmul.mubr.bf16.gmra.mrb[12].mxu0 %v1341_v15 }
  0x4b   :  { %1240 = vmatpush3.bf16.msra.mxu0 %v1342_v16  ;;  %1251 = vmatprep.mubr.bf16.mxu0 %v1351_v21 }
  0x4c   :  { %901 = vmatmul.mubr.bf16.gmra.mrb[12].mxu1 %v1345_v18  ;;  %1241 = vmatprep.subr.bf16.mxu0 %v1346_v19 }
  0x4f   :  { %1242 = vmatpush3.bf16.msra.mxu0 %v1346_v19 }
  0x50   :  { %1243 = vmatprep.subr.bf16.mxu0 %v1347_v20 }
  0x53   :  { %1244 = vmatpush3.bf16.msra.mxu0 %v1347_v20 }
  0x54   :  { %1245 = vmatprep.subr.bf16.mxu0 %v1348_v22 }
  0x57   :  { %1246 = vmatpush3.bf16.msra.mxu0 %v1348_v22 }
  0x58   :  { %1247 = vmatprep.subr.bf16.mxu0 %v1349_v23 }
  0x5b   :  { %1248 = vmatpush3.bf16.msra.mxu0 %v1349_v23 }
  0x5c   :  { %1249 = vmatprep.subr.bf16.mxu0 %v1350_v24 }
  0x5f   :  { %1250 = vmatpush3.bf16.msra.mxu0 %v1350_v24 }
  0x62   :  { %1252 = vmatmul.mubr.bf16.vlgmr.msra.gmra.mrb[16].mxu0 %v1352_v25 }
  0xf5   :  { %v1129_v26 = vpop.f32.mrb[0].mxu0 }
  0xf6   :  { %v1130_v28 = vpop.f32.mrb[1].mxu0 }
  0xf7   :  { %v1131_v29 = vadd.f32 %v1130_v28, %v1129_v26  ;;  %v1132_v30 = vpop.f32.mrb[2].mxu0  ;;  %v1157_v31 = vpop.f32.mrb[0].mxu1  ;;  %v1094_v28 = vld [vmem:[%s1666_s3] sm:$0xff]  }
  0xf8   :  { %v1133_v32 = vpop.f32.mrb[3].mxu0  ;;  %v1158_v35 = vpop.f32.mrb[1].mxu1 }
  0xf9   :  { %v748_v33 = vadd.f32 %v1131_v29, %v994_v27  ;;  %v1134_v34 = vadd.f32 %v1133_v32, %v1132_v30  ;;  %v1159_v36 = vadd.f32 %v1158_v35, %v1157_v31  ;;  %v1160_v37 = vpop.f32.mrb[2].mxu1  ;;  %v1095_v35 = vunpack.c.l.bf16 %v1094_v28 }
  0xfa   :  { %v1161_v39 = vpop.f32.mrb[3].mxu1 }
  0xfb   :  { %v751_v38 = vadd.f32 %v1134_v34, %v994_v27  ;;  %v797_v40 = vadd.f32 %v1159_v36, %v748_v33  ;;  %v1162_v41 = vadd.f32 %v1161_v39, %v1160_v37  ;;  %v1096_v37 = vunpack.c.h.bf16 %v1094_v28 }
  0xfd   :  { %v800_v42 = vadd.f32 %v1162_v41, %v751_v38  ;;  %v1135_v43 = vpop.f32.mrb[4].mxu0 }
  0xfe   :  { %v1136_v44 = vpop.f32.mrb[5].mxu0 }
  0xff   :  { %v1137_v45 = vadd.f32 %v1136_v44, %v1135_v43  ;;  %v1138_v46 = vpop.f32.mrb[6].mxu0  ;;  %v1163_v47 = vpop.f32.mrb[4].mxu1 }
 0x100   :  { %v1139_v48 = vpop.f32.mrb[7].mxu0  ;;  %v1164_v51 = vpop.f32.mrb[5].mxu1 }
 0x101   :  { %v756_v49 = vadd.f32 %v1137_v45, %v994_v27  ;;  %v1140_v50 = vadd.f32 %v1139_v48, %v1138_v46  ;;  %v1165_v52 = vadd.f32 %v1164_v51, %v1163_v47  ;;  %v1166_v53 = vpop.f32.mrb[6].mxu1 }
 0x102   :  { %v1167_v55 = vpop.f32.mrb[7].mxu1 }
 0x103   :  { %v759_v54 = vadd.f32 %v1140_v50, %v994_v27  ;;  %v805_v56 = vadd.f32 %v1165_v52, %v756_v49  ;;  %v1168_v57 = vadd.f32 %v1167_v55, %v1166_v53  ;;  %v1111_v27 = vld [vmem:[%s1666_s3 + $0x8] sm:$0xff]  }
 0x104   :  { %v1099_v31 = vunpack.c.l.bf16 %v1111_v27  ;;  %v1100_v33 = vunpack.c.h.bf16 %v1111_v27 }
 0x105   :  { %v808_v58 = vadd.f32 %v1168_v57, %v759_v54 }
 0x115   :  { %v1185_v59 = vpop.f32.mrb[8].mxu0 }
 0x116   :  { %v1186_v60 = vpop.f32.mrb[9].mxu0 }
 0x117   :  { %v1187_v61 = vadd.f32 %v1186_v60, %v1185_v59  ;;  %v1188_v62 = vpop.f32.mrb[10].mxu0  ;;  %v1213_v63 = vpop.f32.mrb[8].mxu1 }
 0x118   :  { %v1189_v0 = vpop.f32.mrb[11].mxu0  ;;  %v1214_v3 = vpop.f32.mrb[9].mxu1 }
 0x119   :  { %v846_v1 = vadd.f32 %v1187_v61, %v797_v40  ;;  %v1190_v2 = vadd.f32 %v1189_v0, %v1188_v62  ;;  %v1215_v4 = vadd.f32 %v1214_v3, %v1213_v63  ;;  %v1216_v5 = vpop.f32.mrb[10].mxu1 }
 0x11a   :  { %v1217_v7 = vpop.f32.mrb[11].mxu1 }
 0x11b   :  { %v849_v6 = vadd.f32 %v1190_v2, %v800_v42  ;;  %v1218_v8 = vadd.f32 %v1217_v7, %v1216_v5  ;;  %v895_v9 = vadd.f32 %v1215_v4, %v846_v1 }
 0x11d   :  { %v1191_v10 = vpop.f32.mrb[12].mxu0  ;;  %v898_v12 = vadd.f32 %v1218_v8, %v849_v6 }
 0x11e   :  { %v1192_v11 = vpop.f32.mrb[13].mxu0 }
 0x11f   :  { %v1193_v13 = vadd.f32 %v1192_v11, %v1191_v10  ;;  %v1194_v14 = vpop.f32.mrb[14].mxu0  ;;  %v1219_v15 = vpop.f32.mrb[12].mxu1 }
 0x120   :  { %v1195_v16 = vpop.f32.mrb[15].mxu0  ;;  %v1220_v19 = vpop.f32.mrb[13].mxu1 }
 0x121   :  { %v854_v17 = vadd.f32 %v1193_v13, %v805_v56  ;;  %v1196_v18 = vadd.f32 %v1195_v16, %v1194_v14  ;;  %v1221_v20 = vadd.f32 %v1220_v19, %v1219_v15  ;;  %v1222_v21 = vpop.f32.mrb[14].mxu1 }
 0x122   :  { %v1223_v23 = vpop.f32.mrb[15].mxu1 }
 0x123   :  { %v857_v22 = vadd.f32 %v1196_v18, %v808_v58  ;;  %v1224_v24 = vadd.f32 %v1223_v23, %v1222_v21  ;;  %v903_v25 = vadd.f32 %v1221_v20, %v854_v17 }
 0x125   :  { %v906_v26 = vadd.f32 %v1224_v24, %v857_v22 }
 0x135   :  { %v1253_v29 = vpop.f32.mrb[16].mxu0 }
 0x136   :  { %v952_v30 = vadd.f32 %v1253_v29, %v903_v25  ;;  %v943_v32 = vpop.f32.mrb[17].mxu0 }
 0x137   :  { %v944_v34 = vadd.f32 %v943_v32, %v895_v9  ;;  %v1254_v36 = vpop.f32.mrb[18].mxu0 }
 0x138   :  { %v955_v38 = vadd.f32 %v1254_v36, %v906_v26  ;;  %v946_v39 = vpop.f32.mrb[19].mxu0  ;;  %v968_v41 = vadd.f32 %v1099_v31, %v952_v30 }
 0x139   :  { %v947_v40 = vadd.f32 %v946_v39, %v898_v12  ;;  %v966_v43 = vadd.f32 %v1095_v35, %v944_v34 }
 0x13a   :  { %v969_v42 = vadd.f32 %v1100_v33, %v955_v38 }
 0x13b   :  { %v967_v44 = vadd.f32 %v1096_v37, %v947_v40 }
 0x13c   :  { %v1109_v45 = vpack.c.bf16 %v969_v42, %v968_v41 }
 0x13d   :  { %v1104_v46 = vpack.c.bf16 %v967_v44, %v966_v43 }
 0x13e   :  { %1112 = vst [vmem:[%s1667_s4 + $0x8] sm:$0xff] %v1109_v45  }
 0x13f   :  { %1105 = vst [vmem:[%s1667_s4] sm:$0xff] %v1104_v46  }

// kernel: tile.13
= control target key start
LH: loop header
LB: loop body
LE: loop exit
PB: predicated region body
PF: predicated region fallthrough
CT: control target
= control target key end

     0   :  { %s22_s0 = inlined_call_operand.vmem [shape: f32[64], index: 0, kind: input, shape index: {}]   ;;  %s23_s1 = inlined_call_operand.vmem [shape: f32[4,64], index: 1, kind: output, shape index: {}]  }
   0x1   :  { %v4_v0 = vld [vmem:[%s22_s0] ss:$0 sm:$0xff] }
   0x2   :  { %5 = vst [vmem:[%s23_s1] sm:$0xf] %v4_v0 }

// kernel: tile.14
= control target key start
LH: loop header
LB: loop body
LE: loop exit
PB: predicated region body
PF: predicated region fallthrough
CT: control target
= control target key end

     0   :  { %s6_s8 = smov 3  ;;  %vm8_vm0 = vcmask 523264   ;;  %s30_s9 = smov 64   ;;  %vm15_vm1 = vcmask 1048064   ;;  %s50_s0 = inlined_call_operand.vmem [shape: f32[4,64], index: 0, kind: input, shape index: {}]   ;;  %s51_s1 = inlined_call_operand.vmem [shape: f32[1,256], index: 1, kind: output, shape index: {}]  }
   0x1   :  { %v4_v0 = vld [vmem:[%s50_s0] sm:$0xf]  ;;  %s11_s0 = smov 3 }
   0x2   :  { %5 = vst [vmem:[#allocation1] sm:$0xf] %v4_v0 }
   0x9   :  { %v12_v1 = vld [vmem:[#allocation1 + $0x1] ss:$2 sm:%s11_s0]   ;;  %v7_v2 = vld [vmem:[#allocation1] ss:$2 sm:%s6_s8]  }
   0xa   :  { %13 = vrot.lane.b32.xlu0 %v12_v1, %s30_s9  ;;  %9 = vst.msk [vmem:[#allocation0] ss:$8 sm:$0x3] %vm8_vm0, %v7_v2  }
  0x7c   :  { %v14_v3 = vpop.permute.xlu0 %13  }
  0x7d   :  { %16 = vst.msk [vmem:[#allocation0] ss:$8 sm:$0x3] %vm15_vm1, %v14_v3  }
  0x84   :  { %v20_v4 = vld [vmem:[#allocation0] sm:$0x1]  ;;  %v24_v5 = vld [vmem:[#allocation0 + $0x8] sm:$0x1] }
  0x85   :  { %22 = vst [vmem:[%s51_s1] sm:$0x1] %v20_v4  ;;  %28 = vst [vmem:[%s51_s1 + $0x1] sm:$0x1] %v24_v5 }

// kernel: sekd_forward.23
= control target key start
LH: loop header
LB: loop body
LE: loop exit
PB: predicated region body
PF: predicated region fallthrough
CT: control target
= control target key end

     0   :  { %s1091_s1 = inlined_call_operand.vmem [shape: bf16[512,256], index: 1, kind: input, shape index: {}]   ;;  %s1092_s0 = inlined_call_operand.vmem [shape: bf16[32,512], index: 0, kind: input, shape index: {}]   ;;  %s1093_s2 = inlined_call_operand.vmem [shape: f32[1,256], index: 2, kind: input, shape index: {}]   ;;  %s1094_s3 = inlined_call_operand.vmem [shape: bf16[32,256], index: 3, kind: input, shape index: {}]   ;;  %s1095_s4 = inlined_call_operand.vmem [shape: bf16[32,256], index: 4, kind: output, shape index: {}]  }
   0x1   :  { %v715_v0 = vld [vmem:[%s1091_s1 + $0x4] ss:$8 sps:$4 sm:$0xff]   ;;  %v719_v2 = vld [vmem:[%s1091_s1] ss:$8 sps:$4 sm:$0xff]   ;;  %v721_v4 = vld [vmem:[%s1091_s1 + $0x14] ss:$8 sps:$4 sm:$0xff]  }
   0x2   :  { %v717_v1 = vld [vmem:[%s1091_s1 + $0x104] ss:$8 sps:$4 sm:$0xff]   ;;  %461 = vmatprep.subr.bf16.mxu1 %v715_v0  ;;  %v720_v3 = vld [vmem:[%s1091_s1 + $0x100] ss:$8 sps:$4 sm:$0xff]   ;;  %v723_v5 = vld [vmem:[%s1091_s1 + $0x114] ss:$8 sps:$4 sm:$0xff]  }
   0x3   :  { %514 = vmatprep.subr.bf16.mxu0 %v717_v1  ;;  %462 = vmatpush1.bf16.msra.mxu1 %v719_v2  ;;  %v725_v6 = vld [vmem:[%s1091_s1 + $0x10] ss:$8 sps:$4 sm:$0xff]   ;;  %v727_v8 = vld [vmem:[%s1091_s1 + $0x24] ss:$8 sps:$4 sm:$0xff]   ;;  %v731_v10 = vld [vmem:[%s1091_s1 + $0x20] ss:$8 sps:$4 sm:$0xff]  }
   0x4   :  { %515 = vmatpush1.bf16.msra.mxu0 %v720_v3  ;;  %463 = vmatprep.subr.bf16.mxu1 %v721_v4  ;;  %v726_v7 = vld [vmem:[%s1091_s1 + $0x110] ss:$8 sps:$4 sm:$0xff]   ;;  %v729_v9 = vld [vmem:[%s1091_s1 + $0x124] ss:$8 sps:$4 sm:$0xff]   ;;  %v732_v11 = vld [vmem:[%s1091_s1 + $0x120] ss:$8 sps:$4 sm:$0xff]  }
   0x5   :  { %516 = vmatprep.subr.bf16.mxu0 %v723_v5  ;;  %v733_v12 = vld [vmem:[%s1091_s1 + $0x34] ss:$8 sps:$4 sm:$0xff]   ;;  %v737_v14 = vld [vmem:[%s1091_s1 + $0x30] ss:$8 sps:$4 sm:$0xff]   ;;  %v739_v16 = vld [vmem:[%s1091_s1 + $0x44] ss:$8 sps:$4 sm:$0xff]  }
   0x6   :  { %v735_v13 = vld [vmem:[%s1091_s1 + $0x134] ss:$8 sps:$4 sm:$0xff]   ;;  %v738_v15 = vld [vmem:[%s1091_s1 + $0x130] ss:$8 sps:$4 sm:$0xff]   ;;  %v741_v17 = vld [vmem:[%s1091_s1 + $0x144] ss:$8 sps:$4 sm:$0xff]  }
   0x7   :  { %464 = vmatpush1.bf16.msra.mxu1 %v725_v6  ;;  %v743_v18 = vld [vmem:[%s1091_s1 + $0x40] ss:$8 sps:$4 sm:$0xff]   ;;  %v745_v20 = vld [vmem:[%s1091_s1 + $0x54] ss:$8 sps:$4 sm:$0xff]   ;;  %v749_v22 = vld [vmem:[%s1091_s1 + $0x50] ss:$8 sps:$4 sm:$0xff]  }
   0x8   :  { %517 = vmatpush1.bf16.msra.mxu0 %v726_v7  ;;  %465 = vmatprep.subr.bf16.mxu1 %v727_v8  ;;  %v744_v19 = vld [vmem:[%s1091_s1 + $0x140] ss:$8 sps:$4 sm:$0xff]   ;;  %v747_v21 = vld [vmem:[%s1091_s1 + $0x154] ss:$8 sps:$4 sm:$0xff]   ;;  %v750_v23 = vld [vmem:[%s1091_s1 + $0x150] ss:$8 sps:$4 sm:$0xff]   ;;  %v91_v8 = vlaneseq }
   0x9   :  { %518 = vmatprep.subr.bf16.mxu0 %v729_v9  ;;  %v751_v24 = vld [vmem:[%s1091_s1 + $0x64] ss:$8 sps:$4 sm:$0xff]   ;;  %v755_v26 = vld [vmem:[%s1091_s1 + $0x60] ss:$8 sps:$4 sm:$0xff]   ;;  %v757_v28 = vld [vmem:[%s1091_s1 + $0x74] ss:$8 sps:$4 sm:$0xff]  }
   0xa   :  { %v753_v25 = vld [vmem:[%s1091_s1 + $0x164] ss:$8 sps:$4 sm:$0xff]   ;;  %v756_v27 = vld [vmem:[%s1091_s1 + $0x160] ss:$8 sps:$4 sm:$0xff]   ;;  %v759_v29 = vld [vmem:[%s1091_s1 + $0x174] ss:$8 sps:$4 sm:$0xff]  }
   0xb   :  { %466 = vmatpush1.bf16.msra.mxu1 %v731_v10  ;;  %v761_v30 = vld [vmem:[%s1091_s1 + $0x70] ss:$8 sps:$4 sm:$0xff]   ;;  %v763_v32 = vld [vmem:[%s1091_s1 + $0x84] ss:$8 sps:$4 sm:$0xff]   ;;  %v767_v34 = vld [vmem:[%s1091_s1 + $0x80] ss:$8 sps:$4 sm:$0xff]  }
   0xc   :  { %519 = vmatpush1.bf16.msra.mxu0 %v732_v11  ;;  %467 = vmatprep.subr.bf16.mxu1 %v733_v12  ;;  %v762_v31 = vld [vmem:[%s1091_s1 + $0x170] ss:$8 sps:$4 sm:$0xff]   ;;  %v765_v33 = vld [vmem:[%s1091_s1 + $0x184] ss:$8 sps:$4 sm:$0xff]   ;;  %v768_v35 = vld [vmem:[%s1091_s1 + $0x180] ss:$8 sps:$4 sm:$0xff]  }
   0xd   :  { %520 = vmatprep.subr.bf16.mxu0 %v735_v13  ;;  %v769_v36 = vld [vmem:[%s1091_s1 + $0x94] ss:$8 sps:$4 sm:$0xff]   ;;  %v773_v38 = vld [vmem:[%s1091_s1 + $0x90] ss:$8 sps:$4 sm:$0xff]   ;;  %v775_v40 = vld [vmem:[%s1091_s1 + $0xa4] ss:$8 sps:$4 sm:$0xff]  }
   0xe   :  { %v771_v37 = vld [vmem:[%s1091_s1 + $0x194] ss:$8 sps:$4 sm:$0xff]   ;;  %v774_v39 = vld [vmem:[%s1091_s1 + $0x190] ss:$8 sps:$4 sm:$0xff]   ;;  %v777_v41 = vld [vmem:[%s1091_s1 + $0x1a4] ss:$8 sps:$4 sm:$0xff]  }
   0xf   :  { %468 = vmatpush1.bf16.msra.mxu1 %v737_v14  ;;  %v779_v42 = vld [vmem:[%s1091_s1 + $0xa0] ss:$8 sps:$4 sm:$0xff]   ;;  %v781_v44 = vld [vmem:[%s1091_s1 + $0xb4] ss:$8 sps:$4 sm:$0xff]   ;;  %v785_v46 = vld [vmem:[%s1091_s1 + $0xb0] ss:$8 sps:$4 sm:$0xff]  }
  0x10   :  { %521 = vmatpush1.bf16.msra.mxu0 %v738_v15  ;;  %469 = vmatprep.subr.bf16.mxu1 %v739_v16  ;;  %v780_v43 = vld [vmem:[%s1091_s1 + $0x1a0] ss:$8 sps:$4 sm:$0xff]   ;;  %v783_v45 = vld [vmem:[%s1091_s1 + $0x1b4] ss:$8 sps:$4 sm:$0xff]   ;;  %v786_v47 = vld [vmem:[%s1091_s1 + $0x1b0] ss:$8 sps:$4 sm:$0xff]  }
  0x11   :  { %522 = vmatprep.subr.bf16.mxu0 %v741_v17  ;;  %v787_v48 = vld [vmem:[%s1091_s1 + $0xc4] ss:$8 sps:$4 sm:$0xff]   ;;  %v791_v52 = vld [vmem:[%s1091_s1 + $0xc0] ss:$8 sps:$4 sm:$0xff]   ;;  %v793_v54 = vld [vmem:[%s1091_s1 + $0xd4] ss:$8 sps:$4 sm:$0xff]  }
  0x12   :  { %v813_v49 = vld [vmem:[%s1092_s0 + $0x4] ss:$16 sps:$4 sm:$0xff]   ;;  %v816_v51 = vld [vmem:[%s1092_s0 + $0xc] ss:$16 sps:$4 sm:$0xff]   ;;  %v792_v53 = vld [vmem:[%s1091_s1 + $0x1c0] ss:$8 sps:$4 sm:$0xff]  }
  0x13   :  { %470 = vmatpush1.bf16.msra.mxu1 %v743_v18  ;;  %v789_v50 = vld [vmem:[%s1091_s1 + $0x1c4] ss:$8 sps:$4 sm:$0xff]   ;;  %493 = vmatprep.mubr.bf16.mxu1 %v813_v49  ;;  %v795_v55 = vld [vmem:[%s1091_s1 + $0x1d4] ss:$8 sps:$4 sm:$0xff]   ;;  %v797_v56 = vld [vmem:[%s1091_s1 + $0xd0] ss:$8 sps:$4 sm:$0xff]  }
  0x14   :  { %523 = vmatpush1.bf16.msra.mxu0 %v744_v19  ;;  %471 = vmatprep.subr.bf16.mxu1 %v745_v20  ;;  %v798_v57 = vld [vmem:[%s1091_s1 + $0x1d0] ss:$8 sps:$4 sm:$0xff]   ;;  %v799_v58 = vld [vmem:[%s1091_s1 + $0xe4] ss:$8 sps:$4 sm:$0xff]   ;;  %v803_v60 = vld [vmem:[%s1091_s1 + $0xe0] ss:$8 sps:$4 sm:$0xff]  }
  0x15   :  { %524 = vmatprep.subr.bf16.mxu0 %v747_v21  ;;  %546 = vmatprep.mubr.bf16.mxu0 %v816_v51  ;;  %v801_v59 = vld [vmem:[%s1091_s1 + $0x1e4] ss:$8 sps:$4 sm:$0xff]   ;;  %v804_v61 = vld [vmem:[%s1091_s1 + $0x1e0] ss:$8 sps:$4 sm:$0xff]   ;;  %v805_v62 = vld [vmem:[%s1091_s1 + $0xf4] ss:$8 sps:$4 sm:$0xff]  }
  0x16   :  { %v807_v63 = vld [vmem:[%s1091_s1 + $0x1f4] ss:$8 sps:$4 sm:$0xff]   ;;  %v809_v0 = vld [vmem:[%s1091_s1 + $0xf0] ss:$8 sps:$4 sm:$0xff]   ;;  %v92_v9 = vshrl.u32 %v91_v8, 7  ;;  %v567_v14 = vld [vmem:[%s1094_s3] sm:$0xff] }
  0x17   :  { %472 = vmatpush1.bf16.msra.mxu1 %v749_v22  ;;  %v810_v1 = vld [vmem:[%s1091_s1 + $0x1f0] ss:$8 sps:$4 sm:$0xff]   ;;  %v817_v4 = vld [vmem:[%s1092_s0 + $0x24] ss:$16 sps:$4 sm:$0xff]   ;;  %v819_v5 = vld [vmem:[%s1092_s0 + $0x2c] ss:$16 sps:$4 sm:$0xff]   ;;  %v571_v20 = vunpack.c.l.bf16 %v567_v14 }
  0x18   :  { %525 = vmatpush1.bf16.msra.mxu0 %v750_v23  ;;  %473 = vmatprep.subr.bf16.mxu1 %v751_v24  ;;  %v811_v2 = vld [vmem:[%s1092_s0] ss:$16 sps:$4 sm:$0xff]   ;;  %v814_v3 = vld [vmem:[%s1092_s0 + $0x8] ss:$16 sps:$4 sm:$0xff]   ;;  %v93_v10 = vsub.s32 0, %v92_v9  ;;  %v97_v12 = vsub.s32 1, %v92_v9  ;;  %v572_v24 = vunpack.c.h.bf16 %v567_v14 }
  0x19   :  { %526 = vmatprep.subr.bf16.mxu0 %v753_v25  ;;  %v821_v6 = vld [vmem:[%s1092_s0 + $0x20] ss:$16 sps:$4 sm:$0xff]   ;;  %v822_v7 = vld [vmem:[%s1092_s0 + $0x28] ss:$16 sps:$4 sm:$0xff]  }
  0x1a   :  { %v89_v11 = vld [vmem:[%s1093_s2] sm:$0x3]  ;;  %v568_v18 = vld [vmem:[%s1094_s3 + $0x8] sm:$0xff] }
  0x1b   :  { %474 = vmatpush1.bf16.msra.mxu1 %v755_v26  ;;  %v94_v13 = vrot.slane %v89_v11, %v93_v10  ;;  %v98_v15 = vrot.slane %v89_v11, %v97_v12 }
  0x1c   :  { %527 = vmatpush1.bf16.msra.mxu0 %v756_v27  ;;  %475 = vmatprep.subr.bf16.mxu1 %v757_v28 }
  0x1d   :  { %528 = vmatprep.subr.bf16.mxu0 %v759_v29  ;;  %v573_v29 = vunpack.c.l.bf16 %v568_v18 }
  0x1f   :  { %476 = vmatpush1.bf16.msra.mxu1 %v761_v30 }
  0x20   :  { %529 = vmatpush1.bf16.msra.mxu0 %v762_v31  ;;  %477 = vmatprep.subr.bf16.mxu1 %v763_v32 }
  0x21   :  { %530 = vmatprep.subr.bf16.mxu0 %v765_v33 }
  0x23   :  { %478 = vmatpush1.bf16.msra.mxu1 %v767_v34  ;;  %v574_v34 = vunpack.c.h.bf16 %v568_v18 }
  0x24   :  { %531 = vmatpush1.bf16.msra.mxu0 %v768_v35  ;;  %479 = vmatprep.subr.bf16.mxu1 %v769_v36 }
  0x25   :  { %532 = vmatprep.subr.bf16.mxu0 %v771_v37 }
  0x27   :  { %480 = vmatpush1.bf16.msra.mxu1 %v773_v38 }
  0x28   :  { %533 = vmatpush1.bf16.msra.mxu0 %v774_v39  ;;  %481 = vmatprep.subr.bf16.mxu1 %v775_v40  ;;  %v569_v39 = vld [vmem:[%s1094_s3 + $0x10] sm:$0xff] }
  0x29   :  { %534 = vmatprep.subr.bf16.mxu0 %v777_v41 }
  0x2b   :  { %482 = vmatpush1.bf16.msra.mxu1 %v779_v42 }
  0x2c   :  { %535 = vmatpush1.bf16.msra.mxu0 %v780_v43  ;;  %483 = vmatprep.subr.bf16.mxu1 %v781_v44 }
  0x2d   :  { %536 = vmatprep.subr.bf16.mxu0 %v783_v45  ;;  %v570_v45 = vld [vmem:[%s1094_s3 + $0x18] sm:$0xff] }
  0x2f   :  { %484 = vmatpush1.bf16.msra.mxu1 %v785_v46 }
  0x30   :  { %537 = vmatpush1.bf16.msra.mxu0 %v786_v47  ;;  %485 = vmatprep.subr.bf16.mxu1 %v787_v48  ;;  %v575_v47 = vunpack.c.l.bf16 %v569_v39 }
  0x31   :  { %538 = vmatprep.subr.bf16.mxu0 %v789_v50 }
  0x33   :  { %486 = vmatpush1.bf16.msra.mxu1 %v791_v52  ;;  %v576_v52 = vunpack.c.h.bf16 %v569_v39 }
  0x34   :  { %539 = vmatpush1.bf16.msra.mxu0 %v792_v53  ;;  %487 = vmatprep.subr.bf16.mxu1 %v793_v54 }
  0x35   :  { %540 = vmatprep.subr.bf16.mxu0 %v795_v55 }
  0x37   :  { %488 = vmatpush1.bf16.msra.mxu1 %v797_v56 }
  0x38   :  { %541 = vmatpush1.bf16.msra.mxu0 %v798_v57  ;;  %489 = vmatprep.subr.bf16.mxu1 %v799_v58  ;;  %v577_v57 = vunpack.c.l.bf16 %v570_v45 }
  0x39   :  { %542 = vmatprep.subr.bf16.mxu0 %v801_v59 }
  0x3b   :  { %490 = vmatpush1.bf16.msra.mxu1 %v803_v60 }
  0x3c   :  { %543 = vmatpush1.bf16.msra.mxu0 %v804_v61  ;;  %491 = vmatprep.subr.bf16.mxu1 %v805_v62  ;;  %v578_v62 = vunpack.c.h.bf16 %v570_v45 }
  0x3d   :  { %544 = vmatprep.subr.bf16.mxu0 %v807_v63 }
  0x3f   :  { %492 = vmatpush1.bf16.msra.mxu1 %v809_v0 }
  0x40   :  { %545 = vmatpush1.bf16.msra.mxu0 %v810_v1 }
  0x42   :  { %494 = vmatmul.mubr.bf16.vlgmr.msra.gmra.mrb[0].mxu1 %v811_v2 }
  0x43   :  { %547 = vmatmul.mubr.bf16.vlgmr.msra.gmra.mrb[0].mxu0 %v814_v3  ;;  %503 = vmatprep.mubr.bf16.mxu1 %v817_v4 }
  0x44   :  { %556 = vmatprep.mubr.bf16.mxu0 %v819_v5 }
  0x4a   :  { %504 = vmatmul.mubr.bf16.gmra.mrb[4].mxu1 %v821_v6 }
  0x4b   :  { %557 = vmatmul.mubr.bf16.gmra.mrb[4].mxu0 %v822_v7 }
 0x115   :  { %v495_v16 = vpop.f32.mrb[0].mxu1 }
 0x116   :  { %v548_v17 = vpop.f32.mrb[0].mxu0  ;;  %v496_v19 = vadd.f32 %v495_v16, %v94_v13  ;;  %v497_v21 = vpop.f32.mrb[1].mxu1 }
 0x117   :  { %v550_v22 = vpop.f32.mrb[1].mxu0  ;;  %v498_v23 = vadd.f32 %v497_v21, %v98_v15  ;;  %v499_v25 = vpop.f32.mrb[2].mxu1 }
 0x118   :  { %v552_v26 = vpop.f32.mrb[2].mxu0  ;;  %v549_v27 = vadd.f32 %v548_v17, %v496_v19  ;;  %v500_v28 = vadd.f32 %v499_v25, %v94_v13  ;;  %v501_v30 = vpop.f32.mrb[3].mxu1 }
 0x119   :  { %v554_v31 = vpop.f32.mrb[3].mxu0  ;;  %v551_v32 = vadd.f32 %v550_v22, %v498_v23  ;;  %v502_v33 = vadd.f32 %v501_v30, %v98_v15 }
 0x11a   :  { %v579_v35 = vadd.f32 %v571_v20, %v549_v27  ;;  %v553_v36 = vadd.f32 %v552_v26, %v500_v28 }
 0x11b   :  { %v580_v37 = vadd.f32 %v572_v24, %v551_v32  ;;  %v555_v38 = vadd.f32 %v554_v31, %v502_v33 }
 0x11c   :  { %v581_v40 = vadd.f32 %v573_v29, %v553_v36 }
 0x11d   :  { %v695_v41 = vpack.c.bf16 %v580_v37, %v579_v35  ;;  %v582_v42 = vadd.f32 %v574_v34, %v555_v38  ;;  %v505_v43 = vpop.f32.mrb[4].mxu1 }
 0x11e   :  { %v558_v44 = vpop.f32.mrb[4].mxu0  ;;  %v506_v46 = vadd.f32 %v505_v43, %v94_v13  ;;  %v507_v48 = vpop.f32.mrb[5].mxu1 }
 0x11f   :  { %v560_v49 = vpop.f32.mrb[5].mxu0  ;;  %611 = vst [vmem:[%s1095_s4] sm:$0xff] %v695_v41  ;;  %v696_v50 = vpack.c.bf16 %v582_v42, %v581_v40  ;;  %v508_v51 = vadd.f32 %v507_v48, %v98_v15  ;;  %v509_v53 = vpop.f32.mrb[6].mxu1 }
 0x120   :  { %v562_v54 = vpop.f32.mrb[6].mxu0  ;;  %v559_v55 = vadd.f32 %v558_v44, %v506_v46  ;;  %v510_v56 = vadd.f32 %v509_v53, %v94_v13  ;;  %v511_v58 = vpop.f32.mrb[7].mxu1 }
 0x121   :  { %v564_v59 = vpop.f32.mrb[7].mxu0  ;;  %612 = vst [vmem:[%s1095_s4 + $0x8] sm:$0xff] %v696_v50  ;;  %v561_v60 = vadd.f32 %v560_v49, %v508_v51  ;;  %v512_v61 = vadd.f32 %v511_v58, %v98_v15 }
 0x122   :  { %v583_v63 = vadd.f32 %v575_v47, %v559_v55  ;;  %v563_v0 = vadd.f32 %v562_v54, %v510_v56 }
 0x123   :  { %v584_v1 = vadd.f32 %v576_v52, %v561_v60  ;;  %v565_v2 = vadd.f32 %v564_v59, %v512_v61 }
 0x124   :  { %v585_v3 = vadd.f32 %v577_v57, %v563_v0 }
 0x125   :  { %v697_v4 = vpack.c.bf16 %v584_v1, %v583_v63  ;;  %v586_v5 = vadd.f32 %v578_v62, %v565_v2 }
 0x127   :  { %613 = vst [vmem:[%s1095_s4 + $0x10] sm:$0xff] %v697_v4  ;;  %v698_v6 = vpack.c.bf16 %v586_v5, %v585_v3 }
 0x129   :  { %614 = vst [vmem:[%s1095_s4 + $0x18] sm:$0xff] %v698_v6 }

// kernel: tile.18
= control target key start
LH: loop header
LB: loop body
LE: loop exit
PB: predicated region body
PF: predicated region fallthrough
CT: control target
= control target key end

     0   :  { %s22_s0 = inlined_call_operand.vmem [shape: f32[32], index: 0, kind: input, shape index: {}]   ;;  %s23_s1 = inlined_call_operand.vmem [shape: f32[4,32], index: 1, kind: output, shape index: {}]  }
   0x1   :  { %v4_v0 = vld [vmem:[%s22_s0] ss:$0 sm:$0xff] }
   0x2   :  { %5 = vst [vmem:[%s23_s1] sm:$0xf] %v4_v0 }

// kernel: tile.19
= control target key start
LH: loop header
LB: loop body
LE: loop exit
PB: predicated region body
PF: predicated region fallthrough
CT: control target
= control target key end

     0   :  { %vm7_vm0 = vcmask 261120   ;;  %s37_s8 = smov 32   ;;  %s38_s9 = smov 64   ;;  %vm13_vm1 = vcmask 1048320   ;;  %vm19_vm2 = vcmask 785920   ;;  %vm25_vm3 = vcmask 523520   ;;  %s55_s0 = inlined_call_operand.vmem [shape: f32[4,32], index: 0, kind: input, shape index: {}]   ;;  %s56_s1 = inlined_call_operand.vmem [shape: f32[1,128], index: 1, kind: output, shape index: {}]  }
   0x1   :  { %v4_v0 = vld [vmem:[%s55_s0] sm:$0xf]  ;;  %s36_s0 = smov 96  }
   0x2   :  { %5 = vst [vmem:[#allocation1] sm:$0xf] %v4_v0 }
   0x9   :  { %v10_v1 = vld [vmem:[#allocation1 + $0x3] sm:$0x1]   ;;  %v22_v2 = vld [vmem:[#allocation1 + $0x1] sm:$0x1]   ;;  %v6_v3 = vld [vmem:[#allocation1] sm:$0x1]  }
   0xa   :  { %11 = vrot.lane.b32.xlu0 %v10_v1, %s36_s0  ;;  %23 = vrot.lane.b32.xlu1 %v22_v2, %s37_s8  ;;  %v16_v4 = vld [vmem:[#allocation1 + $0x2] sm:$0x1]   ;;  %8 = vst.msk [vmem:[#allocation0] sm:$0x1] %vm7_vm0, %v6_v3  }
   0xe   :  { %17 = vrot.lane.b32.xlu0 %v16_v4, %s38_s9 }
  0x7c   :  { %v12_v5 = vpop.permute.xlu0 %11   ;;  %v24_v6 = vpop.permute.xlu1 %23  }
  0x7d   :  { %14 = vst.msk [vmem:[#allocation0] sm:$0x1] %vm13_vm1, %v12_v5  }
  0x80   :  { %v18_v7 = vpop.permute.xlu0 %17  }
  0x81   :  { %20 = vst.msk [vmem:[#allocation0] sm:$0x1] %vm19_vm2, %v18_v7  }
  0x82   :  { %26 = vst.msk [vmem:[#allocation0] sm:$0x1] %vm25_vm3, %v24_v6  }
  0x89   :  { %v30_v8 = vld [vmem:[#allocation0] sm:$0x1] }
  0x8a   :  { %32 = vst [vmem:[%s56_s1] sm:$0x1] %v30_v8 }

// kernel: sekd_forward.24
= control target key start
LH: loop header
LB: loop body
LE: loop exit
PB: predicated region body
PF: predicated region fallthrough
CT: control target
= control target key end

     0   :  { %s759_s15 = smov 0   ;;  %s858_s0 = inlined_call_operand.vmem [shape: bf16[128,256], index: 0, kind: input, shape index: {}]   ;;  %s859_s1 = inlined_call_operand.vmem [shape: bf16[256,128], index: 1, kind: input, shape index: {}]   ;;  %s860_s2 = inlined_call_operand.vmem [shape: f32[1,128], index: 2, kind: input, shape index: {}]   ;;  %s861_s3 = inlined_call_operand.vmem [shape: bf16[128,128], index: 3, kind: input, shape index: {}]   ;;  %s862_s4 = inlined_call_operand.vmem [shape: f32[128,128], index: 4, kind: output, shape index: {}]  }
   0x1 LB: > { %s575_s16 = sadd.s32 4294967295, %s732_s15   ;;  %p579_p0 = scmp.ge.s32.totalorder %s732_s15, 1  ;;  %s732_s15 = sphi %s759_s15, %s14_s15  }
   0x2   : > { %p175_p1 = scmp.lt.s32.totalorder %s732_s15, 3 }
   0x4   : > { %p176_p2 = pnand %p579_p0, %p175_p1 }
   0x5   : > { %v698_v0 = vld [vmem:[%s859_s1 + $0x40] sm:$0xff] (!%p176_p2)   ;;  %s580_s19 = sshll.u32 (!%p176_p2), %s575_s16, 3  ;;  %v700_v2 = vld [vmem:[%s859_s1 + $0x48] sm:$0xff] (!%p176_p2)   ;;  %v702_v4 = vld [vmem:[%s859_s1 + $0x50] sm:$0xff] (!%p176_p2)  }
   0x6   : > { %179 = sbr.rel (%p176_p2) target bundleno = 268 (0x10c), region = 36  ;;  %v699_v1 = vld [vmem:[%s859_s1] sm:$0xff] (!%p176_p2)   ;;  %634 = vmatprep.subr.bf16.mxu0 (!%p176_p2), %v698_v0  ;;  %674 = vmatprep.subr.bf16.mxu1 (!%p176_p2), %v698_v0  ;;  %v701_v3 = vld [vmem:[%s859_s1 + $0x8] sm:$0xff] (!%p176_p2)   ;;  %p208_p3 = scmp.lt.s32.totalorder (!%p176_p2), %s580_s19, 15  ;;  %v703_v5 = vld [vmem:[%s859_s1 + $0x10] sm:$0xff] (!%p176_p2)  }
   0x7   : > { %635 = vmatpush3.bf16.msra.mxu0 (!%p176_p2), %v699_v1  ;;  %682 = vmatpush3.bf16.msra.mxu1 (!%p176_p2), %v699_v1  ;;  %v704_v6 = vld [vmem:[%s859_s1 + $0x58] sm:$0xff] (!%p176_p2)   ;;  %v706_v8 = vld [vmem:[%s859_s1 + $0x60] sm:$0xff] (!%p176_p2)   ;;  %v708_v10 = vld [vmem:[%s859_s1 + $0x68] sm:$0xff] (!%p176_p2)  }
   0x8   : > { %636 = vmatprep.subr.bf16.mxu0 (!%p176_p2), %v700_v2  ;;  %675 = vmatprep.subr.bf16.mxu1 (!%p176_p2), %v700_v2  ;;  %v705_v7 = vld [vmem:[%s859_s1 + $0x18] sm:$0xff] (!%p176_p2)   ;;  %v707_v9 = vld [vmem:[%s859_s1 + $0x20] sm:$0xff] (!%p176_p2)   ;;  %v709_v13 = vld [vmem:[%s859_s1 + $0x28] sm:$0xff] (!%p176_p2)  }
   0x9   : > { %v710_v14 = vld [vmem:[%s859_s1 + $0x70] sm:$0xff] (!%p176_p2)   ;;  %v712_v16 = vld [vmem:[%s859_s1 + $0x78] sm:$0xff] (!%p176_p2)   ;;  %v587_v28 = vld [vmem:[%s860_s2] ss:$0 sm:$0xff] (!%p176_p2) }
   0xa   : > { %v711_v15 = vld [vmem:[%s859_s1 + $0x30] sm:$0xff] (!%p176_p2)   ;;  %v713_v17 = vld [vmem:[%s859_s1 + $0x38] sm:$0xff] (!%p176_p2)  }
   0xb   : > { %637 = vmatpush3.bf16.msra.mxu0 (!%p176_p2), %v701_v3  ;;  %683 = vmatpush3.bf16.msra.mxu1 (!%p176_p2), %v701_v3 }
   0xc   : > { %638 = vmatprep.subr.bf16.mxu0 (!%p176_p2), %v702_v4  ;;  %676 = vmatprep.subr.bf16.mxu1 (!%p176_p2), %v702_v4 }
   0xd   : > { %s864_s19 = smov (!%p208_p3, %s580_s19), 15 }
   0xe   : > { %s614_s8 = sshll.u32 %s864_s19, 3  ;;  %s584_s30 = sshll.u32 %s864_s19, 2 }
   0xf   : > { %639 = vmatpush3.bf16.msra.mxu0 %v703_v5  ;;  %684 = vmatpush3.bf16.msra.mxu1 %v703_v5  ;;  %s802_s13 = scalar_lea.vmem %s858_s0, %s614_s8  ;;  %s218_s7 = scalar_lea.vmem %s861_s3, %s584_s30 }
  0x10   : > { %640 = vmatprep.subr.bf16.mxu0 %v704_v6  ;;  %677 = vmatprep.subr.bf16.mxu1 %v704_v6  ;;  %v716_v11 = vld [vmem:[%s802_s13 + $0x4] ss:$8 sps:$4 sm:$0xff]   ;;  %v714_v18 = vld [vmem:[%s802_s13] ss:$8 sps:$4 sm:$0xff]   ;;  %v720_v20 = vld [vmem:[%s802_s13 + $0x14] ss:$8 sps:$4 sm:$0xff]  }
  0x11   : > { %v719_v12 = vld [vmem:[%s802_s13 + $0x24] ss:$8 sps:$4 sm:$0xff]   ;;  %442 = vmatprep.mubr.bf16.mxu0 %v716_v11  ;;  %v717_v19 = vld [vmem:[%s802_s13 + $0x20] ss:$8 sps:$4 sm:$0xff]   ;;  %v722_v21 = vld [vmem:[%s802_s13 + $0x34] ss:$8 sps:$4 sm:$0xff]  }
  0x12   : > { %458 = vmatprep.mubr.bf16.mxu1 %v719_v12  ;;  %v724_v22 = vld [vmem:[%s802_s13 + $0x10] ss:$8 sps:$4 sm:$0xff]   ;;  %v616_v24 = vld [vmem:[%s218_s7] sm:$0xff]   ;;  %v631_v49 = vld [vmem:[%s218_s7 + $0x8] sm:$0xff]  }
  0x13   : > { %641 = vmatpush3.bf16.msra.mxu0 %v705_v7  ;;  %685 = vmatpush3.bf16.msra.mxu1 %v705_v7  ;;  %v725_v23 = vld [vmem:[%s802_s13 + $0x30] ss:$8 sps:$4 sm:$0xff]   ;;  %v617_v32 = vunpack.c.l.bf16 %v616_v24  ;;  %v618_v38 = vunpack.c.h.bf16 %v616_v24  ;;  %s845_s13 = scalar_lea.vmem %s862_s4, %s614_s8  ;;  %v621_v58 = vunpack.c.l.bf16 %v631_v49  ;;  %v622_v0 = vunpack.c.h.bf16 %v631_v49 }
  0x14   : > { %642 = vmatprep.subr.bf16.mxu0 %v706_v8  ;;  %678 = vmatprep.subr.bf16.mxu1 %v706_v8  ;;  %v632_v25 = vld [vmem:[%s218_s7 + $0x10] sm:$0xff]   ;;  %v633_v50 = vld [vmem:[%s218_s7 + $0x18] sm:$0xff]  }
  0x15   : > { %v625_v34 = vunpack.c.l.bf16 %v632_v25  ;;  %v626_v40 = vunpack.c.h.bf16 %v632_v25  ;;  %v629_v60 = vunpack.c.l.bf16 %v633_v50  ;;  %v630_v2 = vunpack.c.h.bf16 %v633_v50 }
  0x17   : > { %643 = vmatpush3.bf16.msra.mxu0 %v707_v9  ;;  %686 = vmatpush3.bf16.msra.mxu1 %v707_v9 }
  0x18   : > { %644 = vmatprep.subr.bf16.mxu0 %v708_v10  ;;  %679 = vmatprep.subr.bf16.mxu1 %v708_v10 }
  0x1b   : > { %645 = vmatpush3.bf16.msra.mxu0 %v709_v13  ;;  %687 = vmatpush3.bf16.msra.mxu1 %v709_v13 }
  0x1c   : > { %646 = vmatprep.subr.bf16.mxu0 %v710_v14  ;;  %680 = vmatprep.subr.bf16.mxu1 %v710_v14 }
  0x1f   : > { %647 = vmatpush3.bf16.msra.mxu0 %v711_v15  ;;  %688 = vmatpush3.bf16.msra.mxu1 %v711_v15 }
  0x20   : > { %648 = vmatprep.subr.bf16.mxu0 %v712_v16  ;;  %681 = vmatprep.subr.bf16.mxu1 %v712_v16 }
  0x23   : > { %649 = vmatpush3.bf16.msra.mxu0 %v713_v17  ;;  %689 = vmatpush3.bf16.msra.mxu1 %v713_v17 }
  0x26   : > { %443 = vmatmul.mubr.bf16.vlgmr.msra.gmra.mrb[0].mxu0 %v714_v18  ;;  %459 = vmatmul.mubr.bf16.vlgmr.msra.gmra.mrb[0].mxu1 %v717_v19 }
  0x27   : > { %450 = vmatprep.mubr.bf16.mxu0 %v720_v20  ;;  %466 = vmatprep.mubr.bf16.mxu1 %v722_v21 }
  0x2e   : > { %451 = vmatmul.mubr.bf16.gmra.mrb[4].mxu0 %v724_v22  ;;  %467 = vmatmul.mubr.bf16.gmra.mrb[4].mxu1 %v725_v23 }
  0xf9   : > { %v650_v26 = vpop.f32.mrb[0].mxu0  ;;  %v662_v27 = vpop.f32.mrb[0].mxu1 }
  0xfa   : > { %v651_v29 = vpop.f32.mrb[1].mxu0  ;;  %v663_v30 = vpop.f32.mrb[1].mxu1 }
  0xfb   : > { %v652_v31 = vadd.f32 %v651_v29, %v650_v26  ;;  %v664_v33 = vadd.f32 %v663_v30, %v662_v27  ;;  %v653_v35 = vpop.f32.mrb[2].mxu0  ;;  %v665_v36 = vpop.f32.mrb[2].mxu1 }
  0xfc   : > { %v654_v37 = vpop.f32.mrb[3].mxu0  ;;  %v666_v39 = vpop.f32.mrb[3].mxu1 }
  0xfd   : > { %v445_v41 = vadd.f32 %v652_v31, %v587_v28  ;;  %v461_v42 = vadd.f32 %v664_v33, %v587_v28  ;;  %v655_v43 = vadd.f32 %v654_v37, %v653_v35  ;;  %v667_v44 = vadd.f32 %v666_v39, %v665_v36 }
  0xff   : > { %v491_v45 = vadd.f32 %v617_v32, %v445_v41  ;;  %v495_v46 = vadd.f32 %v625_v34, %v461_v42  ;;  %v448_v47 = vadd.f32 %v655_v43, %v587_v28  ;;  %v464_v48 = vadd.f32 %v667_v44, %v587_v28 }
 0x101   : > { %499 = vst [vmem:[%s845_s13] sm:$0xff] %v491_v45  ;;  %503 = vst [vmem:[%s845_s13 + $0x20] sm:$0xff] %v495_v46  ;;  %v492_v51 = vadd.f32 %v618_v38, %v448_v47  ;;  %v496_v52 = vadd.f32 %v626_v40, %v464_v48  ;;  %v656_v53 = vpop.f32.mrb[4].mxu0  ;;  %v668_v54 = vpop.f32.mrb[4].mxu1 }
 0x102   : > { %v657_v55 = vpop.f32.mrb[5].mxu0  ;;  %v669_v56 = vpop.f32.mrb[5].mxu1 }
 0x103   : > { %500 = vst [vmem:[%s845_s13 + $0x8] sm:$0xff] %v492_v51  ;;  %504 = vst [vmem:[%s845_s13 + $0x28] sm:$0xff] %v496_v52  ;;  %v658_v57 = vadd.f32 %v657_v55, %v656_v53  ;;  %v670_v59 = vadd.f32 %v669_v56, %v668_v54  ;;  %v659_v61 = vpop.f32.mrb[6].mxu0  ;;  %v671_v62 = vpop.f32.mrb[6].mxu1 }
 0x104   : > { %v660_v63 = vpop.f32.mrb[7].mxu0  ;;  %v672_v1 = vpop.f32.mrb[7].mxu1 }
 0x105   : > { %v453_v3 = vadd.f32 %v658_v57, %v587_v28  ;;  %v469_v4 = vadd.f32 %v670_v59, %v587_v28  ;;  %v661_v5 = vadd.f32 %v660_v63, %v659_v61  ;;  %v673_v6 = vadd.f32 %v672_v1, %v671_v62 }
 0x107   : > { %v493_v7 = vadd.f32 %v621_v58, %v453_v3  ;;  %v497_v8 = vadd.f32 %v629_v60, %v469_v4  ;;  %v456_v9 = vadd.f32 %v661_v5, %v587_v28  ;;  %v472_v10 = vadd.f32 %v673_v6, %v587_v28 }
 0x109   : > { %501 = vst [vmem:[%s845_s13 + $0x10] sm:$0xff] %v493_v7  ;;  %505 = vst [vmem:[%s845_s13 + $0x30] sm:$0xff] %v497_v8  ;;  %v494_v11 = vadd.f32 %v622_v0, %v456_v9  ;;  %v498_v12 = vadd.f32 %v630_v2, %v472_v10 }
 0x10b   : > { %502 = vst [vmem:[%s845_s13 + $0x18] sm:$0xff] %v494_v11  ;;  %506 = vst [vmem:[%s845_s13 + $0x38] sm:$0xff] %v498_v12 }
 0x10c PF: > { %s14_s15 = sadd.s32 1, %s732_s15  }
 0x10d   : > { %p11_p4 = scmp.ge.s32.totalorder %s14_s15, 4  }
 0x10f   :  { %13 = sbr.rel (!%p11_p4) target bundleno = 1 (0x1), region = 69 }

</bundles_post_ra>
